<compile_context>
chip_gen: v7x
topology: tpu7x:2x2x1
jax: 0.10.0
libtpu: 0.0.40
codegen_flags: <defaults>
</compile_context>

<pallas_src>
import jax
import jax.numpy as jnp
from jax import lax
from jax.experimental import pallas as pl
from jax.experimental.pallas import tpu as pltpu

_SUBLANE = 8
_LANE = 128


def _round_up(x, m):
    return (x + m - 1) // m * m


def _pad_gate_cols(w, H, Hp):
    """[..., 4*H] -> [..., 4*Hp], zero-padding each gate block independently."""
    if Hp == H:
        return w
    lead = w.shape[:-1]
    w4 = w.reshape(lead + (4, H))
    pad = [(0, 0)] * len(lead) + [(0, 0), (0, Hp - H)]
    return jnp.pad(w4, pad).reshape(lead + (4 * Hp,))


def _make_kernel(T, B, B_pad, Hp):
    """Builds the fused encoder+decoder LSTM kernel for static (T, B, B_pad, Hp)."""

    def kernel(ids_ref,                                   # SMEM [2, T*B] int32
               tab_e, whh_e, b_e, tab_d, whh_d, b_d,      # VMEM params
               out_e, hn_e, cn_e, out_d, hn_d, cn_d,      # VMEM outputs
               xp_e, xp_d):                               # VMEM scratch [T*B_pad, 4*Hp]
        """Shapes (Hp = H padded to 128, G = 4*Hp):
             tab_*  : [Vp, G] f32   fused emb @ W_ih, gate-column padded
             whh_*  : [Hp, G] bf16
             b_*    : [1,  G] f32   (b_ih + b_hh)
             out_*  : [T*B_pad, Hp] f32   time-major hidden states
             hn_*, cn_* : [B_pad, Hp] f32
        """
        # ---- stage 1: x_proj[t*B_pad + b] = table[ids[t, b]] + bias ----------
        # Row-gather from the fused table (no one-hot, no x-path matmuls); only
        # the real B rows are gathered, padded rows stay zero.
        for side, tab, bias, xp in ((0, tab_e, b_e, xp_e),
                                    (1, tab_d, b_d, xp_d)):
            xp[...] = jnp.zeros(xp.shape, jnp.float32)
            bias_row = bias[...]                                  # [1, G]
            for t in range(T):
                for b in range(B):
                    tok = ids_ref[side, t * B + b]                # SMEM scalar
                    row = tab[pl.ds(tok, 1), :]                   # [1, G] dyn gather
                    r = t * B_pad + b
                    xp[r:r + 1, :] = row + bias_row

        # ---- stage 2: recurrence; only h/c live across steps ------------------
        def lstm_step(xp, t, h, c, whh_ref):
            # bf16 x bf16 MXU matmul, f32 accumulation; gate math stays f32.
            g = xp[t * B_pad:(t + 1) * B_pad, :] + jnp.dot(
                h.astype(jnp.bfloat16), whh_ref[...],
                preferred_element_type=jnp.float32)               # [B_pad, G]
            i_g = jax.nn.sigmoid(g[:, 0 * Hp:1 * Hp])
            f_g = jax.nn.sigmoid(g[:, 1 * Hp:2 * Hp])
            g_g = jnp.tanh(g[:, 2 * Hp:3 * Hp])
            o_g = jax.nn.sigmoid(g[:, 3 * Hp:4 * Hp])
            c_n = f_g * c + i_g * g_g
            h_n = o_g * jnp.tanh(c_n)
            return h_n, c_n

        zero = jnp.zeros((B_pad, Hp), jnp.float32)
        h_e, c_e, h_d, c_d = zero, zero, zero, zero
        for t in range(T):
            # Encoder/decoder chains are independent -> their per-step matmul
            # latencies overlap on a single TensorCore.
            h_e, c_e = lstm_step(xp_e, t, h_e, c_e, whh_e)
            h_d, c_d = lstm_step(xp_d, t, h_d, c_d, whh_d)
            out_e[t * B_pad:(t + 1) * B_pad, :] = h_e             # full-lane store
            out_d[t * B_pad:(t + 1) * B_pad, :] = h_d

        hn_e[...] = h_e
        cn_e[...] = c_e
        hn_d[...] = h_d
        cn_d[...] = c_d

    return kernel


def _stage_side(params, H, Hp):
    """Precompute fused table / padded weights for one LSTM (XLA side)."""
    emb, w_ih, w_hh, bias = (params["emb"], params["w_ih"],
                             params["w_hh"], params["bias"])
    V = emb.shape[0]
    Vp = _round_up(V, _SUBLANE)
    table = _pad_gate_cols(jnp.dot(emb, w_ih), H, Hp)             # [V, 4Hp] f32
    table = jnp.pad(table, ((0, Vp - V), (0, 0)))
    whh = _pad_gate_cols(w_hh, H, Hp)                             # [H, 4Hp]
    whh = jnp.pad(whh, ((0, Hp - H), (0, 0))).astype(jnp.bfloat16)
    b = _pad_gate_cols(bias, H, Hp)                               # [1, 4Hp] f32
    return table, whh, b


@jax.jit
def seq2seq_forward(src, tgt, enc_params, dec_params):
    """Encoder(src) and Encoder-structured decoder(tgt), one fused pallas_call."""
    B, T = src.shape
    H = enc_params["w_hh"].shape[0]
    Hp = _round_up(H, _LANE)
    B_pad = _round_up(B, _SUBLANE)
    G = 4 * Hp

    tab_e, whh_e, b_e = _stage_side(enc_params, H, Hp)
    tab_d, whh_d, b_d = _stage_side(dec_params, H, Hp)
    Vp = tab_e.shape[0]

    # time-major flat ids, scalar-prefetched into SMEM
    ids = jnp.stack([src.astype(jnp.int32).T.reshape(T * B),
                     tgt.astype(jnp.int32).T.reshape(T * B)])     # [2, T*B]

    kernel = _make_kernel(T=T, B=B, B_pad=B_pad, Hp=Hp)

    def full(shape):
        return pl.BlockSpec(shape, lambda i, ids_ref: (0,) * len(shape))

    grid_spec = pltpu.PrefetchScalarGridSpec(
        num_scalar_prefetch=1,
        grid=(1,),
        in_specs=[full((Vp, G)), full((Hp, G)), full((1, G)),
                  full((Vp, G)), full((Hp, G)), full((1, G))],
        out_specs=[full((T * B_pad, Hp)), full((B_pad, Hp)), full((B_pad, Hp)),
                   full((T * B_pad, Hp)), full((B_pad, Hp)), full((B_pad, Hp))],
        scratch_shapes=[pltpu.VMEM((T * B_pad, G), jnp.float32),
                        pltpu.VMEM((T * B_pad, G), jnp.float32)],
    )

    out_e, hn_e, cn_e, out_d, hn_d, cn_d = pl.pallas_call(
        kernel,
        out_shape=(
            jax.ShapeDtypeStruct((T * B_pad, Hp), jnp.float32),
            jax.ShapeDtypeStruct((B_pad, Hp), jnp.float32),
            jax.ShapeDtypeStruct((B_pad, Hp), jnp.float32),
            jax.ShapeDtypeStruct((T * B_pad, Hp), jnp.float32),
            jax.ShapeDtypeStruct((B_pad, Hp), jnp.float32),
            jax.ShapeDtypeStruct((B_pad, Hp), jnp.float32),
        ),
        grid_spec=grid_spec,
        compiler_params=pltpu.CompilerParams(
            dimension_semantics=("arbitrary",),
            vmem_limit_bytes=32 * 1024 * 1024),   # explicit, fits v7x 64 MiB too
    )(ids, tab_e, whh_e, b_e, tab_d, whh_d, b_d)

    def unpack(o, hn, cn):
        outs = o.reshape(T, B_pad, Hp)[:, :B, :H].transpose(1, 0, 2)  # [B, T, H]
        return outs, (hn[:B, :H][None], cn[:B, :H][None])

    return unpack(out_e, hn_e, cn_e), unpack(out_d, hn_d, cn_d)


def encoder_reference(ids, emb, w_ih, w_hh, bias):
    """Pure-JAX reference of the Encoder forward.

    Mirrors the kernel's precision policy exactly (fused f32 table gather; bf16
    operands with f32 accumulation on the recurrence matmul) so the tolerance
    can be tight enough to catch layout/indexing bugs.
    """
    B, T = ids.shape
    H = w_hh.shape[0]
    table = jnp.dot(emb, w_ih)                      # same fused table as wrapper
    x = table[ids] + bias[0]                        # [B, T, 4H]
    whh16 = w_hh.astype(jnp.bfloat16)

    def step(carry, x_t):
        h, c = carry
        g = x_t + jnp.dot(h.astype(jnp.bfloat16), whh16,
                          preferred_element_type=jnp.float32)
        i_g = jax.nn.sigmoid(g[:, 0 * H:1 * H])
        f_g = jax.nn.sigmoid(g[:, 1 * H:2 * H])
        g_g = jnp.tanh(g[:, 2 * H:3 * H])
        o_g = jax.nn.sigmoid(g[:, 3 * H:4 * H])
        c_n = f_g * c + i_g * g_g
        h_n = o_g * jnp.tanh(c_n)
        return (h_n, c_n), h_n

    h0 = jnp.zeros((B, H), jnp.float32)
    c0 = jnp.zeros((B, H), jnp.float32)
    (hn, cn), outs = lax.scan(step, (h0, c0), jnp.swapaxes(x, 0, 1))
    return jnp.swapaxes(outs, 0, 1), (hn[None], cn[None])


def init_encoder_params(key, vocab_size, embedding_dim, hidden_dim):
    """Deterministic parameter init (shapes per nn.Embedding / nn.LSTM)."""
    k_emb, k_ih, k_hh, k_bi, k_bh = jax.random.split(key, 5)
    bound = float(1.0 / (hidden_dim ** 0.5))
    emb = jax.random.normal(k_emb, (vocab_size, embedding_dim), jnp.float32)
    # PyTorch stores [4H, input] / [4H, H]; we store transposed for x @ W.
    w_ih = jax.random.uniform(k_ih, (vocab_size, 4 * hidden_dim), jnp.float32,
                              -bound, bound)
    w_hh = jax.random.uniform(k_hh, (hidden_dim, 4 * hidden_dim), jnp.float32,
                              -bound, bound)
    b_ih = jax.random.uniform(k_bi, (4 * hidden_dim,), jnp.float32, -bound, bound)
    b_hh = jax.random.uniform(k_bh, (4 * hidden_dim,), jnp.float32, -bound, bound)
    bias = (b_ih + b_hh)[None, :]                   # [1, 4H]
    return dict(emb=emb, w_ih=w_ih, w_hh=w_hh, bias=bias)


class Seq2SeqPallas:
    """Mirrors Seq2Seq(vocab_size, embedding_dim, hidden_dim) structure."""

    def __init__(self, vocab_size, embedding_dim, hidden_dim, key):
        assert embedding_dim == vocab_size, (
            "reference module only runs when embedding_dim == vocab_size")
        k_enc, k_dec = jax.random.split(key)
        self.encoder = init_encoder_params(k_enc, vocab_size, embedding_dim,
                                           hidden_dim)
        self.decoder = init_encoder_params(k_dec, vocab_size, embedding_dim,
                                           hidden_dim)

    def __call__(self, src, tgt):
        return seq2seq_forward(src, tgt, self.encoder, self.decoder)


if __name__ == "__main__":
    VOCAB = 32
    EMB = 32        # must equal VOCAB (see note above)
    HID = 32
    B, T = 2, 8

    key = jax.random.PRNGKey(0)
    k_params, k_src, k_tgt = jax.random.split(key, 3)

    model = Seq2SeqPallas(VOCAB, EMB, HID, k_params)
    src = jax.random.randint(k_src, (B, T), 0, VOCAB, dtype=jnp.int32)
    tgt = jax.random.randint(k_tgt, (B, T), 0, VOCAB, dtype=jnp.int32)

    (enc_out, (enc_hn, enc_cn)), (dec_out, (dec_hn, dec_cn)) = model(src, tgt)
    jax.block_until_ready((enc_out, enc_hn, enc_cn, dec_out, dec_hn, dec_cn))

    # correctness check vs pure-JAX reference (encoder AND decoder paths).
    # Tolerance is tight enough to catch layout/gather/slicing bugs (those give
    # O(1) errors) while allowing for transcendental-implementation drift
    # between Mosaic and XLA over the T-step recurrence.
    ref_eo, (ref_ehn, ref_ecn) = encoder_reference(
        src, model.encoder["emb"], model.encoder["w_ih"],
        model.encoder["w_hh"], model.encoder["bias"])
    ref_do, (ref_dhn, ref_dcn) = encoder_reference(
        tgt, model.decoder["emb"], model.decoder["w_ih"],
        model.decoder["w_hh"], model.decoder["bias"])

    assert enc_out.shape == (B, T, HID)
    assert enc_hn.shape == (1, B, HID) and enc_cn.shape == (1, B, HID)
    assert dec_out.shape == (B, T, HID)
    for got, ref in ((enc_out, ref_eo), (enc_hn, ref_ehn), (enc_cn, ref_ecn),
                     (dec_out, ref_do), (dec_hn, ref_dhn), (dec_cn, ref_dcn)):
        assert jnp.allclose(got, ref, atol=2e-3, rtol=2e-3), (
            float(jnp.max(jnp.abs(got - ref))))

    print("KERNEL_OK")
</pallas_src>

<mosaic_0001>
module attributes {stable_mosaic.version = 11 : i64} {
  func.func @kernel(%arg0: i32, %arg1: memref<2x16xi32, #tpu.memory_space<smem>>, %arg2: memref<32x512xf32, #tpu.memory_space<vmem>>, %arg3: memref<128x512xbf16, #tpu.memory_space<vmem>>, %arg4: memref<1x512xf32, #tpu.memory_space<vmem>>, %arg5: memref<32x512xf32, #tpu.memory_space<vmem>>, %arg6: memref<128x512xbf16, #tpu.memory_space<vmem>>, %arg7: memref<1x512xf32, #tpu.memory_space<vmem>>, %arg8: memref<64x128xf32, #tpu.memory_space<vmem>>, %arg9: memref<8x128xf32, #tpu.memory_space<vmem>>, %arg10: memref<8x128xf32, #tpu.memory_space<vmem>>, %arg11: memref<64x128xf32, #tpu.memory_space<vmem>>, %arg12: memref<8x128xf32, #tpu.memory_space<vmem>>, %arg13: memref<8x128xf32, #tpu.memory_space<vmem>>, %arg14: memref<64x512xf32, #tpu.memory_space<vmem>>, %arg15: memref<64x512xf32, #tpu.memory_space<vmem>>) attributes {dimension_semantics = [#tpu.dimension_semantics<arbitrary>], iteration_bounds = array<i64: 1>, scalar_prefetch = 1 : i64, scratch_operands = 2 : i64, tpu.core_type = #tpu.core_type<tc>, window_params = [{pipeline_mode = #tpu.pipeline_mode<synchronous>, transform_indices = @transform_0, window_bounds = array<i64: 32, 512>}, {pipeline_mode = #tpu.pipeline_mode<synchronous>, transform_indices = @transform_1, window_bounds = array<i64: 128, 512>}, {pipeline_mode = #tpu.pipeline_mode<synchronous>, transform_indices = @transform_2, window_bounds = array<i64: 1, 512>}, {pipeline_mode = #tpu.pipeline_mode<synchronous>, transform_indices = @transform_3, window_bounds = array<i64: 32, 512>}, {pipeline_mode = #tpu.pipeline_mode<synchronous>, transform_indices = @transform_4, window_bounds = array<i64: 128, 512>}, {pipeline_mode = #tpu.pipeline_mode<synchronous>, transform_indices = @transform_5, window_bounds = array<i64: 1, 512>}, {pipeline_mode = #tpu.pipeline_mode<synchronous>, transform_indices = @transform_6, window_bounds = array<i64: 64, 128>}, {pipeline_mode = #tpu.pipeline_mode<synchronous>, transform_indices = @transform_7, window_bounds = array<i64: 8, 128>}, {pipeline_mode = #tpu.pipeline_mode<synchronous>, transform_indices = @transform_8, window_bounds = array<i64: 8, 128>}, {pipeline_mode = #tpu.pipeline_mode<synchronous>, transform_indices = @transform_9, window_bounds = array<i64: 64, 128>}, {pipeline_mode = #tpu.pipeline_mode<synchronous>, transform_indices = @transform_10, window_bounds = array<i64: 8, 128>}, {pipeline_mode = #tpu.pipeline_mode<synchronous>, transform_indices = @transform_11, window_bounds = array<i64: 8, 128>}]} {
    %cst = arith.constant 0.000000e+00 : f32
    %0 = vector.broadcast %cst : f32 to vector<64x512xf32>
    %c0 = arith.constant 0 : index
    %c0_0 = arith.constant 0 : index
    %1 = vector.load %arg14[%c0, %c0_0] : memref<64x512xf32, #tpu.memory_space<vmem>>, vector<64x512xf32>
    tpu.vector_store %arg14[%c0, %c0_0], %0 {strides = array<i32>} : memref<64x512xf32, #tpu.memory_space<vmem>>, vector<64x512xf32>,
    %c0_1 = arith.constant 0 : index
    %c0_2 = arith.constant 0 : index
    %2 = vector.load %arg4[%c0_1, %c0_2] : memref<1x512xf32, #tpu.memory_space<vmem>>, vector<1x512xf32>
    %c0_3 = arith.constant 0 : index
    %c0_4 = arith.constant 0 : index
    %3 = memref.load %arg1[%c0_3, %c0_4] : memref<2x16xi32, #tpu.memory_space<smem>>
    %4 = arith.index_cast %3 : i32 to index
    %c0_5 = arith.constant 0 : index
    %5 = vector.load %arg2[%4, %c0_5] : memref<32x512xf32, #tpu.memory_space<vmem>>, vector<1x512xf32>
    %6 = arith.addf %5, %2 : vector<1x512xf32>
    %c0_6 = arith.constant 0 : index
    %c0_7 = arith.constant 0 : index
    %7 = vector.load %arg14[%c0_6, %c0_7] : memref<64x512xf32, #tpu.memory_space<vmem>>, vector<1x512xf32>
    tpu.vector_store %arg14[%c0_6, %c0_7], %6 {strides = array<i32>} : memref<64x512xf32, #tpu.memory_space<vmem>>, vector<1x512xf32>,
    %c0_8 = arith.constant 0 : index
    %c1 = arith.constant 1 : index
    %8 = memref.load %arg1[%c0_8, %c1] : memref<2x16xi32, #tpu.memory_space<smem>>
    %9 = arith.index_cast %8 : i32 to index
    %c0_9 = arith.constant 0 : index
    %10 = vector.load %arg2[%9, %c0_9] : memref<32x512xf32, #tpu.memory_space<vmem>>, vector<1x512xf32>
    %11 = arith.addf %10, %2 : vector<1x512xf32>
    %c1_10 = arith.constant 1 : index
    %c0_11 = arith.constant 0 : index
    %12 = vector.load %arg14[%c1_10, %c0_11] : memref<64x512xf32, #tpu.memory_space<vmem>>, vector<1x512xf32>
    tpu.vector_store %arg14[%c1_10, %c0_11], %11 {strides = array<i32>} : memref<64x512xf32, #tpu.memory_space<vmem>>, vector<1x512xf32>,
    %c0_12 = arith.constant 0 : index
    %c2 = arith.constant 2 : index
    %13 = memref.load %arg1[%c0_12, %c2] : memref<2x16xi32, #tpu.memory_space<smem>>
    %14 = arith.index_cast %13 : i32 to index
    %c0_13 = arith.constant 0 : index
    %15 = vector.load %arg2[%14, %c0_13] : memref<32x512xf32, #tpu.memory_space<vmem>>, vector<1x512xf32>
    %16 = arith.addf %15, %2 : vector<1x512xf32>
    %c8 = arith.constant 8 : index
    %c0_14 = arith.constant 0 : index
    %17 = vector.load %arg14[%c8, %c0_14] : memref<64x512xf32, #tpu.memory_space<vmem>>, vector<1x512xf32>
    tpu.vector_store %arg14[%c8, %c0_14], %16 {strides = array<i32>} : memref<64x512xf32, #tpu.memory_space<vmem>>, vector<1x512xf32>,
    %c0_15 = arith.constant 0 : index
    %c3 = arith.constant 3 : index
    %18 = memref.load %arg1[%c0_15, %c3] : memref<2x16xi32, #tpu.memory_space<smem>>
    %19 = arith.index_cast %18 : i32 to index
    %c0_16 = arith.constant 0 : index
    %20 = vector.load %arg2[%19, %c0_16] : memref<32x512xf32, #tpu.memory_space<vmem>>, vector<1x512xf32>
    %21 = arith.addf %20, %2 : vector<1x512xf32>
    %c9 = arith.constant 9 : index
    %c0_17 = arith.constant 0 : index
    %22 = vector.load %arg14[%c9, %c0_17] : memref<64x512xf32, #tpu.memory_space<vmem>>, vector<1x512xf32>
    tpu.vector_store %arg14[%c9, %c0_17], %21 {strides = array<i32>} : memref<64x512xf32, #tpu.memory_space<vmem>>, vector<1x512xf32>,
    %c0_18 = arith.constant 0 : index
    %c4 = arith.constant 4 : index
    %23 = memref.load %arg1[%c0_18, %c4] : memref<2x16xi32, #tpu.memory_space<smem>>
    %24 = arith.index_cast %23 : i32 to index
    %c0_19 = arith.constant 0 : index
    %25 = vector.load %arg2[%24, %c0_19] : memref<32x512xf32, #tpu.memory_space<vmem>>, vector<1x512xf32>
    %26 = arith.addf %25, %2 : vector<1x512xf32>
    %c16 = arith.constant 16 : index
    %c0_20 = arith.constant 0 : index
    %27 = vector.load %arg14[%c16, %c0_20] : memref<64x512xf32, #tpu.memory_space<vmem>>, vector<1x512xf32>
    tpu.vector_store %arg14[%c16, %c0_20], %26 {strides = array<i32>} : memref<64x512xf32, #tpu.memory_space<vmem>>, vector<1x512xf32>,
    %c0_21 = arith.constant 0 : index
    %c5 = arith.constant 5 : index
    %28 = memref.load %arg1[%c0_21, %c5] : memref<2x16xi32, #tpu.memory_space<smem>>
    %29 = arith.index_cast %28 : i32 to index
    %c0_22 = arith.constant 0 : index
    %30 = vector.load %arg2[%29, %c0_22] : memref<32x512xf32, #tpu.memory_space<vmem>>, vector<1x512xf32>
    %31 = arith.addf %30, %2 : vector<1x512xf32>
    %c17 = arith.constant 17 : index
    %c0_23 = arith.constant 0 : index
    %32 = vector.load %arg14[%c17, %c0_23] : memref<64x512xf32, #tpu.memory_space<vmem>>, vector<1x512xf32>
    tpu.vector_store %arg14[%c17, %c0_23], %31 {strides = array<i32>} : memref<64x512xf32, #tpu.memory_space<vmem>>, vector<1x512xf32>,
    %c0_24 = arith.constant 0 : index
    %c6 = arith.constant 6 : index
    %33 = memref.load %arg1[%c0_24, %c6] : memref<2x16xi32, #tpu.memory_space<smem>>
    %34 = arith.index_cast %33 : i32 to index
    %c0_25 = arith.constant 0 : index
    %35 = vector.load %arg2[%34, %c0_25] : memref<32x512xf32, #tpu.memory_space<vmem>>, vector<1x512xf32>
    %36 = arith.addf %35, %2 : vector<1x512xf32>
    %c24 = arith.constant 24 : index
    %c0_26 = arith.constant 0 : index
    %37 = vector.load %arg14[%c24, %c0_26] : memref<64x512xf32, #tpu.memory_space<vmem>>, vector<1x512xf32>
    tpu.vector_store %arg14[%c24, %c0_26], %36 {strides = array<i32>} : memref<64x512xf32, #tpu.memory_space<vmem>>, vector<1x512xf32>,
    %c0_27 = arith.constant 0 : index
    %c7 = arith.constant 7 : index
    %38 = memref.load %arg1[%c0_27, %c7] : memref<2x16xi32, #tpu.memory_space<smem>>
    %39 = arith.index_cast %38 : i32 to index
    %c0_28 = arith.constant 0 : index
    %40 = vector.load %arg2[%39, %c0_28] : memref<32x512xf32, #tpu.memory_space<vmem>>, vector<1x512xf32>
    %41 = arith.addf %40, %2 : vector<1x512xf32>
    %c25 = arith.constant 25 : index
    %c0_29 = arith.constant 0 : index
    %42 = vector.load %arg14[%c25, %c0_29] : memref<64x512xf32, #tpu.memory_space<vmem>>, vector<1x512xf32>
    tpu.vector_store %arg14[%c25, %c0_29], %41 {strides = array<i32>} : memref<64x512xf32, #tpu.memory_space<vmem>>, vector<1x512xf32>,
    %c0_30 = arith.constant 0 : index
    %c8_31 = arith.constant 8 : index
    %43 = memref.load %arg1[%c0_30, %c8_31] : memref<2x16xi32, #tpu.memory_space<smem>>
    %44 = arith.index_cast %43 : i32 to index
    %c0_32 = arith.constant 0 : index
    %45 = vector.load %arg2[%44, %c0_32] : memref<32x512xf32, #tpu.memory_space<vmem>>, vector<1x512xf32>
    %46 = arith.addf %45, %2 : vector<1x512xf32>
    %c32 = arith.constant 32 : index
    %c0_33 = arith.constant 0 : index
    %47 = vector.load %arg14[%c32, %c0_33] : memref<64x512xf32, #tpu.memory_space<vmem>>, vector<1x512xf32>
    tpu.vector_store %arg14[%c32, %c0_33], %46 {strides = array<i32>} : memref<64x512xf32, #tpu.memory_space<vmem>>, vector<1x512xf32>,
    %c0_34 = arith.constant 0 : index
    %c9_35 = arith.constant 9 : index
    %48 = memref.load %arg1[%c0_34, %c9_35] : memref<2x16xi32, #tpu.memory_space<smem>>
    %49 = arith.index_cast %48 : i32 to index
    %c0_36 = arith.constant 0 : index
    %50 = vector.load %arg2[%49, %c0_36] : memref<32x512xf32, #tpu.memory_space<vmem>>, vector<1x512xf32>
    %51 = arith.addf %50, %2 : vector<1x512xf32>
    %c33 = arith.constant 33 : index
    %c0_37 = arith.constant 0 : index
    %52 = vector.load %arg14[%c33, %c0_37] : memref<64x512xf32, #tpu.memory_space<vmem>>, vector<1x512xf32>
    tpu.vector_store %arg14[%c33, %c0_37], %51 {strides = array<i32>} : memref<64x512xf32, #tpu.memory_space<vmem>>, vector<1x512xf32>,
    %c0_38 = arith.constant 0 : index
    %c10 = arith.constant 10 : index
    %53 = memref.load %arg1[%c0_38, %c10] : memref<2x16xi32, #tpu.memory_space<smem>>
    %54 = arith.index_cast %53 : i32 to index
    %c0_39 = arith.constant 0 : index
    %55 = vector.load %arg2[%54, %c0_39] : memref<32x512xf32, #tpu.memory_space<vmem>>, vector<1x512xf32>
    %56 = arith.addf %55, %2 : vector<1x512xf32>
    %c40 = arith.constant 40 : index
    %c0_40 = arith.constant 0 : index
    %57 = vector.load %arg14[%c40, %c0_40] : memref<64x512xf32, #tpu.memory_space<vmem>>, vector<1x512xf32>
    tpu.vector_store %arg14[%c40, %c0_40], %56 {strides = array<i32>} : memref<64x512xf32, #tpu.memory_space<vmem>>, vector<1x512xf32>,
    %c0_41 = arith.constant 0 : index
    %c11 = arith.constant 11 : index
    %58 = memref.load %arg1[%c0_41, %c11] : memref<2x16xi32, #tpu.memory_space<smem>>
    %59 = arith.index_cast %58 : i32 to index
    %c0_42 = arith.constant 0 : index
    %60 = vector.load %arg2[%59, %c0_42] : memref<32x512xf32, #tpu.memory_space<vmem>>, vector<1x512xf32>
    %61 = arith.addf %60, %2 : vector<1x512xf32>
    %c41 = arith.constant 41 : index
    %c0_43 = arith.constant 0 : index
    %62 = vector.load %arg14[%c41, %c0_43] : memref<64x512xf32, #tpu.memory_space<vmem>>, vector<1x512xf32>
    tpu.vector_store %arg14[%c41, %c0_43], %61 {strides = array<i32>} : memref<64x512xf32, #tpu.memory_space<vmem>>, vector<1x512xf32>,
    %c0_44 = arith.constant 0 : index
    %c12 = arith.constant 12 : index
    %63 = memref.load %arg1[%c0_44, %c12] : memref<2x16xi32, #tpu.memory_space<smem>>
    %64 = arith.index_cast %63 : i32 to index
    %c0_45 = arith.constant 0 : index
    %65 = vector.load %arg2[%64, %c0_45] : memref<32x512xf32, #tpu.memory_space<vmem>>, vector<1x512xf32>
    %66 = arith.addf %65, %2 : vector<1x512xf32>
    %c48 = arith.constant 48 : index
    %c0_46 = arith.constant 0 : index
    %67 = vector.load %arg14[%c48, %c0_46] : memref<64x512xf32, #tpu.memory_space<vmem>>, vector<1x512xf32>
    tpu.vector_store %arg14[%c48, %c0_46], %66 {strides = array<i32>} : memref<64x512xf32, #tpu.memory_space<vmem>>, vector<1x512xf32>,
    %c0_47 = arith.constant 0 : index
    %c13 = arith.constant 13 : index
    %68 = memref.load %arg1[%c0_47, %c13] : memref<2x16xi32, #tpu.memory_space<smem>>
    %69 = arith.index_cast %68 : i32 to index
    %c0_48 = arith.constant 0 : index
    %70 = vector.load %arg2[%69, %c0_48] : memref<32x512xf32, #tpu.memory_space<vmem>>, vector<1x512xf32>
    %71 = arith.addf %70, %2 : vector<1x512xf32>
    %c49 = arith.constant 49 : index
    %c0_49 = arith.constant 0 : index
    %72 = vector.load %arg14[%c49, %c0_49] : memref<64x512xf32, #tpu.memory_space<vmem>>, vector<1x512xf32>
    tpu.vector_store %arg14[%c49, %c0_49], %71 {strides = array<i32>} : memref<64x512xf32, #tpu.memory_space<vmem>>, vector<1x512xf32>,
    %c0_50 = arith.constant 0 : index
    %c14 = arith.constant 14 : index
    %73 = memref.load %arg1[%c0_50, %c14] : memref<2x16xi32, #tpu.memory_space<smem>>
    %74 = arith.index_cast %73 : i32 to index
    %c0_51 = arith.constant 0 : index
    %75 = vector.load %arg2[%74, %c0_51] : memref<32x512xf32, #tpu.memory_space<vmem>>, vector<1x512xf32>
    %76 = arith.addf %75, %2 : vector<1x512xf32>
    %c56 = arith.constant 56 : index
    %c0_52 = arith.constant 0 : index
    %77 = vector.load %arg14[%c56, %c0_52] : memref<64x512xf32, #tpu.memory_space<vmem>>, vector<1x512xf32>
    tpu.vector_store %arg14[%c56, %c0_52], %76 {strides = array<i32>} : memref<64x512xf32, #tpu.memory_space<vmem>>, vector<1x512xf32>,
    %c0_53 = arith.constant 0 : index
    %c15 = arith.constant 15 : index
    %78 = memref.load %arg1[%c0_53, %c15] : memref<2x16xi32, #tpu.memory_space<smem>>
    %79 = arith.index_cast %78 : i32 to index
    %c0_54 = arith.constant 0 : index
    %80 = vector.load %arg2[%79, %c0_54] : memref<32x512xf32, #tpu.memory_space<vmem>>, vector<1x512xf32>
    %81 = arith.addf %80, %2 : vector<1x512xf32>
    %c57 = arith.constant 57 : index
    %c0_55 = arith.constant 0 : index
    %82 = vector.load %arg14[%c57, %c0_55] : memref<64x512xf32, #tpu.memory_space<vmem>>, vector<1x512xf32>
    tpu.vector_store %arg14[%c57, %c0_55], %81 {strides = array<i32>} : memref<64x512xf32, #tpu.memory_space<vmem>>, vector<1x512xf32>,
    %cst_56 = arith.constant 0.000000e+00 : f32
    %83 = vector.broadcast %cst_56 : f32 to vector<64x512xf32>
    %c0_57 = arith.constant 0 : index
    %c0_58 = arith.constant 0 : index
    %84 = vector.load %arg15[%c0_57, %c0_58] : memref<64x512xf32, #tpu.memory_space<vmem>>, vector<64x512xf32>
    tpu.vector_store %arg15[%c0_57, %c0_58], %83 {strides = array<i32>} : memref<64x512xf32, #tpu.memory_space<vmem>>, vector<64x512xf32>,
    %c0_59 = arith.constant 0 : index
    %c0_60 = arith.constant 0 : index
    %85 = vector.load %arg7[%c0_59, %c0_60] : memref<1x512xf32, #tpu.memory_space<vmem>>, vector<1x512xf32>
    %c1_61 = arith.constant 1 : index
    %c0_62 = arith.constant 0 : index
    %86 = memref.load %arg1[%c1_61, %c0_62] : memref<2x16xi32, #tpu.memory_space<smem>>
    %87 = arith.index_cast %86 : i32 to index
    %c0_63 = arith.constant 0 : index
    %88 = vector.load %arg5[%87, %c0_63] : memref<32x512xf32, #tpu.memory_space<vmem>>, vector<1x512xf32>
    %89 = arith.addf %88, %85 : vector<1x512xf32>
    %c0_64 = arith.constant 0 : index
    %c0_65 = arith.constant 0 : index
    %90 = vector.load %arg15[%c0_64, %c0_65] : memref<64x512xf32, #tpu.memory_space<vmem>>, vector<1x512xf32>
    tpu.vector_store %arg15[%c0_64, %c0_65], %89 {strides = array<i32>} : memref<64x512xf32, #tpu.memory_space<vmem>>, vector<1x512xf32>,
    %c1_66 = arith.constant 1 : index
    %c1_67 = arith.constant 1 : index
    %91 = memref.load %arg1[%c1_66, %c1_67] : memref<2x16xi32, #tpu.memory_space<smem>>
    %92 = arith.index_cast %91 : i32 to index
    %c0_68 = arith.constant 0 : index
    %93 = vector.load %arg5[%92, %c0_68] : memref<32x512xf32, #tpu.memory_space<vmem>>, vector<1x512xf32>
    %94 = arith.addf %93, %85 : vector<1x512xf32>
    %c1_69 = arith.constant 1 : index
    %c0_70 = arith.constant 0 : index
    %95 = vector.load %arg15[%c1_69, %c0_70] : memref<64x512xf32, #tpu.memory_space<vmem>>, vector<1x512xf32>
    tpu.vector_store %arg15[%c1_69, %c0_70], %94 {strides = array<i32>} : memref<64x512xf32, #tpu.memory_space<vmem>>, vector<1x512xf32>,
    %c1_71 = arith.constant 1 : index
    %c2_72 = arith.constant 2 : index
    %96 = memref.load %arg1[%c1_71, %c2_72] : memref<2x16xi32, #tpu.memory_space<smem>>
    %97 = arith.index_cast %96 : i32 to index
    %c0_73 = arith.constant 0 : index
    %98 = vector.load %arg5[%97, %c0_73] : memref<32x512xf32, #tpu.memory_space<vmem>>, vector<1x512xf32>
    %99 = arith.addf %98, %85 : vector<1x512xf32>
    %c8_74 = arith.constant 8 : index
    %c0_75 = arith.constant 0 : index
    %100 = vector.load %arg15[%c8_74, %c0_75] : memref<64x512xf32, #tpu.memory_space<vmem>>, vector<1x512xf32>
    tpu.vector_store %arg15[%c8_74, %c0_75], %99 {strides = array<i32>} : memref<64x512xf32, #tpu.memory_space<vmem>>, vector<1x512xf32>,
    %c1_76 = arith.constant 1 : index
    %c3_77 = arith.constant 3 : index
    %101 = memref.load %arg1[%c1_76, %c3_77] : memref<2x16xi32, #tpu.memory_space<smem>>
    %102 = arith.index_cast %101 : i32 to index
    %c0_78 = arith.constant 0 : index
    %103 = vector.load %arg5[%102, %c0_78] : memref<32x512xf32, #tpu.memory_space<vmem>>, vector<1x512xf32>
    %104 = arith.addf %103, %85 : vector<1x512xf32>
    %c9_79 = arith.constant 9 : index
    %c0_80 = arith.constant 0 : index
    %105 = vector.load %arg15[%c9_79, %c0_80] : memref<64x512xf32, #tpu.memory_space<vmem>>, vector<1x512xf32>
    tpu.vector_store %arg15[%c9_79, %c0_80], %104 {strides = array<i32>} : memref<64x512xf32, #tpu.memory_space<vmem>>, vector<1x512xf32>,
    %c1_81 = arith.constant 1 : index
    %c4_82 = arith.constant 4 : index
    %106 = memref.load %arg1[%c1_81, %c4_82] : memref<2x16xi32, #tpu.memory_space<smem>>
    %107 = arith.index_cast %106 : i32 to index
    %c0_83 = arith.constant 0 : index
    %108 = vector.load %arg5[%107, %c0_83] : memref<32x512xf32, #tpu.memory_space<vmem>>, vector<1x512xf32>
    %109 = arith.addf %108, %85 : vector<1x512xf32>
    %c16_84 = arith.constant 16 : index
    %c0_85 = arith.constant 0 : index
    %110 = vector.load %arg15[%c16_84, %c0_85] : memref<64x512xf32, #tpu.memory_space<vmem>>, vector<1x512xf32>
    tpu.vector_store %arg15[%c16_84, %c0_85], %109 {strides = array<i32>} : memref<64x512xf32, #tpu.memory_space<vmem>>, vector<1x512xf32>,
    %c1_86 = arith.constant 1 : index
    %c5_87 = arith.constant 5 : index
    %111 = memref.load %arg1[%c1_86, %c5_87] : memref<2x16xi32, #tpu.memory_space<smem>>
    %112 = arith.index_cast %111 : i32 to index
    %c0_88 = arith.constant 0 : index
    %113 = vector.load %arg5[%112, %c0_88] : memref<32x512xf32, #tpu.memory_space<vmem>>, vector<1x512xf32>
    %114 = arith.addf %113, %85 : vector<1x512xf32>
    %c17_89 = arith.constant 17 : index
    %c0_90 = arith.constant 0 : index
    %115 = vector.load %arg15[%c17_89, %c0_90] : memref<64x512xf32, #tpu.memory_space<vmem>>, vector<1x512xf32>
    tpu.vector_store %arg15[%c17_89, %c0_90], %114 {strides = array<i32>} : memref<64x512xf32, #tpu.memory_space<vmem>>, vector<1x512xf32>,
    %c1_91 = arith.constant 1 : index
    %c6_92 = arith.constant 6 : index
    %116 = memref.load %arg1[%c1_91, %c6_92] : memref<2x16xi32, #tpu.memory_space<smem>>
    %117 = arith.index_cast %116 : i32 to index
    %c0_93 = arith.constant 0 : index
    %118 = vector.load %arg5[%117, %c0_93] : memref<32x512xf32, #tpu.memory_space<vmem>>, vector<1x512xf32>
    %119 = arith.addf %118, %85 : vector<1x512xf32>
    %c24_94 = arith.constant 24 : index
    %c0_95 = arith.constant 0 : index
    %120 = vector.load %arg15[%c24_94, %c0_95] : memref<64x512xf32, #tpu.memory_space<vmem>>, vector<1x512xf32>
    tpu.vector_store %arg15[%c24_94, %c0_95], %119 {strides = array<i32>} : memref<64x512xf32, #tpu.memory_space<vmem>>, vector<1x512xf32>,
    %c1_96 = arith.constant 1 : index
    %c7_97 = arith.constant 7 : index
    %121 = memref.load %arg1[%c1_96, %c7_97] : memref<2x16xi32, #tpu.memory_space<smem>>
    %122 = arith.index_cast %121 : i32 to index
    %c0_98 = arith.constant 0 : index
    %123 = vector.load %arg5[%122, %c0_98] : memref<32x512xf32, #tpu.memory_space<vmem>>, vector<1x512xf32>
    %124 = arith.addf %123, %85 : vector<1x512xf32>
    %c25_99 = arith.constant 25 : index
    %c0_100 = arith.constant 0 : index
    %125 = vector.load %arg15[%c25_99, %c0_100] : memref<64x512xf32, #tpu.memory_space<vmem>>, vector<1x512xf32>
    tpu.vector_store %arg15[%c25_99, %c0_100], %124 {strides = array<i32>} : memref<64x512xf32, #tpu.memory_space<vmem>>, vector<1x512xf32>,
    %c1_101 = arith.constant 1 : index
    %c8_102 = arith.constant 8 : index
    %126 = memref.load %arg1[%c1_101, %c8_102] : memref<2x16xi32, #tpu.memory_space<smem>>
    %127 = arith.index_cast %126 : i32 to index
    %c0_103 = arith.constant 0 : index
    %128 = vector.load %arg5[%127, %c0_103] : memref<32x512xf32, #tpu.memory_space<vmem>>, vector<1x512xf32>
    %129 = arith.addf %128, %85 : vector<1x512xf32>
    %c32_104 = arith.constant 32 : index
    %c0_105 = arith.constant 0 : index
    %130 = vector.load %arg15[%c32_104, %c0_105] : memref<64x512xf32, #tpu.memory_space<vmem>>, vector<1x512xf32>
    tpu.vector_store %arg15[%c32_104, %c0_105], %129 {strides = array<i32>} : memref<64x512xf32, #tpu.memory_space<vmem>>, vector<1x512xf32>,
    %c1_106 = arith.constant 1 : index
    %c9_107 = arith.constant 9 : index
    %131 = memref.load %arg1[%c1_106, %c9_107] : memref<2x16xi32, #tpu.memory_space<smem>>
    %132 = arith.index_cast %131 : i32 to index
    %c0_108 = arith.constant 0 : index
    %133 = vector.load %arg5[%132, %c0_108] : memref<32x512xf32, #tpu.memory_space<vmem>>, vector<1x512xf32>
    %134 = arith.addf %133, %85 : vector<1x512xf32>
    %c33_109 = arith.constant 33 : index
    %c0_110 = arith.constant 0 : index
    %135 = vector.load %arg15[%c33_109, %c0_110] : memref<64x512xf32, #tpu.memory_space<vmem>>, vector<1x512xf32>
    tpu.vector_store %arg15[%c33_109, %c0_110], %134 {strides = array<i32>} : memref<64x512xf32, #tpu.memory_space<vmem>>, vector<1x512xf32>,
    %c1_111 = arith.constant 1 : index
    %c10_112 = arith.constant 10 : index
    %136 = memref.load %arg1[%c1_111, %c10_112] : memref<2x16xi32, #tpu.memory_space<smem>>
    %137 = arith.index_cast %136 : i32 to index
    %c0_113 = arith.constant 0 : index
    %138 = vector.load %arg5[%137, %c0_113] : memref<32x512xf32, #tpu.memory_space<vmem>>, vector<1x512xf32>
    %139 = arith.addf %138, %85 : vector<1x512xf32>
    %c40_114 = arith.constant 40 : index
    %c0_115 = arith.constant 0 : index
    %140 = vector.load %arg15[%c40_114, %c0_115] : memref<64x512xf32, #tpu.memory_space<vmem>>, vector<1x512xf32>
    tpu.vector_store %arg15[%c40_114, %c0_115], %139 {strides = array<i32>} : memref<64x512xf32, #tpu.memory_space<vmem>>, vector<1x512xf32>,
    %c1_116 = arith.constant 1 : index
    %c11_117 = arith.constant 11 : index
    %141 = memref.load %arg1[%c1_116, %c11_117] : memref<2x16xi32, #tpu.memory_space<smem>>
    %142 = arith.index_cast %141 : i32 to index
    %c0_118 = arith.constant 0 : index
    %143 = vector.load %arg5[%142, %c0_118] : memref<32x512xf32, #tpu.memory_space<vmem>>, vector<1x512xf32>
    %144 = arith.addf %143, %85 : vector<1x512xf32>
    %c41_119 = arith.constant 41 : index
    %c0_120 = arith.constant 0 : index
    %145 = vector.load %arg15[%c41_119, %c0_120] : memref<64x512xf32, #tpu.memory_space<vmem>>, vector<1x512xf32>
    tpu.vector_store %arg15[%c41_119, %c0_120], %144 {strides = array<i32>} : memref<64x512xf32, #tpu.memory_space<vmem>>, vector<1x512xf32>,
    %c1_121 = arith.constant 1 : index
    %c12_122 = arith.constant 12 : index
    %146 = memref.load %arg1[%c1_121, %c12_122] : memref<2x16xi32, #tpu.memory_space<smem>>
    %147 = arith.index_cast %146 : i32 to index
    %c0_123 = arith.constant 0 : index
    %148 = vector.load %arg5[%147, %c0_123] : memref<32x512xf32, #tpu.memory_space<vmem>>, vector<1x512xf32>
    %149 = arith.addf %148, %85 : vector<1x512xf32>
    %c48_124 = arith.constant 48 : index
    %c0_125 = arith.constant 0 : index
    %150 = vector.load %arg15[%c48_124, %c0_125] : memref<64x512xf32, #tpu.memory_space<vmem>>, vector<1x512xf32>
    tpu.vector_store %arg15[%c48_124, %c0_125], %149 {strides = array<i32>} : memref<64x512xf32, #tpu.memory_space<vmem>>, vector<1x512xf32>,
    %c1_126 = arith.constant 1 : index
    %c13_127 = arith.constant 13 : index
    %151 = memref.load %arg1[%c1_126, %c13_127] : memref<2x16xi32, #tpu.memory_space<smem>>
    %152 = arith.index_cast %151 : i32 to index
    %c0_128 = arith.constant 0 : index
    %153 = vector.load %arg5[%152, %c0_128] : memref<32x512xf32, #tpu.memory_space<vmem>>, vector<1x512xf32>
    %154 = arith.addf %153, %85 : vector<1x512xf32>
    %c49_129 = arith.constant 49 : index
    %c0_130 = arith.constant 0 : index
    %155 = vector.load %arg15[%c49_129, %c0_130] : memref<64x512xf32, #tpu.memory_space<vmem>>, vector<1x512xf32>
    tpu.vector_store %arg15[%c49_129, %c0_130], %154 {strides = array<i32>} : memref<64x512xf32, #tpu.memory_space<vmem>>, vector<1x512xf32>,
    %c1_131 = arith.constant 1 : index
    %c14_132 = arith.constant 14 : index
    %156 = memref.load %arg1[%c1_131, %c14_132] : memref<2x16xi32, #tpu.memory_space<smem>>
    %157 = arith.index_cast %156 : i32 to index
    %c0_133 = arith.constant 0 : index
    %158 = vector.load %arg5[%157, %c0_133] : memref<32x512xf32, #tpu.memory_space<vmem>>, vector<1x512xf32>
    %159 = arith.addf %158, %85 : vector<1x512xf32>
    %c56_134 = arith.constant 56 : index
    %c0_135 = arith.constant 0 : index
    %160 = vector.load %arg15[%c56_134, %c0_135] : memref<64x512xf32, #tpu.memory_space<vmem>>, vector<1x512xf32>
    tpu.vector_store %arg15[%c56_134, %c0_135], %159 {strides = array<i32>} : memref<64x512xf32, #tpu.memory_space<vmem>>, vector<1x512xf32>,
    %c1_136 = arith.constant 1 : index
    %c15_137 = arith.constant 15 : index
    %161 = memref.load %arg1[%c1_136, %c15_137] : memref<2x16xi32, #tpu.memory_space<smem>>
    %162 = arith.index_cast %161 : i32 to index
    %c0_138 = arith.constant 0 : index
    %163 = vector.load %arg5[%162, %c0_138] : memref<32x512xf32, #tpu.memory_space<vmem>>, vector<1x512xf32>
    %164 = arith.addf %163, %85 : vector<1x512xf32>
    %c57_139 = arith.constant 57 : index
    %c0_140 = arith.constant 0 : index
    %165 = vector.load %arg15[%c57_139, %c0_140] : memref<64x512xf32, #tpu.memory_space<vmem>>, vector<1x512xf32>
    tpu.vector_store %arg15[%c57_139, %c0_140], %164 {strides = array<i32>} : memref<64x512xf32, #tpu.memory_space<vmem>>, vector<1x512xf32>,
    %cst_141 = arith.constant 0.000000e+00 : f32
    %166 = vector.broadcast %cst_141 : f32 to vector<8x128xf32>
    %c0_142 = arith.constant 0 : index
    %c0_143 = arith.constant 0 : index
    %167 = vector.load %arg14[%c0_142, %c0_143] : memref<64x512xf32, #tpu.memory_space<vmem>>, vector<8x512xf32>
    %168 = arith.truncf %166 : vector<8x128xf32> to vector<8x128xbf16>
    %c0_144 = arith.constant 0 : index
    %c0_145 = arith.constant 0 : index
    %169 = vector.load %arg3[%c0_144, %c0_145] : memref<128x512xbf16, #tpu.memory_space<vmem>>, vector<128x512xbf16>
    %cst_146 = arith.constant dense<0.000000e+00> : vector<8x512xf32>
    %170 = tpu.matmul %168, %169, %cst_146 {dimension_numbers = #tpu.dot_dimension_numbers<[1], [0], [0], [1], [0, 0, 1, 1], [], []>} : vector<8x128xbf16>, vector<128x512xbf16>, vector<8x512xf32> -> vector<8x512xf32>
    %171 = arith.addf %167, %170 : vector<8x512xf32>
    %172 = vector.extract_strided_slice %171 {offsets = [0, 0], sizes = [8, 128], strides = [1, 1]} : vector<8x512xf32> to vector<8x128xf32>
    %173 = arith.negf %172 : vector<8x128xf32>
    %174 = math.exp %173 : vector<8x128xf32>
    %cst_147 = arith.constant 1.000000e+00 : f32
    %175 = vector.broadcast %cst_147 : f32 to vector<8x128xf32>
    %176 = arith.addf %175, %174 : vector<8x128xf32>
    %177 = arith.divf %175, %176 : vector<8x128xf32>
    %178 = vector.extract_strided_slice %171 {offsets = [0, 128], sizes = [8, 128], strides = [1, 1]} : vector<8x512xf32> to vector<8x128xf32>
    %179 = arith.negf %178 : vector<8x128xf32>
    %180 = math.exp %179 : vector<8x128xf32>
    %cst_148 = arith.constant 1.000000e+00 : f32
    %181 = vector.broadcast %cst_148 : f32 to vector<8x128xf32>
    %182 = arith.addf %181, %180 : vector<8x128xf32>
    %183 = arith.divf %181, %182 : vector<8x128xf32>
    %184 = vector.extract_strided_slice %171 {offsets = [0, 256], sizes = [8, 128], strides = [1, 1]} : vector<8x512xf32> to vector<8x128xf32>
    %185 = math.tanh %184 : vector<8x128xf32>
    %186 = vector.extract_strided_slice %171 {offsets = [0, 384], sizes = [8, 128], strides = [1, 1]} : vector<8x512xf32> to vector<8x128xf32>
    %187 = arith.negf %186 : vector<8x128xf32>
    %188 = math.exp %187 : vector<8x128xf32>
    %cst_149 = arith.constant 1.000000e+00 : f32
    %189 = vector.broadcast %cst_149 : f32 to vector<8x128xf32>
    %190 = arith.addf %189, %188 : vector<8x128xf32>
    %191 = arith.divf %189, %190 : vector<8x128xf32>
    %192 = arith.mulf %183, %166 : vector<8x128xf32>
    %193 = arith.mulf %177, %185 : vector<8x128xf32>
    %194 = arith.addf %192, %193 : vector<8x128xf32>
    %195 = math.tanh %194 : vector<8x128xf32>
    %196 = arith.mulf %191, %195 : vector<8x128xf32>
    %c0_150 = arith.constant 0 : index
    %c0_151 = arith.constant 0 : index
    %197 = vector.load %arg15[%c0_150, %c0_151] : memref<64x512xf32, #tpu.memory_space<vmem>>, vector<8x512xf32>
    %198 = arith.truncf %166 : vector<8x128xf32> to vector<8x128xbf16>
    %c0_152 = arith.constant 0 : index
    %c0_153 = arith.constant 0 : index
    %199 = vector.load %arg6[%c0_152, %c0_153] : memref<128x512xbf16, #tpu.memory_space<vmem>>, vector<128x512xbf16>
    %cst_154 = arith.constant dense<0.000000e+00> : vector<8x512xf32>
    %200 = tpu.matmul %198, %199, %cst_154 {dimension_numbers = #tpu.dot_dimension_numbers<[1], [0], [0], [1], [0, 0, 1, 1], [], []>} : vector<8x128xbf16>, vector<128x512xbf16>, vector<8x512xf32> -> vector<8x512xf32>
    %201 = arith.addf %197, %200 : vector<8x512xf32>
    %202 = vector.extract_strided_slice %201 {offsets = [0, 0], sizes = [8, 128], strides = [1, 1]} : vector<8x512xf32> to vector<8x128xf32>
    %203 = arith.negf %202 : vector<8x128xf32>
    %204 = math.exp %203 : vector<8x128xf32>
    %cst_155 = arith.constant 1.000000e+00 : f32
    %205 = vector.broadcast %cst_155 : f32 to vector<8x128xf32>
    %206 = arith.addf %205, %204 : vector<8x128xf32>
    %207 = arith.divf %205, %206 : vector<8x128xf32>
    %208 = vector.extract_strided_slice %201 {offsets = [0, 128], sizes = [8, 128], strides = [1, 1]} : vector<8x512xf32> to vector<8x128xf32>
    %209 = arith.negf %208 : vector<8x128xf32>
    %210 = math.exp %209 : vector<8x128xf32>
    %cst_156 = arith.constant 1.000000e+00 : f32
    %211 = vector.broadcast %cst_156 : f32 to vector<8x128xf32>
    %212 = arith.addf %211, %210 : vector<8x128xf32>
    %213 = arith.divf %211, %212 : vector<8x128xf32>
    %214 = vector.extract_strided_slice %201 {offsets = [0, 256], sizes = [8, 128], strides = [1, 1]} : vector<8x512xf32> to vector<8x128xf32>
    %215 = math.tanh %214 : vector<8x128xf32>
    %216 = vector.extract_strided_slice %201 {offsets = [0, 384], sizes = [8, 128], strides = [1, 1]} : vector<8x512xf32> to vector<8x128xf32>
    %217 = arith.negf %216 : vector<8x128xf32>
    %218 = math.exp %217 : vector<8x128xf32>
    %cst_157 = arith.constant 1.000000e+00 : f32
    %219 = vector.broadcast %cst_157 : f32 to vector<8x128xf32>
    %220 = arith.addf %219, %218 : vector<8x128xf32>
    %221 = arith.divf %219, %220 : vector<8x128xf32>
    %222 = arith.mulf %213, %166 : vector<8x128xf32>
    %223 = arith.mulf %207, %215 : vector<8x128xf32>
    %224 = arith.addf %222, %223 : vector<8x128xf32>
    %225 = math.tanh %224 : vector<8x128xf32>
    %226 = arith.mulf %221, %225 : vector<8x128xf32>
    %c0_158 = arith.constant 0 : index
    %c0_159 = arith.constant 0 : index
    %227 = vector.load %arg8[%c0_158, %c0_159] : memref<64x128xf32, #tpu.memory_space<vmem>>, vector<8x128xf32>
    tpu.vector_store %arg8[%c0_158, %c0_159], %196 {strides = array<i32>} : memref<64x128xf32, #tpu.memory_space<vmem>>, vector<8x128xf32>,
    %c0_160 = arith.constant 0 : index
    %c0_161 = arith.constant 0 : index
    %228 = vector.load %arg11[%c0_160, %c0_161] : memref<64x128xf32, #tpu.memory_space<vmem>>, vector<8x128xf32>
    tpu.vector_store %arg11[%c0_160, %c0_161], %226 {strides = array<i32>} : memref<64x128xf32, #tpu.memory_space<vmem>>, vector<8x128xf32>,
    %c8_162 = arith.constant 8 : index
    %c0_163 = arith.constant 0 : index
    %229 = vector.load %arg14[%c8_162, %c0_163] : memref<64x512xf32, #tpu.memory_space<vmem>>, vector<8x512xf32>
    %230 = arith.truncf %196 : vector<8x128xf32> to vector<8x128xbf16>
    %c0_164 = arith.constant 0 : index
    %c0_165 = arith.constant 0 : index
    %231 = vector.load %arg3[%c0_164, %c0_165] : memref<128x512xbf16, #tpu.memory_space<vmem>>, vector<128x512xbf16>
    %cst_166 = arith.constant dense<0.000000e+00> : vector<8x512xf32>
    %232 = tpu.matmul %230, %231, %cst_166 {dimension_numbers = #tpu.dot_dimension_numbers<[1], [0], [0], [1], [0, 0, 1, 1], [], []>} : vector<8x128xbf16>, vector<128x512xbf16>, vector<8x512xf32> -> vector<8x512xf32>
    %233 = arith.addf %229, %232 : vector<8x512xf32>
    %234 = vector.extract_strided_slice %233 {offsets = [0, 0], sizes = [8, 128], strides = [1, 1]} : vector<8x512xf32> to vector<8x128xf32>
    %235 = arith.negf %234 : vector<8x128xf32>
    %236 = math.exp %235 : vector<8x128xf32>
    %cst_167 = arith.constant 1.000000e+00 : f32
    %237 = vector.broadcast %cst_167 : f32 to vector<8x128xf32>
    %238 = arith.addf %237, %236 : vector<8x128xf32>
    %239 = arith.divf %237, %238 : vector<8x128xf32>
    %240 = vector.extract_strided_slice %233 {offsets = [0, 128], sizes = [8, 128], strides = [1, 1]} : vector<8x512xf32> to vector<8x128xf32>
    %241 = arith.negf %240 : vector<8x128xf32>
    %242 = math.exp %241 : vector<8x128xf32>
    %cst_168 = arith.constant 1.000000e+00 : f32
    %243 = vector.broadcast %cst_168 : f32 to vector<8x128xf32>
    %244 = arith.addf %243, %242 : vector<8x128xf32>
    %245 = arith.divf %243, %244 : vector<8x128xf32>
    %246 = vector.extract_strided_slice %233 {offsets = [0, 256], sizes = [8, 128], strides = [1, 1]} : vector<8x512xf32> to vector<8x128xf32>
    %247 = math.tanh %246 : vector<8x128xf32>
    %248 = vector.extract_strided_slice %233 {offsets = [0, 384], sizes = [8, 128], strides = [1, 1]} : vector<8x512xf32> to vector<8x128xf32>
    %249 = arith.negf %248 : vector<8x128xf32>
    %250 = math.exp %249 : vector<8x128xf32>
    %cst_169 = arith.constant 1.000000e+00 : f32
    %251 = vector.broadcast %cst_169 : f32 to vector<8x128xf32>
    %252 = arith.addf %251, %250 : vector<8x128xf32>
    %253 = arith.divf %251, %252 : vector<8x128xf32>
    %254 = arith.mulf %245, %194 : vector<8x128xf32>
    %255 = arith.mulf %239, %247 : vector<8x128xf32>
    %256 = arith.addf %254, %255 : vector<8x128xf32>
    %257 = math.tanh %256 : vector<8x128xf32>
    %258 = arith.mulf %253, %257 : vector<8x128xf32>
    %c8_170 = arith.constant 8 : index
    %c0_171 = arith.constant 0 : index
    %259 = vector.load %arg15[%c8_170, %c0_171] : memref<64x512xf32, #tpu.memory_space<vmem>>, vector<8x512xf32>
    %260 = arith.truncf %226 : vector<8x128xf32> to vector<8x128xbf16>
    %c0_172 = arith.constant 0 : index
    %c0_173 = arith.constant 0 : index
    %261 = vector.load %arg6[%c0_172, %c0_173] : memref<128x512xbf16, #tpu.memory_space<vmem>>, vector<128x512xbf16>
    %cst_174 = arith.constant dense<0.000000e+00> : vector<8x512xf32>
    %262 = tpu.matmul %260, %261, %cst_174 {dimension_numbers = #tpu.dot_dimension_numbers<[1], [0], [0], [1], [0, 0, 1, 1], [], []>} : vector<8x128xbf16>, vector<128x512xbf16>, vector<8x512xf32> -> vector<8x512xf32>
    %263 = arith.addf %259, %262 : vector<8x512xf32>
    %264 = vector.extract_strided_slice %263 {offsets = [0, 0], sizes = [8, 128], strides = [1, 1]} : vector<8x512xf32> to vector<8x128xf32>
    %265 = arith.negf %264 : vector<8x128xf32>
    %266 = math.exp %265 : vector<8x128xf32>
    %cst_175 = arith.constant 1.000000e+00 : f32
    %267 = vector.broadcast %cst_175 : f32 to vector<8x128xf32>
    %268 = arith.addf %267, %266 : vector<8x128xf32>
    %269 = arith.divf %267, %268 : vector<8x128xf32>
    %270 = vector.extract_strided_slice %263 {offsets = [0, 128], sizes = [8, 128], strides = [1, 1]} : vector<8x512xf32> to vector<8x128xf32>
    %271 = arith.negf %270 : vector<8x128xf32>
    %272 = math.exp %271 : vector<8x128xf32>
    %cst_176 = arith.constant 1.000000e+00 : f32
    %273 = vector.broadcast %cst_176 : f32 to vector<8x128xf32>
    %274 = arith.addf %273, %272 : vector<8x128xf32>
    %275 = arith.divf %273, %274 : vector<8x128xf32>
    %276 = vector.extract_strided_slice %263 {offsets = [0, 256], sizes = [8, 128], strides = [1, 1]} : vector<8x512xf32> to vector<8x128xf32>
    %277 = math.tanh %276 : vector<8x128xf32>
    %278 = vector.extract_strided_slice %263 {offsets = [0, 384], sizes = [8, 128], strides = [1, 1]} : vector<8x512xf32> to vector<8x128xf32>
    %279 = arith.negf %278 : vector<8x128xf32>
    %280 = math.exp %279 : vector<8x128xf32>
    %cst_177 = arith.constant 1.000000e+00 : f32
    %281 = vector.broadcast %cst_177 : f32 to vector<8x128xf32>
    %282 = arith.addf %281, %280 : vector<8x128xf32>
    %283 = arith.divf %281, %282 : vector<8x128xf32>
    %284 = arith.mulf %275, %224 : vector<8x128xf32>
    %285 = arith.mulf %269, %277 : vector<8x128xf32>
    %286 = arith.addf %284, %285 : vector<8x128xf32>
    %287 = math.tanh %286 : vector<8x128xf32>
    %288 = arith.mulf %283, %287 : vector<8x128xf32>
    %c8_178 = arith.constant 8 : index
    %c0_179 = arith.constant 0 : index
    %289 = vector.load %arg8[%c8_178, %c0_179] : memref<64x128xf32, #tpu.memory_space<vmem>>, vector<8x128xf32>
    tpu.vector_store %arg8[%c8_178, %c0_179], %258 {strides = array<i32>} : memref<64x128xf32, #tpu.memory_space<vmem>>, vector<8x128xf32>,
    %c8_180 = arith.constant 8 : index
    %c0_181 = arith.constant 0 : index
    %290 = vector.load %arg11[%c8_180, %c0_181] : memref<64x128xf32, #tpu.memory_space<vmem>>, vector<8x128xf32>
    tpu.vector_store %arg11[%c8_180, %c0_181], %288 {strides = array<i32>} : memref<64x128xf32, #tpu.memory_space<vmem>>, vector<8x128xf32>,
    %c16_182 = arith.constant 16 : index
    %c0_183 = arith.constant 0 : index
    %291 = vector.load %arg14[%c16_182, %c0_183] : memref<64x512xf32, #tpu.memory_space<vmem>>, vector<8x512xf32>
    %292 = arith.truncf %258 : vector<8x128xf32> to vector<8x128xbf16>
    %c0_184 = arith.constant 0 : index
    %c0_185 = arith.constant 0 : index
    %293 = vector.load %arg3[%c0_184, %c0_185] : memref<128x512xbf16, #tpu.memory_space<vmem>>, vector<128x512xbf16>
    %cst_186 = arith.constant dense<0.000000e+00> : vector<8x512xf32>
    %294 = tpu.matmul %292, %293, %cst_186 {dimension_numbers = #tpu.dot_dimension_numbers<[1], [0], [0], [1], [0, 0, 1, 1], [], []>} : vector<8x128xbf16>, vector<128x512xbf16>, vector<8x512xf32> -> vector<8x512xf32>
    %295 = arith.addf %291, %294 : vector<8x512xf32>
    %296 = vector.extract_strided_slice %295 {offsets = [0, 0], sizes = [8, 128], strides = [1, 1]} : vector<8x512xf32> to vector<8x128xf32>
    %297 = arith.negf %296 : vector<8x128xf32>
    %298 = math.exp %297 : vector<8x128xf32>
    %cst_187 = arith.constant 1.000000e+00 : f32
    %299 = vector.broadcast %cst_187 : f32 to vector<8x128xf32>
    %300 = arith.addf %299, %298 : vector<8x128xf32>
    %301 = arith.divf %299, %300 : vector<8x128xf32>
    %302 = vector.extract_strided_slice %295 {offsets = [0, 128], sizes = [8, 128], strides = [1, 1]} : vector<8x512xf32> to vector<8x128xf32>
    %303 = arith.negf %302 : vector<8x128xf32>
    %304 = math.exp %303 : vector<8x128xf32>
    %cst_188 = arith.constant 1.000000e+00 : f32
    %305 = vector.broadcast %cst_188 : f32 to vector<8x128xf32>
    %306 = arith.addf %305, %304 : vector<8x128xf32>
    %307 = arith.divf %305, %306 : vector<8x128xf32>
    %308 = vector.extract_strided_slice %295 {offsets = [0, 256], sizes = [8, 128], strides = [1, 1]} : vector<8x512xf32> to vector<8x128xf32>
    %309 = math.tanh %308 : vector<8x128xf32>
    %310 = vector.extract_strided_slice %295 {offsets = [0, 384], sizes = [8, 128], strides = [1, 1]} : vector<8x512xf32> to vector<8x128xf32>
    %311 = arith.negf %310 : vector<8x128xf32>
    %312 = math.exp %311 : vector<8x128xf32>
    %cst_189 = arith.constant 1.000000e+00 : f32
    %313 = vector.broadcast %cst_189 : f32 to vector<8x128xf32>
    %314 = arith.addf %313, %312 : vector<8x128xf32>
    %315 = arith.divf %313, %314 : vector<8x128xf32>
    %316 = arith.mulf %307, %256 : vector<8x128xf32>
    %317 = arith.mulf %301, %309 : vector<8x128xf32>
    %318 = arith.addf %316, %317 : vector<8x128xf32>
    %319 = math.tanh %318 : vector<8x128xf32>
    %320 = arith.mulf %315, %319 : vector<8x128xf32>
    %c16_190 = arith.constant 16 : index
    %c0_191 = arith.constant 0 : index
    %321 = vector.load %arg15[%c16_190, %c0_191] : memref<64x512xf32, #tpu.memory_space<vmem>>, vector<8x512xf32>
    %322 = arith.truncf %288 : vector<8x128xf32> to vector<8x128xbf16>
    %c0_192 = arith.constant 0 : index
    %c0_193 = arith.constant 0 : index
    %323 = vector.load %arg6[%c0_192, %c0_193] : memref<128x512xbf16, #tpu.memory_space<vmem>>, vector<128x512xbf16>
    %cst_194 = arith.constant dense<0.000000e+00> : vector<8x512xf32>
    %324 = tpu.matmul %322, %323, %cst_194 {dimension_numbers = #tpu.dot_dimension_numbers<[1], [0], [0], [1], [0, 0, 1, 1], [], []>} : vector<8x128xbf16>, vector<128x512xbf16>, vector<8x512xf32> -> vector<8x512xf32>
    %325 = arith.addf %321, %324 : vector<8x512xf32>
    %326 = vector.extract_strided_slice %325 {offsets = [0, 0], sizes = [8, 128], strides = [1, 1]} : vector<8x512xf32> to vector<8x128xf32>
    %327 = arith.negf %326 : vector<8x128xf32>
    %328 = math.exp %327 : vector<8x128xf32>
    %cst_195 = arith.constant 1.000000e+00 : f32
    %329 = vector.broadcast %cst_195 : f32 to vector<8x128xf32>
    %330 = arith.addf %329, %328 : vector<8x128xf32>
    %331 = arith.divf %329, %330 : vector<8x128xf32>
    %332 = vector.extract_strided_slice %325 {offsets = [0, 128], sizes = [8, 128], strides = [1, 1]} : vector<8x512xf32> to vector<8x128xf32>
    %333 = arith.negf %332 : vector<8x128xf32>
    %334 = math.exp %333 : vector<8x128xf32>
    %cst_196 = arith.constant 1.000000e+00 : f32
    %335 = vector.broadcast %cst_196 : f32 to vector<8x128xf32>
    %336 = arith.addf %335, %334 : vector<8x128xf32>
    %337 = arith.divf %335, %336 : vector<8x128xf32>
    %338 = vector.extract_strided_slice %325 {offsets = [0, 256], sizes = [8, 128], strides = [1, 1]} : vector<8x512xf32> to vector<8x128xf32>
    %339 = math.tanh %338 : vector<8x128xf32>
    %340 = vector.extract_strided_slice %325 {offsets = [0, 384], sizes = [8, 128], strides = [1, 1]} : vector<8x512xf32> to vector<8x128xf32>
    %341 = arith.negf %340 : vector<8x128xf32>
    %342 = math.exp %341 : vector<8x128xf32>
    %cst_197 = arith.constant 1.000000e+00 : f32
    %343 = vector.broadcast %cst_197 : f32 to vector<8x128xf32>
    %344 = arith.addf %343, %342 : vector<8x128xf32>
    %345 = arith.divf %343, %344 : vector<8x128xf32>
    %346 = arith.mulf %337, %286 : vector<8x128xf32>
    %347 = arith.mulf %331, %339 : vector<8x128xf32>
    %348 = arith.addf %346, %347 : vector<8x128xf32>
    %349 = math.tanh %348 : vector<8x128xf32>
    %350 = arith.mulf %345, %349 : vector<8x128xf32>
    %c16_198 = arith.constant 16 : index
    %c0_199 = arith.constant 0 : index
    %351 = vector.load %arg8[%c16_198, %c0_199] : memref<64x128xf32, #tpu.memory_space<vmem>>, vector<8x128xf32>
    tpu.vector_store %arg8[%c16_198, %c0_199], %320 {strides = array<i32>} : memref<64x128xf32, #tpu.memory_space<vmem>>, vector<8x128xf32>,
    %c16_200 = arith.constant 16 : index
    %c0_201 = arith.constant 0 : index
    %352 = vector.load %arg11[%c16_200, %c0_201] : memref<64x128xf32, #tpu.memory_space<vmem>>, vector<8x128xf32>
    tpu.vector_store %arg11[%c16_200, %c0_201], %350 {strides = array<i32>} : memref<64x128xf32, #tpu.memory_space<vmem>>, vector<8x128xf32>,
    %c24_202 = arith.constant 24 : index
    %c0_203 = arith.constant 0 : index
    %353 = vector.load %arg14[%c24_202, %c0_203] : memref<64x512xf32, #tpu.memory_space<vmem>>, vector<8x512xf32>
    %354 = arith.truncf %320 : vector<8x128xf32> to vector<8x128xbf16>
    %c0_204 = arith.constant 0 : index
    %c0_205 = arith.constant 0 : index
    %355 = vector.load %arg3[%c0_204, %c0_205] : memref<128x512xbf16, #tpu.memory_space<vmem>>, vector<128x512xbf16>
    %cst_206 = arith.constant dense<0.000000e+00> : vector<8x512xf32>
    %356 = tpu.matmul %354, %355, %cst_206 {dimension_numbers = #tpu.dot_dimension_numbers<[1], [0], [0], [1], [0, 0, 1, 1], [], []>} : vector<8x128xbf16>, vector<128x512xbf16>, vector<8x512xf32> -> vector<8x512xf32>
    %357 = arith.addf %353, %356 : vector<8x512xf32>
    %358 = vector.extract_strided_slice %357 {offsets = [0, 0], sizes = [8, 128], strides = [1, 1]} : vector<8x512xf32> to vector<8x128xf32>
    %359 = arith.negf %358 : vector<8x128xf32>
    %360 = math.exp %359 : vector<8x128xf32>
    %cst_207 = arith.constant 1.000000e+00 : f32
    %361 = vector.broadcast %cst_207 : f32 to vector<8x128xf32>
    %362 = arith.addf %361, %360 : vector<8x128xf32>
    %363 = arith.divf %361, %362 : vector<8x128xf32>
    %364 = vector.extract_strided_slice %357 {offsets = [0, 128], sizes = [8, 128], strides = [1, 1]} : vector<8x512xf32> to vector<8x128xf32>
    %365 = arith.negf %364 : vector<8x128xf32>
    %366 = math.exp %365 : vector<8x128xf32>
    %cst_208 = arith.constant 1.000000e+00 : f32
    %367 = vector.broadcast %cst_208 : f32 to vector<8x128xf32>
    %368 = arith.addf %367, %366 : vector<8x128xf32>
    %369 = arith.divf %367, %368 : vector<8x128xf32>
    %370 = vector.extract_strided_slice %357 {offsets = [0, 256], sizes = [8, 128], strides = [1, 1]} : vector<8x512xf32> to vector<8x128xf32>
    %371 = math.tanh %370 : vector<8x128xf32>
    %372 = vector.extract_strided_slice %357 {offsets = [0, 384], sizes = [8, 128], strides = [1, 1]} : vector<8x512xf32> to vector<8x128xf32>
    %373 = arith.negf %372 : vector<8x128xf32>
    %374 = math.exp %373 : vector<8x128xf32>
    %cst_209 = arith.constant 1.000000e+00 : f32
    %375 = vector.broadcast %cst_209 : f32 to vector<8x128xf32>
    %376 = arith.addf %375, %374 : vector<8x128xf32>
    %377 = arith.divf %375, %376 : vector<8x128xf32>
    %378 = arith.mulf %369, %318 : vector<8x128xf32>
    %379 = arith.mulf %363, %371 : vector<8x128xf32>
    %380 = arith.addf %378, %379 : vector<8x128xf32>
    %381 = math.tanh %380 : vector<8x128xf32>
    %382 = arith.mulf %377, %381 : vector<8x128xf32>
    %c24_210 = arith.constant 24 : index
    %c0_211 = arith.constant 0 : index
    %383 = vector.load %arg15[%c24_210, %c0_211] : memref<64x512xf32, #tpu.memory_space<vmem>>, vector<8x512xf32>
    %384 = arith.truncf %350 : vector<8x128xf32> to vector<8x128xbf16>
    %c0_212 = arith.constant 0 : index
    %c0_213 = arith.constant 0 : index
    %385 = vector.load %arg6[%c0_212, %c0_213] : memref<128x512xbf16, #tpu.memory_space<vmem>>, vector<128x512xbf16>
    %cst_214 = arith.constant dense<0.000000e+00> : vector<8x512xf32>
    %386 = tpu.matmul %384, %385, %cst_214 {dimension_numbers = #tpu.dot_dimension_numbers<[1], [0], [0], [1], [0, 0, 1, 1], [], []>} : vector<8x128xbf16>, vector<128x512xbf16>, vector<8x512xf32> -> vector<8x512xf32>
    %387 = arith.addf %383, %386 : vector<8x512xf32>
    %388 = vector.extract_strided_slice %387 {offsets = [0, 0], sizes = [8, 128], strides = [1, 1]} : vector<8x512xf32> to vector<8x128xf32>
    %389 = arith.negf %388 : vector<8x128xf32>
    %390 = math.exp %389 : vector<8x128xf32>
    %cst_215 = arith.constant 1.000000e+00 : f32
    %391 = vector.broadcast %cst_215 : f32 to vector<8x128xf32>
    %392 = arith.addf %391, %390 : vector<8x128xf32>
    %393 = arith.divf %391, %392 : vector<8x128xf32>
    %394 = vector.extract_strided_slice %387 {offsets = [0, 128], sizes = [8, 128], strides = [1, 1]} : vector<8x512xf32> to vector<8x128xf32>
    %395 = arith.negf %394 : vector<8x128xf32>
    %396 = math.exp %395 : vector<8x128xf32>
    %cst_216 = arith.constant 1.000000e+00 : f32
    %397 = vector.broadcast %cst_216 : f32 to vector<8x128xf32>
    %398 = arith.addf %397, %396 : vector<8x128xf32>
    %399 = arith.divf %397, %398 : vector<8x128xf32>
    %400 = vector.extract_strided_slice %387 {offsets = [0, 256], sizes = [8, 128], strides = [1, 1]} : vector<8x512xf32> to vector<8x128xf32>
    %401 = math.tanh %400 : vector<8x128xf32>
    %402 = vector.extract_strided_slice %387 {offsets = [0, 384], sizes = [8, 128], strides = [1, 1]} : vector<8x512xf32> to vector<8x128xf32>
    %403 = arith.negf %402 : vector<8x128xf32>
    %404 = math.exp %403 : vector<8x128xf32>
    %cst_217 = arith.constant 1.000000e+00 : f32
    %405 = vector.broadcast %cst_217 : f32 to vector<8x128xf32>
    %406 = arith.addf %405, %404 : vector<8x128xf32>
    %407 = arith.divf %405, %406 : vector<8x128xf32>
    %408 = arith.mulf %399, %348 : vector<8x128xf32>
    %409 = arith.mulf %393, %401 : vector<8x128xf32>
    %410 = arith.addf %408, %409 : vector<8x128xf32>
    %411 = math.tanh %410 : vector<8x128xf32>
    %412 = arith.mulf %407, %411 : vector<8x128xf32>
    %c24_218 = arith.constant 24 : index
    %c0_219 = arith.constant 0 : index
    %413 = vector.load %arg8[%c24_218, %c0_219] : memref<64x128xf32, #tpu.memory_space<vmem>>, vector<8x128xf32>
    tpu.vector_store %arg8[%c24_218, %c0_219], %382 {strides = array<i32>} : memref<64x128xf32, #tpu.memory_space<vmem>>, vector<8x128xf32>,
    %c24_220 = arith.constant 24 : index
    %c0_221 = arith.constant 0 : index
    %414 = vector.load %arg11[%c24_220, %c0_221] : memref<64x128xf32, #tpu.memory_space<vmem>>, vector<8x128xf32>
    tpu.vector_store %arg11[%c24_220, %c0_221], %412 {strides = array<i32>} : memref<64x128xf32, #tpu.memory_space<vmem>>, vector<8x128xf32>,
    %c32_222 = arith.constant 32 : index
    %c0_223 = arith.constant 0 : index
    %415 = vector.load %arg14[%c32_222, %c0_223] : memref<64x512xf32, #tpu.memory_space<vmem>>, vector<8x512xf32>
    %416 = arith.truncf %382 : vector<8x128xf32> to vector<8x128xbf16>
    %c0_224 = arith.constant 0 : index
    %c0_225 = arith.constant 0 : index
    %417 = vector.load %arg3[%c0_224, %c0_225] : memref<128x512xbf16, #tpu.memory_space<vmem>>, vector<128x512xbf16>
    %cst_226 = arith.constant dense<0.000000e+00> : vector<8x512xf32>
    %418 = tpu.matmul %416, %417, %cst_226 {dimension_numbers = #tpu.dot_dimension_numbers<[1], [0], [0], [1], [0, 0, 1, 1], [], []>} : vector<8x128xbf16>, vector<128x512xbf16>, vector<8x512xf32> -> vector<8x512xf32>
    %419 = arith.addf %415, %418 : vector<8x512xf32>
    %420 = vector.extract_strided_slice %419 {offsets = [0, 0], sizes = [8, 128], strides = [1, 1]} : vector<8x512xf32> to vector<8x128xf32>
    %421 = arith.negf %420 : vector<8x128xf32>
    %422 = math.exp %421 : vector<8x128xf32>
    %cst_227 = arith.constant 1.000000e+00 : f32
    %423 = vector.broadcast %cst_227 : f32 to vector<8x128xf32>
    %424 = arith.addf %423, %422 : vector<8x128xf32>
    %425 = arith.divf %423, %424 : vector<8x128xf32>
    %426 = vector.extract_strided_slice %419 {offsets = [0, 128], sizes = [8, 128], strides = [1, 1]} : vector<8x512xf32> to vector<8x128xf32>
    %427 = arith.negf %426 : vector<8x128xf32>
    %428 = math.exp %427 : vector<8x128xf32>
    %cst_228 = arith.constant 1.000000e+00 : f32
    %429 = vector.broadcast %cst_228 : f32 to vector<8x128xf32>
    %430 = arith.addf %429, %428 : vector<8x128xf32>
    %431 = arith.divf %429, %430 : vector<8x128xf32>
    %432 = vector.extract_strided_slice %419 {offsets = [0, 256], sizes = [8, 128], strides = [1, 1]} : vector<8x512xf32> to vector<8x128xf32>
    %433 = math.tanh %432 : vector<8x128xf32>
    %434 = vector.extract_strided_slice %419 {offsets = [0, 384], sizes = [8, 128], strides = [1, 1]} : vector<8x512xf32> to vector<8x128xf32>
    %435 = arith.negf %434 : vector<8x128xf32>
    %436 = math.exp %435 : vector<8x128xf32>
    %cst_229 = arith.constant 1.000000e+00 : f32
    %437 = vector.broadcast %cst_229 : f32 to vector<8x128xf32>
    %438 = arith.addf %437, %436 : vector<8x128xf32>
    %439 = arith.divf %437, %438 : vector<8x128xf32>
    %440 = arith.mulf %431, %380 : vector<8x128xf32>
    %441 = arith.mulf %425, %433 : vector<8x128xf32>
    %442 = arith.addf %440, %441 : vector<8x128xf32>
    %443 = math.tanh %442 : vector<8x128xf32>
    %444 = arith.mulf %439, %443 : vector<8x128xf32>
    %c32_230 = arith.constant 32 : index
    %c0_231 = arith.constant 0 : index
    %445 = vector.load %arg15[%c32_230, %c0_231] : memref<64x512xf32, #tpu.memory_space<vmem>>, vector<8x512xf32>
    %446 = arith.truncf %412 : vector<8x128xf32> to vector<8x128xbf16>
    %c0_232 = arith.constant 0 : index
    %c0_233 = arith.constant 0 : index
    %447 = vector.load %arg6[%c0_232, %c0_233] : memref<128x512xbf16, #tpu.memory_space<vmem>>, vector<128x512xbf16>
    %cst_234 = arith.constant dense<0.000000e+00> : vector<8x512xf32>
    %448 = tpu.matmul %446, %447, %cst_234 {dimension_numbers = #tpu.dot_dimension_numbers<[1], [0], [0], [1], [0, 0, 1, 1], [], []>} : vector<8x128xbf16>, vector<128x512xbf16>, vector<8x512xf32> -> vector<8x512xf32>
    %449 = arith.addf %445, %448 : vector<8x512xf32>
    %450 = vector.extract_strided_slice %449 {offsets = [0, 0], sizes = [8, 128], strides = [1, 1]} : vector<8x512xf32> to vector<8x128xf32>
    %451 = arith.negf %450 : vector<8x128xf32>
    %452 = math.exp %451 : vector<8x128xf32>
    %cst_235 = arith.constant 1.000000e+00 : f32
    %453 = vector.broadcast %cst_235 : f32 to vector<8x128xf32>
    %454 = arith.addf %453, %452 : vector<8x128xf32>
    %455 = arith.divf %453, %454 : vector<8x128xf32>
    %456 = vector.extract_strided_slice %449 {offsets = [0, 128], sizes = [8, 128], strides = [1, 1]} : vector<8x512xf32> to vector<8x128xf32>
    %457 = arith.negf %456 : vector<8x128xf32>
    %458 = math.exp %457 : vector<8x128xf32>
    %cst_236 = arith.constant 1.000000e+00 : f32
    %459 = vector.broadcast %cst_236 : f32 to vector<8x128xf32>
    %460 = arith.addf %459, %458 : vector<8x128xf32>
    %461 = arith.divf %459, %460 : vector<8x128xf32>
    %462 = vector.extract_strided_slice %449 {offsets = [0, 256], sizes = [8, 128], strides = [1, 1]} : vector<8x512xf32> to vector<8x128xf32>
    %463 = math.tanh %462 : vector<8x128xf32>
    %464 = vector.extract_strided_slice %449 {offsets = [0, 384], sizes = [8, 128], strides = [1, 1]} : vector<8x512xf32> to vector<8x128xf32>
    %465 = arith.negf %464 : vector<8x128xf32>
    %466 = math.exp %465 : vector<8x128xf32>
    %cst_237 = arith.constant 1.000000e+00 : f32
    %467 = vector.broadcast %cst_237 : f32 to vector<8x128xf32>
    %468 = arith.addf %467, %466 : vector<8x128xf32>
    %469 = arith.divf %467, %468 : vector<8x128xf32>
    %470 = arith.mulf %461, %410 : vector<8x128xf32>
    %471 = arith.mulf %455, %463 : vector<8x128xf32>
    %472 = arith.addf %470, %471 : vector<8x128xf32>
    %473 = math.tanh %472 : vector<8x128xf32>
    %474 = arith.mulf %469, %473 : vector<8x128xf32>
    %c32_238 = arith.constant 32 : index
    %c0_239 = arith.constant 0 : index
    %475 = vector.load %arg8[%c32_238, %c0_239] : memref<64x128xf32, #tpu.memory_space<vmem>>, vector<8x128xf32>
    tpu.vector_store %arg8[%c32_238, %c0_239], %444 {strides = array<i32>} : memref<64x128xf32, #tpu.memory_space<vmem>>, vector<8x128xf32>,
    %c32_240 = arith.constant 32 : index
    %c0_241 = arith.constant 0 : index
    %476 = vector.load %arg11[%c32_240, %c0_241] : memref<64x128xf32, #tpu.memory_space<vmem>>, vector<8x128xf32>
    tpu.vector_store %arg11[%c32_240, %c0_241], %474 {strides = array<i32>} : memref<64x128xf32, #tpu.memory_space<vmem>>, vector<8x128xf32>,
    %c40_242 = arith.constant 40 : index
    %c0_243 = arith.constant 0 : index
    %477 = vector.load %arg14[%c40_242, %c0_243] : memref<64x512xf32, #tpu.memory_space<vmem>>, vector<8x512xf32>
    %478 = arith.truncf %444 : vector<8x128xf32> to vector<8x128xbf16>
    %c0_244 = arith.constant 0 : index
    %c0_245 = arith.constant 0 : index
    %479 = vector.load %arg3[%c0_244, %c0_245] : memref<128x512xbf16, #tpu.memory_space<vmem>>, vector<128x512xbf16>
    %cst_246 = arith.constant dense<0.000000e+00> : vector<8x512xf32>
    %480 = tpu.matmul %478, %479, %cst_246 {dimension_numbers = #tpu.dot_dimension_numbers<[1], [0], [0], [1], [0, 0, 1, 1], [], []>} : vector<8x128xbf16>, vector<128x512xbf16>, vector<8x512xf32> -> vector<8x512xf32>
    %481 = arith.addf %477, %480 : vector<8x512xf32>
    %482 = vector.extract_strided_slice %481 {offsets = [0, 0], sizes = [8, 128], strides = [1, 1]} : vector<8x512xf32> to vector<8x128xf32>
    %483 = arith.negf %482 : vector<8x128xf32>
    %484 = math.exp %483 : vector<8x128xf32>
    %cst_247 = arith.constant 1.000000e+00 : f32
    %485 = vector.broadcast %cst_247 : f32 to vector<8x128xf32>
    %486 = arith.addf %485, %484 : vector<8x128xf32>
    %487 = arith.divf %485, %486 : vector<8x128xf32>
    %488 = vector.extract_strided_slice %481 {offsets = [0, 128], sizes = [8, 128], strides = [1, 1]} : vector<8x512xf32> to vector<8x128xf32>
    %489 = arith.negf %488 : vector<8x128xf32>
    %490 = math.exp %489 : vector<8x128xf32>
    %cst_248 = arith.constant 1.000000e+00 : f32
    %491 = vector.broadcast %cst_248 : f32 to vector<8x128xf32>
    %492 = arith.addf %491, %490 : vector<8x128xf32>
    %493 = arith.divf %491, %492 : vector<8x128xf32>
    %494 = vector.extract_strided_slice %481 {offsets = [0, 256], sizes = [8, 128], strides = [1, 1]} : vector<8x512xf32> to vector<8x128xf32>
    %495 = math.tanh %494 : vector<8x128xf32>
    %496 = vector.extract_strided_slice %481 {offsets = [0, 384], sizes = [8, 128], strides = [1, 1]} : vector<8x512xf32> to vector<8x128xf32>
    %497 = arith.negf %496 : vector<8x128xf32>
    %498 = math.exp %497 : vector<8x128xf32>
    %cst_249 = arith.constant 1.000000e+00 : f32
    %499 = vector.broadcast %cst_249 : f32 to vector<8x128xf32>
    %500 = arith.addf %499, %498 : vector<8x128xf32>
    %501 = arith.divf %499, %500 : vector<8x128xf32>
    %502 = arith.mulf %493, %442 : vector<8x128xf32>
    %503 = arith.mulf %487, %495 : vector<8x128xf32>
    %504 = arith.addf %502, %503 : vector<8x128xf32>
    %505 = math.tanh %504 : vector<8x128xf32>
    %506 = arith.mulf %501, %505 : vector<8x128xf32>
    %c40_250 = arith.constant 40 : index
    %c0_251 = arith.constant 0 : index
    %507 = vector.load %arg15[%c40_250, %c0_251] : memref<64x512xf32, #tpu.memory_space<vmem>>, vector<8x512xf32>
    %508 = arith.truncf %474 : vector<8x128xf32> to vector<8x128xbf16>
    %c0_252 = arith.constant 0 : index
    %c0_253 = arith.constant 0 : index
    %509 = vector.load %arg6[%c0_252, %c0_253] : memref<128x512xbf16, #tpu.memory_space<vmem>>, vector<128x512xbf16>
    %cst_254 = arith.constant dense<0.000000e+00> : vector<8x512xf32>
    %510 = tpu.matmul %508, %509, %cst_254 {dimension_numbers = #tpu.dot_dimension_numbers<[1], [0], [0], [1], [0, 0, 1, 1], [], []>} : vector<8x128xbf16>, vector<128x512xbf16>, vector<8x512xf32> -> vector<8x512xf32>
    %511 = arith.addf %507, %510 : vector<8x512xf32>
    %512 = vector.extract_strided_slice %511 {offsets = [0, 0], sizes = [8, 128], strides = [1, 1]} : vector<8x512xf32> to vector<8x128xf32>
    %513 = arith.negf %512 : vector<8x128xf32>
    %514 = math.exp %513 : vector<8x128xf32>
    %cst_255 = arith.constant 1.000000e+00 : f32
    %515 = vector.broadcast %cst_255 : f32 to vector<8x128xf32>
    %516 = arith.addf %515, %514 : vector<8x128xf32>
    %517 = arith.divf %515, %516 : vector<8x128xf32>
    %518 = vector.extract_strided_slice %511 {offsets = [0, 128], sizes = [8, 128], strides = [1, 1]} : vector<8x512xf32> to vector<8x128xf32>
    %519 = arith.negf %518 : vector<8x128xf32>
    %520 = math.exp %519 : vector<8x128xf32>
    %cst_256 = arith.constant 1.000000e+00 : f32
    %521 = vector.broadcast %cst_256 : f32 to vector<8x128xf32>
    %522 = arith.addf %521, %520 : vector<8x128xf32>
    %523 = arith.divf %521, %522 : vector<8x128xf32>
    %524 = vector.extract_strided_slice %511 {offsets = [0, 256], sizes = [8, 128], strides = [1, 1]} : vector<8x512xf32> to vector<8x128xf32>
    %525 = math.tanh %524 : vector<8x128xf32>
    %526 = vector.extract_strided_slice %511 {offsets = [0, 384], sizes = [8, 128], strides = [1, 1]} : vector<8x512xf32> to vector<8x128xf32>
    %527 = arith.negf %526 : vector<8x128xf32>
    %528 = math.exp %527 : vector<8x128xf32>
    %cst_257 = arith.constant 1.000000e+00 : f32
    %529 = vector.broadcast %cst_257 : f32 to vector<8x128xf32>
    %530 = arith.addf %529, %528 : vector<8x128xf32>
    %531 = arith.divf %529, %530 : vector<8x128xf32>
    %532 = arith.mulf %523, %472 : vector<8x128xf32>
    %533 = arith.mulf %517, %525 : vector<8x128xf32>
    %534 = arith.addf %532, %533 : vector<8x128xf32>
    %535 = math.tanh %534 : vector<8x128xf32>
    %536 = arith.mulf %531, %535 : vector<8x128xf32>
    %c40_258 = arith.constant 40 : index
    %c0_259 = arith.constant 0 : index
    %537 = vector.load %arg8[%c40_258, %c0_259] : memref<64x128xf32, #tpu.memory_space<vmem>>, vector<8x128xf32>
    tpu.vector_store %arg8[%c40_258, %c0_259], %506 {strides = array<i32>} : memref<64x128xf32, #tpu.memory_space<vmem>>, vector<8x128xf32>,
    %c40_260 = arith.constant 40 : index
    %c0_261 = arith.constant 0 : index
    %538 = vector.load %arg11[%c40_260, %c0_261] : memref<64x128xf32, #tpu.memory_space<vmem>>, vector<8x128xf32>
    tpu.vector_store %arg11[%c40_260, %c0_261], %536 {strides = array<i32>} : memref<64x128xf32, #tpu.memory_space<vmem>>, vector<8x128xf32>,
    %c48_262 = arith.constant 48 : index
    %c0_263 = arith.constant 0 : index
    %539 = vector.load %arg14[%c48_262, %c0_263] : memref<64x512xf32, #tpu.memory_space<vmem>>, vector<8x512xf32>
    %540 = arith.truncf %506 : vector<8x128xf32> to vector<8x128xbf16>
    %c0_264 = arith.constant 0 : index
    %c0_265 = arith.constant 0 : index
    %541 = vector.load %arg3[%c0_264, %c0_265] : memref<128x512xbf16, #tpu.memory_space<vmem>>, vector<128x512xbf16>
    %cst_266 = arith.constant dense<0.000000e+00> : vector<8x512xf32>
    %542 = tpu.matmul %540, %541, %cst_266 {dimension_numbers = #tpu.dot_dimension_numbers<[1], [0], [0], [1], [0, 0, 1, 1], [], []>} : vector<8x128xbf16>, vector<128x512xbf16>, vector<8x512xf32> -> vector<8x512xf32>
    %543 = arith.addf %539, %542 : vector<8x512xf32>
    %544 = vector.extract_strided_slice %543 {offsets = [0, 0], sizes = [8, 128], strides = [1, 1]} : vector<8x512xf32> to vector<8x128xf32>
    %545 = arith.negf %544 : vector<8x128xf32>
    %546 = math.exp %545 : vector<8x128xf32>
    %cst_267 = arith.constant 1.000000e+00 : f32
    %547 = vector.broadcast %cst_267 : f32 to vector<8x128xf32>
    %548 = arith.addf %547, %546 : vector<8x128xf32>
    %549 = arith.divf %547, %548 : vector<8x128xf32>
    %550 = vector.extract_strided_slice %543 {offsets = [0, 128], sizes = [8, 128], strides = [1, 1]} : vector<8x512xf32> to vector<8x128xf32>
    %551 = arith.negf %550 : vector<8x128xf32>
    %552 = math.exp %551 : vector<8x128xf32>
    %cst_268 = arith.constant 1.000000e+00 : f32
    %553 = vector.broadcast %cst_268 : f32 to vector<8x128xf32>
    %554 = arith.addf %553, %552 : vector<8x128xf32>
    %555 = arith.divf %553, %554 : vector<8x128xf32>
    %556 = vector.extract_strided_slice %543 {offsets = [0, 256], sizes = [8, 128], strides = [1, 1]} : vector<8x512xf32> to vector<8x128xf32>
    %557 = math.tanh %556 : vector<8x128xf32>
    %558 = vector.extract_strided_slice %543 {offsets = [0, 384], sizes = [8, 128], strides = [1, 1]} : vector<8x512xf32> to vector<8x128xf32>
    %559 = arith.negf %558 : vector<8x128xf32>
    %560 = math.exp %559 : vector<8x128xf32>
    %cst_269 = arith.constant 1.000000e+00 : f32
    %561 = vector.broadcast %cst_269 : f32 to vector<8x128xf32>
    %562 = arith.addf %561, %560 : vector<8x128xf32>
    %563 = arith.divf %561, %562 : vector<8x128xf32>
    %564 = arith.mulf %555, %504 : vector<8x128xf32>
    %565 = arith.mulf %549, %557 : vector<8x128xf32>
    %566 = arith.addf %564, %565 : vector<8x128xf32>
    %567 = math.tanh %566 : vector<8x128xf32>
    %568 = arith.mulf %563, %567 : vector<8x128xf32>
    %c48_270 = arith.constant 48 : index
    %c0_271 = arith.constant 0 : index
    %569 = vector.load %arg15[%c48_270, %c0_271] : memref<64x512xf32, #tpu.memory_space<vmem>>, vector<8x512xf32>
    %570 = arith.truncf %536 : vector<8x128xf32> to vector<8x128xbf16>
    %c0_272 = arith.constant 0 : index
    %c0_273 = arith.constant 0 : index
    %571 = vector.load %arg6[%c0_272, %c0_273] : memref<128x512xbf16, #tpu.memory_space<vmem>>, vector<128x512xbf16>
    %cst_274 = arith.constant dense<0.000000e+00> : vector<8x512xf32>
    %572 = tpu.matmul %570, %571, %cst_274 {dimension_numbers = #tpu.dot_dimension_numbers<[1], [0], [0], [1], [0, 0, 1, 1], [], []>} : vector<8x128xbf16>, vector<128x512xbf16>, vector<8x512xf32> -> vector<8x512xf32>
    %573 = arith.addf %569, %572 : vector<8x512xf32>
    %574 = vector.extract_strided_slice %573 {offsets = [0, 0], sizes = [8, 128], strides = [1, 1]} : vector<8x512xf32> to vector<8x128xf32>
    %575 = arith.negf %574 : vector<8x128xf32>
    %576 = math.exp %575 : vector<8x128xf32>
    %cst_275 = arith.constant 1.000000e+00 : f32
    %577 = vector.broadcast %cst_275 : f32 to vector<8x128xf32>
    %578 = arith.addf %577, %576 : vector<8x128xf32>
    %579 = arith.divf %577, %578 : vector<8x128xf32>
    %580 = vector.extract_strided_slice %573 {offsets = [0, 128], sizes = [8, 128], strides = [1, 1]} : vector<8x512xf32> to vector<8x128xf32>
    %581 = arith.negf %580 : vector<8x128xf32>
    %582 = math.exp %581 : vector<8x128xf32>
    %cst_276 = arith.constant 1.000000e+00 : f32
    %583 = vector.broadcast %cst_276 : f32 to vector<8x128xf32>
    %584 = arith.addf %583, %582 : vector<8x128xf32>
    %585 = arith.divf %583, %584 : vector<8x128xf32>
    %586 = vector.extract_strided_slice %573 {offsets = [0, 256], sizes = [8, 128], strides = [1, 1]} : vector<8x512xf32> to vector<8x128xf32>
    %587 = math.tanh %586 : vector<8x128xf32>
    %588 = vector.extract_strided_slice %573 {offsets = [0, 384], sizes = [8, 128], strides = [1, 1]} : vector<8x512xf32> to vector<8x128xf32>
    %589 = arith.negf %588 : vector<8x128xf32>
    %590 = math.exp %589 : vector<8x128xf32>
    %cst_277 = arith.constant 1.000000e+00 : f32
    %591 = vector.broadcast %cst_277 : f32 to vector<8x128xf32>
    %592 = arith.addf %591, %590 : vector<8x128xf32>
    %593 = arith.divf %591, %592 : vector<8x128xf32>
    %594 = arith.mulf %585, %534 : vector<8x128xf32>
    %595 = arith.mulf %579, %587 : vector<8x128xf32>
    %596 = arith.addf %594, %595 : vector<8x128xf32>
    %597 = math.tanh %596 : vector<8x128xf32>
    %598 = arith.mulf %593, %597 : vector<8x128xf32>
    %c48_278 = arith.constant 48 : index
    %c0_279 = arith.constant 0 : index
    %599 = vector.load %arg8[%c48_278, %c0_279] : memref<64x128xf32, #tpu.memory_space<vmem>>, vector<8x128xf32>
    tpu.vector_store %arg8[%c48_278, %c0_279], %568 {strides = array<i32>} : memref<64x128xf32, #tpu.memory_space<vmem>>, vector<8x128xf32>,
    %c48_280 = arith.constant 48 : index
    %c0_281 = arith.constant 0 : index
    %600 = vector.load %arg11[%c48_280, %c0_281] : memref<64x128xf32, #tpu.memory_space<vmem>>, vector<8x128xf32>
    tpu.vector_store %arg11[%c48_280, %c0_281], %598 {strides = array<i32>} : memref<64x128xf32, #tpu.memory_space<vmem>>, vector<8x128xf32>,
    %c56_282 = arith.constant 56 : index
    %c0_283 = arith.constant 0 : index
    %601 = vector.load %arg14[%c56_282, %c0_283] : memref<64x512xf32, #tpu.memory_space<vmem>>, vector<8x512xf32>
    %602 = arith.truncf %568 : vector<8x128xf32> to vector<8x128xbf16>
    %c0_284 = arith.constant 0 : index
    %c0_285 = arith.constant 0 : index
    %603 = vector.load %arg3[%c0_284, %c0_285] : memref<128x512xbf16, #tpu.memory_space<vmem>>, vector<128x512xbf16>
    %cst_286 = arith.constant dense<0.000000e+00> : vector<8x512xf32>
    %604 = tpu.matmul %602, %603, %cst_286 {dimension_numbers = #tpu.dot_dimension_numbers<[1], [0], [0], [1], [0, 0, 1, 1], [], []>} : vector<8x128xbf16>, vector<128x512xbf16>, vector<8x512xf32> -> vector<8x512xf32>
    %605 = arith.addf %601, %604 : vector<8x512xf32>
    %606 = vector.extract_strided_slice %605 {offsets = [0, 0], sizes = [8, 128], strides = [1, 1]} : vector<8x512xf32> to vector<8x128xf32>
    %607 = arith.negf %606 : vector<8x128xf32>
    %608 = math.exp %607 : vector<8x128xf32>
    %cst_287 = arith.constant 1.000000e+00 : f32
    %609 = vector.broadcast %cst_287 : f32 to vector<8x128xf32>
    %610 = arith.addf %609, %608 : vector<8x128xf32>
    %611 = arith.divf %609, %610 : vector<8x128xf32>
    %612 = vector.extract_strided_slice %605 {offsets = [0, 128], sizes = [8, 128], strides = [1, 1]} : vector<8x512xf32> to vector<8x128xf32>
    %613 = arith.negf %612 : vector<8x128xf32>
    %614 = math.exp %613 : vector<8x128xf32>
    %cst_288 = arith.constant 1.000000e+00 : f32
    %615 = vector.broadcast %cst_288 : f32 to vector<8x128xf32>
    %616 = arith.addf %615, %614 : vector<8x128xf32>
    %617 = arith.divf %615, %616 : vector<8x128xf32>
    %618 = vector.extract_strided_slice %605 {offsets = [0, 256], sizes = [8, 128], strides = [1, 1]} : vector<8x512xf32> to vector<8x128xf32>
    %619 = math.tanh %618 : vector<8x128xf32>
    %620 = vector.extract_strided_slice %605 {offsets = [0, 384], sizes = [8, 128], strides = [1, 1]} : vector<8x512xf32> to vector<8x128xf32>
    %621 = arith.negf %620 : vector<8x128xf32>
    %622 = math.exp %621 : vector<8x128xf32>
    %cst_289 = arith.constant 1.000000e+00 : f32
    %623 = vector.broadcast %cst_289 : f32 to vector<8x128xf32>
    %624 = arith.addf %623, %622 : vector<8x128xf32>
    %625 = arith.divf %623, %624 : vector<8x128xf32>
    %626 = arith.mulf %617, %566 : vector<8x128xf32>
    %627 = arith.mulf %611, %619 : vector<8x128xf32>
    %628 = arith.addf %626, %627 : vector<8x128xf32>
    %629 = math.tanh %628 : vector<8x128xf32>
    %630 = arith.mulf %625, %629 : vector<8x128xf32>
    %c56_290 = arith.constant 56 : index
    %c0_291 = arith.constant 0 : index
    %631 = vector.load %arg15[%c56_290, %c0_291] : memref<64x512xf32, #tpu.memory_space<vmem>>, vector<8x512xf32>
    %632 = arith.truncf %598 : vector<8x128xf32> to vector<8x128xbf16>
    %c0_292 = arith.constant 0 : index
    %c0_293 = arith.constant 0 : index
    %633 = vector.load %arg6[%c0_292, %c0_293] : memref<128x512xbf16, #tpu.memory_space<vmem>>, vector<128x512xbf16>
    %cst_294 = arith.constant dense<0.000000e+00> : vector<8x512xf32>
    %634 = tpu.matmul %632, %633, %cst_294 {dimension_numbers = #tpu.dot_dimension_numbers<[1], [0], [0], [1], [0, 0, 1, 1], [], []>} : vector<8x128xbf16>, vector<128x512xbf16>, vector<8x512xf32> -> vector<8x512xf32>
    %635 = arith.addf %631, %634 : vector<8x512xf32>
    %636 = vector.extract_strided_slice %635 {offsets = [0, 0], sizes = [8, 128], strides = [1, 1]} : vector<8x512xf32> to vector<8x128xf32>
    %637 = arith.negf %636 : vector<8x128xf32>
    %638 = math.exp %637 : vector<8x128xf32>
    %cst_295 = arith.constant 1.000000e+00 : f32
    %639 = vector.broadcast %cst_295 : f32 to vector<8x128xf32>
    %640 = arith.addf %639, %638 : vector<8x128xf32>
    %641 = arith.divf %639, %640 : vector<8x128xf32>
    %642 = vector.extract_strided_slice %635 {offsets = [0, 128], sizes = [8, 128], strides = [1, 1]} : vector<8x512xf32> to vector<8x128xf32>
    %643 = arith.negf %642 : vector<8x128xf32>
    %644 = math.exp %643 : vector<8x128xf32>
    %cst_296 = arith.constant 1.000000e+00 : f32
    %645 = vector.broadcast %cst_296 : f32 to vector<8x128xf32>
    %646 = arith.addf %645, %644 : vector<8x128xf32>
    %647 = arith.divf %645, %646 : vector<8x128xf32>
    %648 = vector.extract_strided_slice %635 {offsets = [0, 256], sizes = [8, 128], strides = [1, 1]} : vector<8x512xf32> to vector<8x128xf32>
    %649 = math.tanh %648 : vector<8x128xf32>
    %650 = vector.extract_strided_slice %635 {offsets = [0, 384], sizes = [8, 128], strides = [1, 1]} : vector<8x512xf32> to vector<8x128xf32>
    %651 = arith.negf %650 : vector<8x128xf32>
    %652 = math.exp %651 : vector<8x128xf32>
    %cst_297 = arith.constant 1.000000e+00 : f32
    %653 = vector.broadcast %cst_297 : f32 to vector<8x128xf32>
    %654 = arith.addf %653, %652 : vector<8x128xf32>
    %655 = arith.divf %653, %654 : vector<8x128xf32>
    %656 = arith.mulf %647, %596 : vector<8x128xf32>
    %657 = arith.mulf %641, %649 : vector<8x128xf32>
    %658 = arith.addf %656, %657 : vector<8x128xf32>
    %659 = math.tanh %658 : vector<8x128xf32>
    %660 = arith.mulf %655, %659 : vector<8x128xf32>
    %c56_298 = arith.constant 56 : index
    %c0_299 = arith.constant 0 : index
    %661 = vector.load %arg8[%c56_298, %c0_299] : memref<64x128xf32, #tpu.memory_space<vmem>>, vector<8x128xf32>
    tpu.vector_store %arg8[%c56_298, %c0_299], %630 {strides = array<i32>} : memref<64x128xf32, #tpu.memory_space<vmem>>, vector<8x128xf32>,
    %c56_300 = arith.constant 56 : index
    %c0_301 = arith.constant 0 : index
    %662 = vector.load %arg11[%c56_300, %c0_301] : memref<64x128xf32, #tpu.memory_space<vmem>>, vector<8x128xf32>
    tpu.vector_store %arg11[%c56_300, %c0_301], %660 {strides = array<i32>} : memref<64x128xf32, #tpu.memory_space<vmem>>, vector<8x128xf32>,
    %c0_302 = arith.constant 0 : index
    %c0_303 = arith.constant 0 : index
    %663 = vector.load %arg9[%c0_302, %c0_303] : memref<8x128xf32, #tpu.memory_space<vmem>>, vector<8x128xf32>
    tpu.vector_store %arg9[%c0_302, %c0_303], %630 {strides = array<i32>} : memref<8x128xf32, #tpu.memory_space<vmem>>, vector<8x128xf32>,
    %c0_304 = arith.constant 0 : index
    %c0_305 = arith.constant 0 : index
    %664 = vector.load %arg10[%c0_304, %c0_305] : memref<8x128xf32, #tpu.memory_space<vmem>>, vector<8x128xf32>
    tpu.vector_store %arg10[%c0_304, %c0_305], %628 {strides = array<i32>} : memref<8x128xf32, #tpu.memory_space<vmem>>, vector<8x128xf32>,
    %c0_306 = arith.constant 0 : index
    %c0_307 = arith.constant 0 : index
    %665 = vector.load %arg12[%c0_306, %c0_307] : memref<8x128xf32, #tpu.memory_space<vmem>>, vector<8x128xf32>
    tpu.vector_store %arg12[%c0_306, %c0_307], %660 {strides = array<i32>} : memref<8x128xf32, #tpu.memory_space<vmem>>, vector<8x128xf32>,
    %c0_308 = arith.constant 0 : index
    %c0_309 = arith.constant 0 : index
    %666 = vector.load %arg13[%c0_308, %c0_309] : memref<8x128xf32, #tpu.memory_space<vmem>>, vector<8x128xf32>
    tpu.vector_store %arg13[%c0_308, %c0_309], %658 {strides = array<i32>} : memref<8x128xf32, #tpu.memory_space<vmem>>, vector<8x128xf32>,
    return
  }
  func.func @transform_0(%arg0: i32, %arg1: memref<2x16xi32, #tpu.memory_space<smem>>) -> (i32, i32) {
    %c0_i32 = arith.constant 0 : i32
    %c0_i32_0 = arith.constant 0 : i32
    %c0_i32_1 = arith.constant 0 : i32
    return %c0_i32, %c0_i32_0 : i32, i32
  }
  func.func @transform_1(%arg0: i32, %arg1: memref<2x16xi32, #tpu.memory_space<smem>>) -> (i32, i32) {
    %c0_i32 = arith.constant 0 : i32
    %c0_i32_0 = arith.constant 0 : i32
    %c0_i32_1 = arith.constant 0 : i32
    return %c0_i32, %c0_i32_0 : i32, i32
  }
  func.func @transform_2(%arg0: i32, %arg1: memref<2x16xi32, #tpu.memory_space<smem>>) -> (i32, i32) {
    %c0_i32 = arith.constant 0 : i32
    %c0_i32_0 = arith.constant 0 : i32
    %c0_i32_1 = arith.constant 0 : i32
    return %c0_i32, %c0_i32_0 : i32, i32
  }
  func.func @transform_3(%arg0: i32, %arg1: memref<2x16xi32, #tpu.memory_space<smem>>) -> (i32, i32) {
    %c0_i32 = arith.constant 0 : i32
    %c0_i32_0 = arith.constant 0 : i32
    %c0_i32_1 = arith.constant 0 : i32
    return %c0_i32, %c0_i32_0 : i32, i32
  }
  func.func @transform_4(%arg0: i32, %arg1: memref<2x16xi32, #tpu.memory_space<smem>>) -> (i32, i32) {
    %c0_i32 = arith.constant 0 : i32
    %c0_i32_0 = arith.constant 0 : i32
    %c0_i32_1 = arith.constant 0 : i32
    return %c0_i32, %c0_i32_0 : i32, i32
  }
  func.func @transform_5(%arg0: i32, %arg1: memref<2x16xi32, #tpu.memory_space<smem>>) -> (i32, i32) {
    %c0_i32 = arith.constant 0 : i32
    %c0_i32_0 = arith.constant 0 : i32
    %c0_i32_1 = arith.constant 0 : i32
    return %c0_i32, %c0_i32_0 : i32, i32
  }
  func.func @transform_6(%arg0: i32, %arg1: memref<2x16xi32, #tpu.memory_space<smem>>) -> (i32, i32) {
    %c0_i32 = arith.constant 0 : i32
    %c0_i32_0 = arith.constant 0 : i32
    %c0_i32_1 = arith.constant 0 : i32
    return %c0_i32, %c0_i32_0 : i32, i32
  }
  func.func @transform_7(%arg0: i32, %arg1: memref<2x16xi32, #tpu.memory_space<smem>>) -> (i32, i32) {
    %c0_i32 = arith.constant 0 : i32
    %c0_i32_0 = arith.constant 0 : i32
    %c0_i32_1 = arith.constant 0 : i32
    return %c0_i32, %c0_i32_0 : i32, i32
  }
  func.func @transform_8(%arg0: i32, %arg1: memref<2x16xi32, #tpu.memory_space<smem>>) -> (i32, i32) {
    %c0_i32 = arith.constant 0 : i32
    %c0_i32_0 = arith.constant 0 : i32
    %c0_i32_1 = arith.constant 0 : i32
    return %c0_i32, %c0_i32_0 : i32, i32
  }
  func.func @transform_9(%arg0: i32, %arg1: memref<2x16xi32, #tpu.memory_space<smem>>) -> (i32, i32) {
    %c0_i32 = arith.constant 0 : i32
    %c0_i32_0 = arith.constant 0 : i32
    %c0_i32_1 = arith.constant 0 : i32
    return %c0_i32, %c0_i32_0 : i32, i32
  }
  func.func @transform_10(%arg0: i32, %arg1: memref<2x16xi32, #tpu.memory_space<smem>>) -> (i32, i32) {
    %c0_i32 = arith.constant 0 : i32
    %c0_i32_0 = arith.constant 0 : i32
    %c0_i32_1 = arith.constant 0 : i32
    return %c0_i32, %c0_i32_0 : i32, i32
  }
  func.func @transform_11(%arg0: i32, %arg1: memref<2x16xi32, #tpu.memory_space<smem>>) -> (i32, i32) {
    %c0_i32 = arith.constant 0 : i32
    %c0_i32_0 = arith.constant 0 : i32
    %c0_i32_1 = arith.constant 0 : i32
    return %c0_i32, %c0_i32_0 : i32, i32
  }
}

</mosaic_0001>

<bundles_post_ra>
// kernel: seq2seq_forward.1
= control target key start
LH: loop header
LB: loop body
LE: loop exit
PB: predicated region body
PF: predicated region fallthrough
CT: control target
= control target key end

     0   :  { %s9264_s0 = inlined_call_operand.vmem [shape: s32[2,16], index: 0, kind: input, shape index: {}]   ;;  %s9265_s1 = inlined_call_operand.vmem [shape: f32[32,512], index: 1, kind: input, shape index: {}]   ;;  %s9266_s2 = inlined_call_operand.vmem [shape: bf16[128,512], index: 2, kind: input, shape index: {}]   ;;  %s9267_s3 = inlined_call_operand.vmem [shape: f32[1,512], index: 3, kind: input, shape index: {}]   ;;  %s9268_s4 = inlined_call_operand.vmem [shape: f32[32,512], index: 4, kind: input, shape index: {}]   ;;  %s9269_s5 = inlined_call_operand.vmem [shape: bf16[128,512], index: 5, kind: input, shape index: {}]   ;;  %s9270_s6 = inlined_call_operand.vmem [shape: f32[1,512], index: 6, kind: input, shape index: {}]   ;;  %s9271_s7 = inlined_call_operand.vmem [shape: f32[64,128], index: 7, kind: output, shape index: {0}]   ;;  %s9272_s8 = inlined_call_operand.vmem [shape: f32[8,128], index: 8, kind: output, shape index: {1}]   ;;  %s9273_s9 = inlined_call_operand.vmem [shape: f32[8,128], index: 9, kind: output, shape index: {2}]   ;;  %s9274_s10 = inlined_call_operand.vmem [shape: f32[64,128], index: 10, kind: output, shape index: {3}]   ;;  %s9275_s11 = inlined_call_operand.vmem [shape: f32[8,128], index: 11, kind: output, shape index: {4}]   ;;  %s9276_s12 = inlined_call_operand.vmem [shape: f32[8,128], index: 12, kind: output, shape index: {5}]  }
   0x1   :  { %s18_s23 = sshll.u32 %s9264_s0, 4  ;;  %s19_s23 = int_to_ptr.vmem [resolvable:$true] %s18_s23 }
   0x2   :  { %s6937_s24 = scalar_lea.vmem %s19_s23, 32  ;;  %p6942_p1 = scmp.lt.s32.totalorder %s19_s23, %s19_s23 }
   0x3   :  { %p6938_p0 = scmp.ne.s32.totalorder %s19_s23, %s6937_s24  ;;  %p6943_p2 = scmp.lt.s32.totalorder %s6937_s24, %s6937_s24 }
   0x5   :  { %p6944_p3 = por %p6943_p2, %p6942_p1 }
   0x7   :  { %p6945_p4 = pnand %p6944_p3, %p6938_p0 }
   0x9   :  { %6948 = shalt.err (!%p6945_p4)  }
   0xa   :  { %s6951_s25 = smov [#allocation5]  }
   0xb   :  { %21 = dma.vmem_to_smem %s19_s23, 32, %s6951_s25, [#allocation4] }
   0xc   :  { %6949 = dma.done.wait [#allocation4], 32 }
   0xd   :  { %6950 = vsyncadd [#allocation4], 4294967264 }
   0xe   :  { %23 = sfence }
   0xf   :  { %v7025_v0 = vld [vmem:[%s9266_s2 + $0x4] ss:$16 sps:$4 sm:$0xff]   ;;  %v7030_v1 = vld [vmem:[%s9266_s2] ss:$16 sps:$4 sm:$0xff]   ;;  %v9277_v2 = vmov 0   ;;  %v6953_v3 = vmov 0.0   ;;  %v81_v42 = vlaneseq }
  0x10   :  { %781 = vmatprep.mubr.bf16.mxu0 %v9277_v2  ;;  %822 = vmatprep.mubr.bf16.mxu1 %v9277_v2  ;;  %37 = vst [vmem:[#allocation2] sm:$0xff] %v6953_v3  ;;  %38 = vst [vmem:[#allocation2 + $0x8] sm:$0xff] %v6953_v3  ;;  %v7102_v4 = vld [vmem:[%s9266_s2 + $0x24] ss:$16 sps:$4 sm:$0xff]   ;;  %v7108_v5 = vld [vmem:[%s9266_s2 + $0x20] ss:$16 sps:$4 sm:$0xff]  }
  0x11   :  { %39 = vst [vmem:[#allocation2 + $0x10] sm:$0xff] %v6953_v3  ;;  %40 = vst [vmem:[#allocation2 + $0x18] sm:$0xff] %v6953_v3  ;;  %749 = vmatprep.subr.bf16.mxu0 %v7025_v0  ;;  %v7114_v6 = vld [vmem:[%s9266_s2 + $0x44] ss:$16 sps:$4 sm:$0xff]   ;;  %v7119_v7 = vld [vmem:[%s9266_s2 + $0xc] ss:$16 sps:$4 sm:$0xff]  }
  0x12   :  { %41 = vst [vmem:[#allocation2 + $0x20] sm:$0xff] %v6953_v3  ;;  %42 = vst [vmem:[#allocation2 + $0x28] sm:$0xff] %v6953_v3  ;;  %750 = vmatpush1.bf16.msra.mxu0 %v7030_v1  ;;  %v7124_v8 = vld [vmem:[%s9266_s2 + $0x8] ss:$16 sps:$4 sm:$0xff]   ;;  %v7130_v9 = vld [vmem:[%s9266_s2 + $0x40] ss:$16 sps:$4 sm:$0xff]   ;;  %790 = vmatprep.subr.bf16.mxu1 %v7119_v7 }
  0x13   :  { %43 = vst [vmem:[#allocation2 + $0x30] sm:$0xff] %v6953_v3  ;;  %44 = vst [vmem:[#allocation2 + $0x38] sm:$0xff] %v6953_v3  ;;  %751 = vmatprep.subr.bf16.mxu0 %v7102_v4  ;;  %v7137_v10 = vld [vmem:[%s9266_s2 + $0x64] ss:$16 sps:$4 sm:$0xff]   ;;  %791 = vmatpush1.bf16.msra.mxu1 %v7124_v8  ;;  %v7143_v11 = vld [vmem:[%s9266_s2 + $0x2c] ss:$16 sps:$4 sm:$0xff]  }
  0x14   :  { %45 = vst [vmem:[#allocation2 + $0x40] sm:$0xff] %v6953_v3  ;;  %46 = vst [vmem:[#allocation2 + $0x48] sm:$0xff] %v6953_v3  ;;  %v7148_v12 = vld [vmem:[%s9266_s2 + $0x28] ss:$16 sps:$4 sm:$0xff]   ;;  %792 = vmatprep.subr.bf16.mxu1 %v7143_v11  ;;  %v7155_v13 = vld [vmem:[%s9266_s2 + $0x60] ss:$16 sps:$4 sm:$0xff]  }
  0x15   :  { %47 = vst [vmem:[#allocation2 + $0x50] sm:$0xff] %v6953_v3  ;;  %48 = vst [vmem:[#allocation2 + $0x58] sm:$0xff] %v6953_v3  ;;  %v7160_v14 = vld [vmem:[%s9266_s2 + $0x84] ss:$16 sps:$4 sm:$0xff]   ;;  %v7165_v15 = vld [vmem:[%s9266_s2 + $0x4c] ss:$16 sps:$4 sm:$0xff]  }
  0x16   :  { %49 = vst [vmem:[#allocation2 + $0x60] sm:$0xff] %v6953_v3  ;;  %50 = vst [vmem:[#allocation2 + $0x68] sm:$0xff] %v6953_v3  ;;  %752 = vmatpush1.bf16.msra.mxu0 %v7108_v5  ;;  %v7172_v16 = vld [vmem:[%s9266_s2 + $0x48] ss:$16 sps:$4 sm:$0xff]   ;;  %v7178_v17 = vld [vmem:[%s9266_s2 + $0x6c] ss:$16 sps:$4 sm:$0xff]  }
  0x17   :  { %51 = vst [vmem:[#allocation2 + $0x70] sm:$0xff] %v6953_v3  ;;  %52 = vst [vmem:[#allocation2 + $0x78] sm:$0xff] %v6953_v3  ;;  %753 = vmatprep.subr.bf16.mxu0 %v7114_v6  ;;  %793 = vmatpush1.bf16.msra.mxu1 %v7148_v12  ;;  %v7184_v18 = vld [vmem:[%s9266_s2 + $0x80] ss:$16 sps:$4 sm:$0xff]   ;;  %v7190_v19 = vld [vmem:[%s9266_s2 + $0xa4] ss:$16 sps:$4 sm:$0xff]  }
  0x18   :  { %53 = vst [vmem:[#allocation2 + $0x80] sm:$0xff] %v6953_v3  ;;  %54 = vst [vmem:[#allocation2 + $0x88] sm:$0xff] %v6953_v3  ;;  %794 = vmatprep.subr.bf16.mxu1 %v7165_v15  ;;  %v7196_v20 = vld [vmem:[%s9266_s2 + $0x68] ss:$16 sps:$4 sm:$0xff]   ;;  %v7202_v21 = vld [vmem:[%s9266_s2 + $0x8c] ss:$16 sps:$4 sm:$0xff]  }
  0x19   :  { %55 = vst [vmem:[#allocation2 + $0x90] sm:$0xff] %v6953_v3  ;;  %56 = vst [vmem:[#allocation2 + $0x98] sm:$0xff] %v6953_v3  ;;  %v7208_v22 = vld [vmem:[%s9266_s2 + $0xa0] ss:$16 sps:$4 sm:$0xff]   ;;  %v7213_v23 = vld [vmem:[%s9266_s2 + $0xc4] ss:$16 sps:$4 sm:$0xff]  }
  0x1a   :  { %57 = vst [vmem:[#allocation2 + $0xa0] sm:$0xff] %v6953_v3  ;;  %58 = vst [vmem:[#allocation2 + $0xa8] sm:$0xff] %v6953_v3  ;;  %754 = vmatpush1.bf16.msra.mxu0 %v7130_v9  ;;  %v7220_v24 = vld [vmem:[%s9266_s2 + $0x88] ss:$16 sps:$4 sm:$0xff]   ;;  %v7226_v25 = vld [vmem:[%s9266_s2 + $0xac] ss:$16 sps:$4 sm:$0xff]  }
  0x1b   :  { %59 = vst [vmem:[#allocation2 + $0xb0] sm:$0xff] %v6953_v3  ;;  %60 = vst [vmem:[#allocation2 + $0xb8] sm:$0xff] %v6953_v3  ;;  %755 = vmatprep.subr.bf16.mxu0 %v7137_v10  ;;  %795 = vmatpush1.bf16.msra.mxu1 %v7172_v16  ;;  %s7228_s17 = sld [smem:[#allocation5]]  ;;  %v7234_v26 = vld [vmem:[%s9266_s2 + $0xc0] ss:$16 sps:$4 sm:$0xff]   ;;  %s7236_s20 = sld [smem:[#allocation5 + $0x1]] }
  0x1c   :  { %61 = vst [vmem:[#allocation2 + $0xc0] sm:$0xff] %v6953_v3  ;;  %62 = vst [vmem:[#allocation2 + $0xc8] sm:$0xff] %v6953_v3  ;;  %796 = vmatprep.subr.bf16.mxu1 %v7178_v17  ;;  %v7242_v27 = vld [vmem:[%s9266_s2 + $0xe4] ss:$16 sps:$4 sm:$0xff]   ;;  %v7248_v28 = vld [vmem:[%s9266_s2 + $0xa8] ss:$16 sps:$4 sm:$0xff]  }
  0x1d   :  { %63 = vst [vmem:[#allocation2 + $0xd0] sm:$0xff] %v6953_v3  ;;  %64 = vst [vmem:[#allocation2 + $0xd8] sm:$0xff] %v6953_v3  ;;  %v7254_v29 = vld [vmem:[%s9266_s2 + $0xcc] ss:$16 sps:$4 sm:$0xff]   ;;  %v7260_v30 = vld [vmem:[%s9266_s2 + $0xe0] ss:$16 sps:$4 sm:$0xff]  }
  0x1e   :  { %65 = vst [vmem:[#allocation2 + $0xe0] sm:$0xff] %v6953_v3  ;;  %66 = vst [vmem:[#allocation2 + $0xe8] sm:$0xff] %v6953_v3  ;;  %756 = vmatpush1.bf16.msra.mxu0 %v7155_v13  ;;  %v7265_v31 = vld [vmem:[%s9269_s5 + $0x4] ss:$16 sps:$4 sm:$0xff]   ;;  %v7272_v32 = vld [vmem:[%s9266_s2 + $0xc8] ss:$16 sps:$4 sm:$0xff]  }
  0x1f   :  { %67 = vst [vmem:[#allocation2 + $0xf0] sm:$0xff] %v6953_v3  ;;  %68 = vst [vmem:[#allocation2 + $0xf8] sm:$0xff] %v6953_v3  ;;  %757 = vmatprep.subr.bf16.mxu0 %v7160_v14  ;;  %797 = vmatpush1.bf16.msra.mxu1 %v7196_v20  ;;  %v7278_v33 = vld [vmem:[%s9266_s2 + $0xec] ss:$16 sps:$4 sm:$0xff]   ;;  %v7285_v34 = vld [vmem:[%s9269_s5] ss:$16 sps:$4 sm:$0xff]  }
  0x20   :  { %297 = vst [vmem:[#allocation3] sm:$0xff] %v6953_v3  ;;  %298 = vst [vmem:[#allocation3 + $0x8] sm:$0xff] %v6953_v3  ;;  %798 = vmatprep.subr.bf16.mxu1 %v7202_v21  ;;  %v7290_v35 = vld [vmem:[%s9269_s5 + $0x24] ss:$16 sps:$4 sm:$0xff]   ;;  %v7298_v36 = vld [vmem:[%s9266_s2 + $0xe8] ss:$16 sps:$4 sm:$0xff]  }
  0x21   :  { %299 = vst [vmem:[#allocation3 + $0x10] sm:$0xff] %v6953_v3  ;;  %300 = vst [vmem:[#allocation3 + $0x18] sm:$0xff] %v6953_v3  ;;  %s71_s16 = sshra.s32 %s7228_s17, 3  ;;  %s88_s23 = sshra.s32 %s7236_s20, 3  ;;  %v7304_v37 = vld [vmem:[%s9269_s5 + $0xc] ss:$16 sps:$4 sm:$0xff]  }
  0x22   :  { %301 = vst [vmem:[#allocation3 + $0x20] sm:$0xff] %v6953_v3  ;;  %302 = vst [vmem:[#allocation3 + $0x28] sm:$0xff] %v6953_v3  ;;  %758 = vmatpush1.bf16.msra.mxu0 %v7184_v18  ;;  %s74_s28 = sand.u32 7, %s7228_s17  ;;  %s6258_s0 = sshll.u32 %s71_s16, 5  ;;  %v7313_v38 = vld [vmem:[%s9269_s5 + $0x20] ss:$16 sps:$4 sm:$0xff]  }
  0x23   :  { %303 = vst [vmem:[#allocation3 + $0x30] sm:$0xff] %v6953_v3  ;;  %304 = vst [vmem:[#allocation3 + $0x38] sm:$0xff] %v6953_v3  ;;  %759 = vmatprep.subr.bf16.mxu0 %v7190_v19  ;;  %799 = vmatpush1.bf16.msra.mxu1 %v7220_v24  ;;  %s91_s29 = sand.u32 7, %s7236_s20  ;;  %s6259_s30 = sshll.u32 %s88_s23, 5  ;;  %v7318_v39 = vld [vmem:[%s9269_s5 + $0x44] ss:$16 sps:$4 sm:$0xff]  }
  0x24   :  { %305 = vst [vmem:[#allocation3 + $0x40] sm:$0xff] %v6953_v3  ;;  %306 = vst [vmem:[#allocation3 + $0x48] sm:$0xff] %v6953_v3  ;;  %800 = vmatprep.subr.bf16.mxu1 %v7226_v25  ;;  %v7326_v40 = vld [vmem:[%s9269_s5 + $0x8] ss:$16 sps:$4 sm:$0xff]   ;;  %v7332_v41 = vld [vmem:[%s9269_s5 + $0x2c] ss:$16 sps:$4 sm:$0xff]   ;;  %s77_s21 = sadd.s32 %s6258_s0, %s74_s28  ;;  %s94_s22 = sadd.s32 %s6259_s30, %s91_s29 }
  0x25   :  { %307 = vst [vmem:[#allocation3 + $0x50] sm:$0xff] %v6953_v3  ;;  %308 = vst [vmem:[#allocation3 + $0x58] sm:$0xff] %v6953_v3  ;;  %v7338_v43 = vld [vmem:[%s9269_s5 + $0x40] ss:$16 sps:$4 sm:$0xff]   ;;  %v7343_v44 = vld [vmem:[%s9269_s5 + $0x64] ss:$16 sps:$4 sm:$0xff]   ;;  %s78_s30 = scalar_lea.vmem %s9265_s1, %s77_s21  ;;  %s95_s15 = scalar_lea.vmem %s9265_s1, %s94_s22 }
  0x26   :  { %309 = vst [vmem:[#allocation3 + $0x60] sm:$0xff] %v6953_v3  ;;  %310 = vst [vmem:[#allocation3 + $0x68] sm:$0xff] %v6953_v3  ;;  %760 = vmatpush1.bf16.msra.mxu0 %v7208_v22  ;;  %v7351_v45 = vld [vmem:[%s9269_s5 + $0x28] ss:$16 sps:$4 sm:$0xff]   ;;  %v7362_v46 = vld [vmem:[%s9269_s5 + $0x60] ss:$16 sps:$4 sm:$0xff]  }
  0x27   :  { %311 = vst [vmem:[#allocation3 + $0x70] sm:$0xff] %v6953_v3  ;;  %312 = vst [vmem:[#allocation3 + $0x78] sm:$0xff] %v6953_v3  ;;  %761 = vmatprep.subr.bf16.mxu0 %v7213_v23  ;;  %801 = vmatpush1.bf16.msra.mxu1 %v7248_v28  ;;  %v7368_v47 = vld [vmem:[%s9269_s5 + $0x4c] ss:$16 sps:$4 sm:$0xff]   ;;  %vm7371_vm0 = vcmp.lt.s32.totalorder %v81_v42, 512  ;;  %s5650_s22 = sld [smem:[#allocation5 + $0x80]] }
  0x28   :  { %313 = vst [vmem:[#allocation3 + $0x80] sm:$0xff] %v6953_v3  ;;  %314 = vst [vmem:[#allocation3 + $0x88] sm:$0xff] %v6953_v3  ;;  %802 = vmatprep.subr.bf16.mxu1 %v7254_v29  ;;  %v7378_v49 = vld [vmem:[%s9269_s5 + $0x84] ss:$16 sps:$4 sm:$0xff]   ;;  %v7383_v50 = vld [vmem:[%s9269_s5 + $0x48] ss:$16 sps:$4 sm:$0xff]  }
  0x29   :  { %315 = vst [vmem:[#allocation3 + $0x90] sm:$0xff] %v6953_v3  ;;  %316 = vst [vmem:[#allocation3 + $0x98] sm:$0xff] %v6953_v3  ;;  %v7388_v51 = vld [vmem:[%s9267_s3] sm:$0xf]  ;;  %v7394_v52 = vld [vmem:[%s9269_s5 + $0x6c] ss:$16 sps:$4 sm:$0xff]  }
  0x2a   :  { %317 = vst [vmem:[#allocation3 + $0xa0] sm:$0xff] %v6953_v3  ;;  %318 = vst [vmem:[#allocation3 + $0xa8] sm:$0xff] %v6953_v3  ;;  %762 = vmatpush1.bf16.msra.mxu0 %v7234_v26  ;;  %v79_v53 = vld [vmem:[%s78_s30] ss:$8 sm:$0xf]  ;;  %s5653_s23 = sld [smem:[#allocation5 + $0x81]] }
  0x2b   :  { %319 = vst [vmem:[#allocation3 + $0xb0] sm:$0xff] %v6953_v3  ;;  %320 = vst [vmem:[#allocation3 + $0xb8] sm:$0xff] %v6953_v3  ;;  %763 = vmatprep.subr.bf16.mxu0 %v7242_v27  ;;  %803 = vmatpush1.bf16.msra.mxu1 %v7272_v32  ;;  %v96_v54 = vld [vmem:[%s95_s15] ss:$8 sm:$0xf]  ;;  %v80_v55 = vadd.f32 %v79_v53, %v7388_v51  ;;  %s5608_s21 = sld [smem:[#allocation5 + $0x2]] }
  0x2c   :  { %321 = vst [vmem:[#allocation3 + $0xc0] sm:$0xff] %v6953_v3  ;;  %322 = vst [vmem:[#allocation3 + $0xc8] sm:$0xff] %v6953_v3  ;;  %804 = vmatprep.subr.bf16.mxu1 %v7278_v33  ;;  %v97_v56 = vadd.f32 %v96_v54, %v7388_v51  ;;  %v7403_v57 = vld [vmem:[%s9269_s5 + $0x80] ss:$16 sps:$4 sm:$0xff]   ;;  %v7409_v58 = vld [vmem:[%s9269_s5 + $0xa4] ss:$16 sps:$4 sm:$0xff]  }
  0x2d   :  { %323 = vst [vmem:[#allocation3 + $0xd0] sm:$0xff] %v6953_v3  ;;  %324 = vst [vmem:[#allocation3 + $0xd8] sm:$0xff] %v6953_v3  ;;  %v7414_v59 = vld [vmem:[%s9269_s5 + $0x68] ss:$16 sps:$4 sm:$0xff]   ;;  %v7424_v60 = vld [vmem:[%s9269_s5 + $0x8c] ss:$16 sps:$4 sm:$0xff]  }
  0x2e   :  { %325 = vst [vmem:[#allocation3 + $0xe0] sm:$0xff] %v6953_v3  ;;  %326 = vst [vmem:[#allocation3 + $0xe8] sm:$0xff] %v6953_v3  ;;  %764 = vmatpush1.bf16.msra.mxu0 %v7260_v30  ;;  %v7431_v61 = vld [vmem:[%s9269_s5 + $0xa0] ss:$16 sps:$4 sm:$0xff]   ;;  %v7437_v62 = vld [vmem:[%s9269_s5 + $0xc4] ss:$16 sps:$4 sm:$0xff]  }
  0x2f   :  { %327 = vst [vmem:[#allocation3 + $0xf0] sm:$0xff] %v6953_v3  ;;  %328 = vst [vmem:[#allocation3 + $0xf8] sm:$0xff] %v6953_v3  ;;  %1055 = vmatprep.subr.bf16.mxu0 %v7265_v31  ;;  %805 = vmatpush1.bf16.msra.mxu1 %v7298_v36  ;;  %v7442_v63 = vld [vmem:[%s9269_s5 + $0x88] ss:$16 sps:$4 sm:$0xff]   ;;  %v7450_v3 = vld [vmem:[%s9269_s5 + $0xc0] ss:$16 sps:$4 sm:$0xff]  }
  0x30   :  { %1096 = vmatprep.subr.bf16.mxu1 %v7304_v37  ;;  %85 = vst.msk [vmem:[#allocation2] ss:$8 sm:$0xf] %vm7371_vm0, %v80_v55  ;;  %99 = vst.msk [vmem:[#allocation2 + $0x1] ss:$8 sm:$0xf] %vm7371_vm0, %v97_v56 }
  0x31   :  { %782 = vmatmul.mubr.bf16.vlgmr.msra.gmra.mrb[0].mxu0 %v9277_v2  ;;  %9312 = vst [vmem:[#allocation7_spill] sm:$0xff] %v7431_v61  ;;  %9313 = vst [vmem:[#allocation8_spill] sm:$0xff] %v7437_v62  ;;  %v7456_v42 = vld [vmem:[%s9269_s5 + $0xac] ss:$16 sps:$4 sm:$0xff]   ;;  %v7461_v53 = vld [vmem:[%s9269_s5 + $0xe4] ss:$16 sps:$4 sm:$0xff]  }
  0x32   :  { %1056 = vmatpush1.bf16.msra.mxu0 %v7285_v34  ;;  %1087 = vmatprep.mubr.bf16.mxu0 %v9277_v2  ;;  %9314 = vst [vmem:[#allocation9_spill] sm:$0xff] %v7450_v3  ;;  %v7466_v54 = vld [vmem:[%s9269_s5 + $0xa8] ss:$16 sps:$4 sm:$0xff]   ;;  %v7472_v55 = vld [vmem:[%s9269_s5 + $0xcc] ss:$16 sps:$4 sm:$0xff]   ;;  %s331_s24 = sshra.s32 %s5650_s22, 3 }
  0x33   :  { %1057 = vmatprep.subr.bf16.mxu0 %v7290_v35  ;;  %823 = vmatmul.mubr.bf16.vlgmr.msra.gmra.mrb[0].mxu1 %v9277_v2  ;;  %v7479_v56 = vld [vmem:[%s9269_s5 + $0xe0] ss:$16 sps:$4 sm:$0xff]   ;;  %s344_s25 = sshra.s32 %s5653_s23, 3  ;;  %s334_s26 = sand.u32 7, %s5650_s22 }
  0x34   :  { %1097 = vmatpush1.bf16.msra.mxu1 %v7326_v40  ;;  %1128 = vmatprep.mubr.bf16.mxu1 %v9277_v2  ;;  %v7485_v2 = vld [vmem:[%s9269_s5 + $0xc8] ss:$16 sps:$4 sm:$0xff]   ;;  %s6274_s27 = sshll.u32 %s331_s24, 5  ;;  %s347_s0 = sand.u32 7, %s5653_s23 }
  0x35   :  { %1098 = vmatprep.subr.bf16.mxu1 %v7332_v41  ;;  %s337_s28 = sadd.s32 %s6274_s27, %s334_s26  ;;  %s6275_s14 = sshll.u32 %s344_s25, 5 }
  0x36   :  { %1058 = vmatpush1.bf16.msra.mxu0 %v7313_v38  ;;  %s338_s30 = scalar_lea.vmem %s9268_s4, %s337_s28  ;;  %s350_s17 = sadd.s32 %s6275_s14, %s347_s0 }
  0x37   :  { %1059 = vmatprep.subr.bf16.mxu0 %v7318_v39  ;;  %s351_s19 = scalar_lea.vmem %s9268_s4, %s350_s17  ;;  %s5611_s22 = sld [smem:[#allocation5 + $0x3]] }
  0x38   :  { %1099 = vmatpush1.bf16.msra.mxu1 %v7351_v45  ;;  %s102_s23 = sshra.s32 %s5608_s21, 3  ;;  %s105_s24 = sand.u32 7, %s5608_s21 }
  0x39   :  { %1100 = vmatprep.subr.bf16.mxu1 %v7368_v47  ;;  %s6260_s25 = sshll.u32 %s102_s23, 5  ;;  %s5659_s23 = sld [smem:[#allocation5 + $0x83]] }
  0x3a   :  { %1060 = vmatpush1.bf16.msra.mxu0 %v7338_v43  ;;  %s108_s27 = sadd.s32 %s6260_s25, %s105_s24 }
  0x3b   :  { %1061 = vmatprep.subr.bf16.mxu0 %v7343_v44  ;;  %s109_s13 = scalar_lea.vmem %s9265_s1, %s108_s27 }
  0x3c   :  { %1101 = vmatpush1.bf16.msra.mxu1 %v7383_v50 }
  0x3d   :  { %1102 = vmatprep.subr.bf16.mxu1 %v7394_v52  ;;  %s116_s26 = sshra.s32 %s5611_s22, 3  ;;  %s119_s28 = sand.u32 7, %s5611_s22 }
  0x3e   :  { %1062 = vmatpush1.bf16.msra.mxu0 %v7362_v46  ;;  %s5656_s22 = sld [smem:[#allocation5 + $0x82]] }
  0x3f   :  { %1063 = vmatprep.subr.bf16.mxu0 %v7378_v49 }
  0x40   :  { %1103 = vmatpush1.bf16.msra.mxu1 %v7414_v59 }
  0x41   :  { %1104 = vmatprep.subr.bf16.mxu1 %v7424_v60 }
  0x42   :  { %1064 = vmatpush1.bf16.msra.mxu0 %v7403_v57 }
  0x43   :  { %1065 = vmatprep.subr.bf16.mxu0 %v7409_v58 }
  0x44   :  { %1105 = vmatpush1.bf16.msra.mxu1 %v7442_v63  ;;  %s361_s16 = sand.u32 7, %s5656_s22 }
  0x45   :  { %1106 = vmatprep.subr.bf16.mxu1 %v7456_v42 }
  0x46   :  { %1066 = vmatpush1.bf16.msra.mxu0 %v7431_v61  ;;  %v7499_v61 = vld [vmem:[%s9269_s5 + $0xe8] ss:$16 sps:$4 sm:$0xff]  }
  0x47   :  { %1067 = vmatprep.subr.bf16.mxu0 %v7437_v62  ;;  %v7491_v62 = vld [vmem:[%s9269_s5 + $0xec] ss:$16 sps:$4 sm:$0xff]  }
  0x48   :  { %1107 = vmatpush1.bf16.msra.mxu1 %v7466_v54 }
  0x49   :  { %1108 = vmatprep.subr.bf16.mxu1 %v7472_v55 }
  0x4a   :  { %1068 = vmatpush1.bf16.msra.mxu0 %v7450_v3  ;;  %v9315_v3 = vmov 0  }
  0x4b   :  { %1069 = vmatprep.subr.bf16.mxu0 %v7461_v53 }
  0x4c   :  { %1109 = vmatpush1.bf16.msra.mxu1 %v7485_v2 }
  0x4d   :  { %1110 = vmatprep.subr.bf16.mxu1 %v7491_v62 }
  0x4e   :  { %1070 = vmatpush1.bf16.msra.mxu0 %v7479_v56 }
  0x4f   :  { %1364 = vmatprep.subr.bf16.mxu0 %v7025_v0  ;;  %v7549_v0 = vld [vmem:[%s9270_s6] sm:$0xf] }
  0x50   :  { %1111 = vmatpush1.bf16.msra.mxu1 %v7499_v61 }
  0x51   :  { %1088 = vmatmul.mubr.bf16.vlgmr.msra.gmra.mrb[4].mxu0 %v9315_v3  ;;  %1405 = vmatprep.subr.bf16.mxu1 %v7119_v7  ;;  %v110_v7 = vld [vmem:[%s109_s13] ss:$8 sm:$0xf] }
  0x52   :  { %1365 = vmatpush1.bf16.msra.mxu0 %v7030_v1  ;;  %1396 = vmatprep.mubr.bf16.mxu0 %v9315_v3  ;;  %v339_v1 = vld [vmem:[%s338_s30] ss:$8 sm:$0xf]  ;;  %s6261_s30 = sshll.u32 %s116_s26, 5 }
  0x53   :  { %1366 = vmatprep.subr.bf16.mxu0 %v7102_v4  ;;  %1129 = vmatmul.mubr.bf16.vlgmr.msra.gmra.mrb[4].mxu1 %v9315_v3  ;;  %v340_v4 = vadd.f32 %v339_v1, %v7549_v0  ;;  %s122_s14 = sadd.s32 %s6261_s30, %s119_s28  ;;  %s358_s30 = sshra.s32 %s5656_s22, 3 }
  0x54   :  { %1406 = vmatpush1.bf16.msra.mxu1 %v7124_v8  ;;  %1437 = vmatprep.mubr.bf16.mxu1 %v9315_v3  ;;  %v111_v8 = vadd.f32 %v110_v7, %v7388_v51  ;;  %s123_s17 = scalar_lea.vmem %s9265_s1, %s122_s14  ;;  %s372_s14 = sshra.s32 %s5659_s23, 3 }
  0x55   :  { %1407 = vmatprep.subr.bf16.mxu1 %v7143_v11  ;;  %341 = vst.msk [vmem:[#allocation3] ss:$8 sm:$0xf] %vm7371_vm0, %v340_v4  ;;  %v553_v11 = vld [vmem:[#allocation2] sm:$0xff]  ;;  %s375_s28 = sand.u32 7, %s5659_s23  ;;  %s6277_s13 = sshll.u32 %s372_s14, 5 }
  0x56   :  { %1367 = vmatpush1.bf16.msra.mxu0 %v7108_v5  ;;  %v352_v5 = vld [vmem:[%s351_s19] ss:$8 sm:$0xf]  ;;  %113 = vst.msk [vmem:[#allocation2 + $0x20] ss:$8 sm:$0xf] %vm7371_vm0, %v111_v8 }
  0x57   :  { %1368 = vmatprep.subr.bf16.mxu0 %v7114_v6  ;;  %v353_v6 = vadd.f32 %v352_v5, %v7549_v0  ;;  %s6276_s19 = sshll.u32 %s358_s30, 5  ;;  %s378_s30 = sadd.s32 %s6277_s13, %s375_s28 }
  0x58   :  { %1408 = vmatpush1.bf16.msra.mxu1 %v7148_v12  ;;  %v554_v12 = vld [vmem:[#allocation2 + $0x8] sm:$0xff]  ;;  %s364_s27 = sadd.s32 %s6276_s19, %s361_s16  ;;  %s379_s16 = scalar_lea.vmem %s9268_s4, %s378_s30 }
  0x59   :  { %1409 = vmatprep.subr.bf16.mxu1 %v7165_v15  ;;  %355 = vst.msk [vmem:[#allocation3 + $0x1] ss:$8 sm:$0xf] %vm7371_vm0, %v353_v6  ;;  %s365_s22 = scalar_lea.vmem %s9268_s4, %s364_s27  ;;  %s5614_s13 = sld [smem:[#allocation5 + $0x4]] }
  0x5a   :  { %1369 = vmatpush1.bf16.msra.mxu0 %v7130_v9  ;;  %v124_v9 = vld [vmem:[%s123_s17] ss:$8 sm:$0xf]  ;;  %s5617_s30 = sld [smem:[#allocation5 + $0x5]] }
  0x5b   :  { %1370 = vmatprep.subr.bf16.mxu0 %v7137_v10  ;;  %v125_v10 = vadd.f32 %v124_v9, %v7388_v51 }
  0x5c   :  { %1410 = vmatpush1.bf16.msra.mxu1 %v7172_v16 }
  0x5d   :  { %1411 = vmatprep.subr.bf16.mxu1 %v7178_v17  ;;  %127 = vst.msk [vmem:[#allocation2 + $0x21] ss:$8 sm:$0xf] %vm7371_vm0, %v125_v10 }
  0x5e   :  { %1371 = vmatpush1.bf16.msra.mxu0 %v7155_v13 }
  0x5f   :  { %1372 = vmatprep.subr.bf16.mxu0 %v7160_v14  ;;  %s130_s15 = sshra.s32 %s5614_s13, 3  ;;  %s133_s18 = sand.u32 7, %s5614_s13 }
  0x60   :  { %1412 = vmatpush1.bf16.msra.mxu1 %v7196_v20  ;;  %v859_v7 = vld [vmem:[#allocation3] sm:$0xff]  ;;  %v860_v8 = vld [vmem:[#allocation3 + $0x8] sm:$0xff]  ;;  %s6262_s23 = sshll.u32 %s130_s15, 5  ;;  %s144_s17 = sshra.s32 %s5617_s30, 3 }
  0x61   :  { %1413 = vmatprep.subr.bf16.mxu1 %v7202_v21  ;;  %v556_v21 = vld [vmem:[#allocation2 + $0x18] sm:$0xff]  ;;  %s136_s20 = sadd.s32 %s6262_s23, %s133_s18  ;;  %s147_s14 = sand.u32 7, %s5617_s30 }
  0x62   :  { %1373 = vmatpush1.bf16.msra.mxu0 %v7184_v18  ;;  %s137_s21 = scalar_lea.vmem %s9265_s1, %s136_s20  ;;  %s6263_s24 = sshll.u32 %s144_s17, 5 }
  0x63   :  { %1374 = vmatprep.subr.bf16.mxu0 %v7190_v19  ;;  %s150_s25 = sadd.s32 %s6263_s24, %s147_s14  ;;  %s5662_s20 = sld [smem:[#allocation5 + $0x84]] }
  0x64   :  { %1414 = vmatpush1.bf16.msra.mxu1 %v7220_v24  ;;  %s151_s29 = scalar_lea.vmem %s9265_s1, %s150_s25  ;;  %s5665_s14 = sld [smem:[#allocation5 + $0x85]] }
  0x65   :  { %1415 = vmatprep.subr.bf16.mxu1 %v7226_v25  ;;  %s5620_s18 = sld [smem:[#allocation5 + $0x6]]  ;;  %s5623_s23 = sld [smem:[#allocation5 + $0x7]] }
  0x66   :  { %1375 = vmatpush1.bf16.msra.mxu0 %v7208_v22 }
  0x67   :  { %1376 = vmatprep.subr.bf16.mxu0 %v7213_v23 }
  0x68   :  { %1416 = vmatpush1.bf16.msra.mxu1 %v7248_v28 }
  0x69   :  { %1417 = vmatprep.subr.bf16.mxu1 %v7254_v29 }
  0x6a   :  { %1377 = vmatpush1.bf16.msra.mxu0 %v7234_v26  ;;  %s400_s19 = sshra.s32 %s5665_s14, 3  ;;  %s403_s26 = sand.u32 7, %s5665_s14 }
  0x6b   :  { %1378 = vmatprep.subr.bf16.mxu0 %v7242_v27  ;;  %v555_v27 = vld [vmem:[#allocation2 + $0x10] sm:$0xff]  ;;  %s158_s17 = sshra.s32 %s5620_s18, 3 }
  0x6c   :  { %1418 = vmatpush1.bf16.msra.mxu1 %v7272_v32  ;;  %s6264_s14 = sshll.u32 %s158_s17, 5  ;;  %s5671_s17 = sld [smem:[#allocation5 + $0x87]] }
  0x6d   :  { %1419 = vmatprep.subr.bf16.mxu1 %v7278_v33 }
  0x6e   :  { %1379 = vmatpush1.bf16.msra.mxu0 %v7260_v30 }
  0x6f   :  { %1671 = vmatprep.subr.bf16.mxu0 %v7265_v31 }
  0x70   :  { %1420 = vmatpush1.bf16.msra.mxu1 %v7298_v36 }
  0x71   :  { %1712 = vmatprep.subr.bf16.mxu1 %v7304_v37 }
 0x104   :  { %v783_v13 = vpop.f32.mrb[0].mxu0 }
 0x105   :  { %v831_v14 = vadd.f32 %v783_v13, %v553_v11  ;;  %v785_v15 = vpop.f32.mrb[1].mxu0 }
 0x106   :  { %v832_v16 = vadd.f32 %v785_v15, %v554_v12  ;;  %v787_v17 = vpop.f32.mrb[2].mxu0  ;;  %v824_v22 = vpop.f32.mrb[0].mxu1 }
 0x107   :  { %v5730_v18 = vmul.f32 -1.442695, %v831_v14  ;;  %v788_v19 = vpop.f32.mrb[3].mxu0  ;;  %v826_v23 = vpop.f32.mrb[1].mxu1  ;;  %v833_v29 = vadd.f32 %v824_v22, %v555_v27 }
 0x108   :  { %v5731_v20 = vmul.f32 -1.442695, %v832_v16  ;;  %v834_v24 = vadd.f32 %v826_v23, %v556_v21  ;;  %v828_v25 = vpop.f32.mrb[2].mxu1 }
 0x109   :  { %6677 = vpow2.f32 %v5730_v18  ;;  %v829_v26 = vpop.f32.mrb[3].mxu1  ;;  %v862_v18 = vld [vmem:[#allocation3 + $0x18] sm:$0xff] }
 0x10a   :  { %6679 = vpow2.f32 %v5731_v20  ;;  %v5732_v28 = vmul.f32 -1.442695, %v834_v24  ;;  %v861_v24 = vld [vmem:[#allocation3 + $0x10] sm:$0xff] }
 0x10c   :  { %6681 = vpow2.f32 %v5732_v28 }
 0x10d   :  { %6683 = vtanh.f32 %v833_v29 }
 0x113   :  { %v6678_v30 = vpop.eup %6677 }
 0x114   :  { %v6680_v31 = vpop.eup %6679  ;;  %v838_v32 = vadd.f32 1.0, %v6678_v30 }
 0x115   :  { %v844_v33 = vadd.f32 1.0, %v6680_v31 }
 0x116   :  { %6685 = vrcp.f32 %v838_v32  ;;  %v6682_v36 = vpop.eup %6681 }
 0x117   :  { %6687 = vrcp.f32 %v844_v33  ;;  %v6684_v37 = vpop.eup %6683  ;;  %v851_v1 = vadd.f32 1.0, %v6682_v36 }
 0x119   :  { %6689 = vrcp.f32 %v851_v1  ;;  %v380_v1 = vld [vmem:[%s379_s16] ss:$8 sm:$0xf]  ;;  %s386_s16 = sshra.s32 %s5662_s20, 3 }
 0x11a   :  { %s6278_s24 = sshll.u32 %s386_s16, 5  ;;  %s172_s16 = sshra.s32 %s5623_s23, 3 }
 0x11b   :  { %s6265_s27 = sshll.u32 %s172_s16, 5 }
 0x120   :  { %v6686_v51 = vpop.eup %6685 }
 0x121   :  { %v6688_v4 = vpop.eup %6687  ;;  %v855_v5 = vmul.f32 %v6686_v51, %v6684_v37 }
 0x122   :  { %v854_v6 = vmul.f32 0.0, %v6688_v4  ;;  %v381_v4 = vadd.f32 %v380_v1, %v7549_v0 }
 0x123   :  { %v6690_v25 = vpop.eup %6689 }
 0x124   :  { %v7572_v9 = vadd.f32 %v855_v5, %v854_v6  ;;  %v1089_v10 = vpop.f32.mrb[4].mxu0  ;;  %v7703_v5 = vld [vmem:[%s9266_s2 + $0x64] ss:$16 sps:$4 sm:$0xff]   ;;  %v7708_v6 = vld [vmem:[%s9266_s2 + $0x6c] ss:$16 sps:$4 sm:$0xff]  }
 0x125   :  { %v1137_v11 = vadd.f32 %v1089_v10, %v859_v7  ;;  %v1091_v12 = vpop.f32.mrb[5].mxu0  ;;  %v7713_v7 = vld [vmem:[%s9266_s2 + $0x60] ss:$16 sps:$4 sm:$0xff]   ;;  %383 = vst.msk [vmem:[#allocation3 + $0x21] ss:$8 sm:$0xf] %vm7371_vm0, %v381_v4 }
 0x126   :  { %6691 = vtanh.f32 %v7572_v9  ;;  %v1138_v13 = vadd.f32 %v1091_v12, %v860_v8  ;;  %v1093_v14 = vpop.f32.mrb[6].mxu0  ;;  %v1130_v19 = vpop.f32.mrb[4].mxu1  ;;  %v7718_v8 = vld [vmem:[%s9266_s2 + $0x68] ss:$16 sps:$4 sm:$0xff]   ;;  %v7729_v10 = vld [vmem:[%s9266_s2 + $0x84] ss:$16 sps:$4 sm:$0xff]  }
 0x127   :  { %v5765_v15 = vmul.f32 -1.442695, %v1137_v11  ;;  %v1094_v16 = vpop.f32.mrb[7].mxu0  ;;  %v1132_v20 = vpop.f32.mrb[5].mxu1  ;;  %v1139_v28 = vadd.f32 %v1130_v19, %v861_v24  ;;  %v7734_v11 = vld [vmem:[%s9266_s2 + $0x8c] ss:$16 sps:$4 sm:$0xff]  }
 0x128   :  { %v5766_v17 = vmul.f32 -1.442695, %v1138_v13  ;;  %v1140_v21 = vadd.f32 %v1132_v20, %v862_v18  ;;  %v1134_v22 = vpop.f32.mrb[6].mxu1  ;;  %v7739_v12 = vld [vmem:[%s9266_s2 + $0x80] ss:$16 sps:$4 sm:$0xff]  }
 0x129   :  { %6693 = vpow2.f32 %v5765_v15  ;;  %v1135_v23 = vpop.f32.mrb[7].mxu1  ;;  %v7744_v13 = vld [vmem:[%s9266_s2 + $0x88] ss:$16 sps:$4 sm:$0xff]   ;;  %v7753_v14 = vld [vmem:[%s9266_s2 + $0xa0] ss:$16 sps:$4 sm:$0xff]  }
 0x12a   :  { %6695 = vpow2.f32 %v5766_v17  ;;  %v5767_v26 = vmul.f32 -1.442695, %v1140_v21  ;;  %v7758_v15 = vld [vmem:[%s9266_s2 + $0xa4] ss:$16 sps:$4 sm:$0xff]   ;;  %v7763_v16 = vld [vmem:[%s9266_s2 + $0xa8] ss:$16 sps:$4 sm:$0xff]  }
 0x12b   :  { %v7768_v17 = vld [vmem:[%s9266_s2 + $0xac] ss:$16 sps:$4 sm:$0xff]   ;;  %v7776_v18 = vld [vmem:[%s9266_s2 + $0xc4] ss:$16 sps:$4 sm:$0xff]   ;;  %v7787_v20 = vld [vmem:[%s9266_s2 + $0xc0] ss:$16 sps:$4 sm:$0xff]  }
 0x12c   :  { %6697 = vpow2.f32 %v5767_v26  ;;  %v7781_v19 = vld [vmem:[%s9266_s2 + $0xcc] ss:$16 sps:$4 sm:$0xff]   ;;  %v7792_v21 = vld [vmem:[%s9266_s2 + $0xc8] ss:$16 sps:$4 sm:$0xff]   ;;  %v7800_v22 = vld [vmem:[%s9266_s2 + $0xe4] ss:$16 sps:$4 sm:$0xff]  }
 0x12d   :  { %6699 = vtanh.f32 %v1139_v28  ;;  %v7805_v23 = vld [vmem:[%s9266_s2 + $0xec] ss:$16 sps:$4 sm:$0xff]   ;;  %v7811_v24 = vld [vmem:[%s9266_s2 + $0xe0] ss:$16 sps:$4 sm:$0xff]   ;;  %v7824_v26 = vld [vmem:[%s9269_s5 + $0x4] ss:$16 sps:$4 sm:$0xff]  }
 0x12e   :  { %v138_v28 = vld [vmem:[%s137_s21] ss:$8 sm:$0xf]  ;;  %s389_s21 = sand.u32 7, %s5662_s20  ;;  %s161_s20 = sand.u32 7, %s5620_s18 }
 0x12f   :  { %s392_s25 = sadd.s32 %s6278_s24, %s389_s21  ;;  %s175_s21 = sand.u32 7, %s5623_s23 }
 0x130   :  { %v6692_v27 = vpop.eup %6691  ;;  %s393_s0 = scalar_lea.vmem %s9268_s4, %s392_s25  ;;  %s178_s28 = sadd.s32 %s6265_s27, %s175_s21 }
 0x131   :  { %v858_v29 = vmul.f32 %v6692_v27, %v6690_v25  ;;  %v7816_v25 = vld [vmem:[%s9266_s2 + $0xe8] ss:$16 sps:$4 sm:$0xff]   ;;  %v7829_v27 = vld [vmem:[%s9269_s5 + $0xc] ss:$16 sps:$4 sm:$0xff]   ;;  %s5668_s23 = sld [smem:[#allocation5 + $0x86]]  ;;  %s431_s21 = sand.u32 7, %s5671_s17 }
 0x133   :  { %v6694_v30 = vpop.eup %6693  ;;  %1165 = vst [vmem:[%s9271_s7] sm:$0xff] %v858_v29  ;;  %v1171_v31 = vpack.c.bf16 %v858_v29, %v858_v29  ;;  %v7840_v29 = vld [vmem:[%s9267_s3] sm:$0xf] }
 0x134   :  { %v6696_v32 = vpop.eup %6695  ;;  %v1144_v33 = vadd.f32 1.0, %v6694_v30  ;;  %v139_v30 = vadd.f32 %v7840_v29, %v138_v28 }
 0x135   :  { %v1150_v36 = vadd.f32 1.0, %v6696_v32  ;;  %1397 = vmatmul.mubr.bf16.vlgmr.msra.gmra.mrb[8].mxu0 %v1171_v31  ;;  %1438 = vmatmul.mubr.bf16.vlgmr.msra.gmra.mrb[8].mxu1 %v1171_v31  ;;  %v152_v31 = vld [vmem:[%s151_s29] ss:$8 sm:$0xf]  ;;  %s6279_s29 = sshll.u32 %s400_s19, 5  ;;  %s164_s19 = sadd.s32 %s6264_s14, %s161_s20 }
 0x136   :  { %6701 = vrcp.f32 %v1144_v33  ;;  %1672 = vmatpush1.bf16.msra.mxu0 %v7285_v34  ;;  %1713 = vmatpush1.bf16.msra.mxu1 %v7326_v40  ;;  %v6698_v34 = vpop.eup %6697  ;;  %141 = vst.msk [vmem:[#allocation2 + $0x40] ss:$8 sm:$0xf] %vm7371_vm0, %v139_v30  ;;  %v153_v32 = vadd.f32 %v7840_v29, %v152_v31  ;;  %v1167_v33 = vld [vmem:[#allocation2 + $0x20] sm:$0xff] }
 0x137   :  { %6703 = vrcp.f32 %v1150_v36  ;;  %1673 = vmatprep.subr.bf16.mxu0 %v7290_v35  ;;  %1714 = vmatprep.subr.bf16.mxu1 %v7332_v41  ;;  %v6700_v37 = vpop.eup %6699  ;;  %v1157_v40 = vadd.f32 1.0, %v6698_v34  ;;  %v1168_v36 = vld [vmem:[#allocation2 + $0x28] sm:$0xff]  ;;  %s414_s27 = sshra.s32 %s5668_s23, 3  ;;  %s417_s30 = sand.u32 7, %s5668_s23 }
 0x138   :  { %1703 = vmatprep.mubr.bf16.mxu0 %v9315_v3  ;;  %1744 = vmatprep.mubr.bf16.mxu1 %v9315_v3  ;;  %155 = vst.msk [vmem:[#allocation2 + $0x41] ss:$8 sm:$0xf] %vm7371_vm0, %v153_v32 }
 0x139   :  { %6705 = vrcp.f32 %v1157_v40 }
 0x13a   :  { %1674 = vmatpush1.bf16.msra.mxu0 %v7313_v38  ;;  %1715 = vmatpush1.bf16.msra.mxu1 %v7351_v45 }
 0x13b   :  { %1675 = vmatprep.subr.bf16.mxu0 %v7318_v39  ;;  %1716 = vmatprep.subr.bf16.mxu1 %v7368_v47 }
 0x13e   :  { %1676 = vmatpush1.bf16.msra.mxu0 %v7338_v43  ;;  %1717 = vmatpush1.bf16.msra.mxu1 %v7383_v50  ;;  %v9316_v43 = vld [vmem:[#allocation7_spill] sm:$0xff] }
 0x13f   :  { %1677 = vmatprep.subr.bf16.mxu0 %v7343_v44  ;;  %1718 = vmatprep.subr.bf16.mxu1 %v7394_v52  ;;  %v9317_v44 = vld [vmem:[#allocation8_spill] sm:$0xff] }
 0x140   :  { %v6702_v35 = vpop.eup %6701  ;;  %v7626_v52 = vld [vmem:[%s9266_s2 + $0xc] ss:$16 sps:$4 sm:$0xff]  }
 0x141   :  { %v6704_v41 = vpop.eup %6703  ;;  %v1161_v38 = vmul.f32 %v6702_v35, %v6700_v37 }
 0x142   :  { %v1160_v51 = vmul.f32 0.0, %v6704_v41  ;;  %1678 = vmatpush1.bf16.msra.mxu0 %v7362_v46  ;;  %1719 = vmatpush1.bf16.msra.mxu1 %v7414_v59  ;;  %v9318_v46 = vld [vmem:[#allocation9_spill] sm:$0xff] }
 0x143   :  { %1679 = vmatprep.subr.bf16.mxu0 %v7378_v49  ;;  %1720 = vmatprep.subr.bf16.mxu1 %v7424_v60  ;;  %v6706_v45 = vpop.eup %6705  ;;  %v7645_v59 = vld [vmem:[%s9266_s2 + $0x24] ss:$16 sps:$4 sm:$0xff]   ;;  %v7650_v60 = vld [vmem:[%s9266_s2 + $0x2c] ss:$16 sps:$4 sm:$0xff]  }
 0x144   :  { %v7596_v39 = vadd.f32 %v1161_v38, %v1160_v51 }
 0x146   :  { %6707 = vtanh.f32 %v7596_v39  ;;  %1680 = vmatpush1.bf16.msra.mxu0 %v7403_v57  ;;  %1721 = vmatpush1.bf16.msra.mxu1 %v7442_v63  ;;  %v7631_v57 = vld [vmem:[%s9266_s2] ss:$16 sps:$4 sm:$0xff]  }
 0x147   :  { %1681 = vmatprep.subr.bf16.mxu0 %v7409_v58  ;;  %1722 = vmatprep.subr.bf16.mxu1 %v7456_v42  ;;  %v7636_v58 = vld [vmem:[%s9266_s2 + $0x8] ss:$16 sps:$4 sm:$0xff]   ;;  %v7672_v42 = vld [vmem:[%s9266_s2 + $0x44] ss:$16 sps:$4 sm:$0xff]  }
 0x148   :  { %v366_v63 = vld [vmem:[%s365_s22] ss:$8 sm:$0xf]  ;;  %s406_s22 = sadd.s32 %s6279_s29, %s403_s26  ;;  %s165_s26 = scalar_lea.vmem %s9265_s1, %s164_s19 }
 0x149   :  { %s407_s15 = scalar_lea.vmem %s9268_s4, %s406_s22  ;;  %s179_s22 = scalar_lea.vmem %s9265_s1, %s178_s28 }
 0x14a   :  { %1682 = vmatpush1.bf16.msra.mxu0 %v9316_v43  ;;  %1723 = vmatpush1.bf16.msra.mxu1 %v7466_v54  ;;  %v367_v54 = vadd.f32 %v366_v63, %v7549_v0  ;;  %v1169_v63 = vld [vmem:[#allocation2 + $0x30] sm:$0xff]  ;;  %s428_s28 = sshra.s32 %s5671_s17, 3  ;;  %s5629_s29 = sld [smem:[#allocation5 + $0x9]] }
 0x14b   :  { %1683 = vmatprep.subr.bf16.mxu0 %v9317_v44  ;;  %1724 = vmatprep.subr.bf16.mxu1 %v7472_v55  ;;  %v7686_v55 = vld [vmem:[%s9266_s2 + $0x40] ss:$16 sps:$4 sm:$0xff]  }
 0x14c   :  { %369 = vst.msk [vmem:[#allocation3 + $0x20] ss:$8 sm:$0xf] %vm7371_vm0, %v367_v54 }
 0x14e   :  { %1684 = vmatpush1.bf16.msra.mxu0 %v9318_v46  ;;  %1725 = vmatpush1.bf16.msra.mxu1 %v7485_v2  ;;  %v7621_v2 = vld [vmem:[%s9266_s2 + $0x4] ss:$16 sps:$4 sm:$0xff]  }
 0x14f   :  { %1685 = vmatprep.subr.bf16.mxu0 %v7461_v53  ;;  %1726 = vmatprep.subr.bf16.mxu1 %v7491_v62  ;;  %v7660_v62 = vld [vmem:[%s9266_s2 + $0x28] ss:$16 sps:$4 sm:$0xff]   ;;  %v7677_v53 = vld [vmem:[%s9266_s2 + $0x4c] ss:$16 sps:$4 sm:$0xff]  }
 0x150   :  { %v6708_v47 = vpop.eup %6707 }
 0x151   :  { %v1164_v49 = vmul.f32 %v6708_v47, %v6706_v45 }
 0x152   :  { %1686 = vmatpush1.bf16.msra.mxu0 %v7479_v56  ;;  %1727 = vmatpush1.bf16.msra.mxu1 %v7499_v61  ;;  %v7655_v61 = vld [vmem:[%s9266_s2 + $0x20] ss:$16 sps:$4 sm:$0xff]   ;;  %v7691_v56 = vld [vmem:[%s9266_s2 + $0x48] ss:$16 sps:$4 sm:$0xff]  }
 0x153   :  { %1166 = vst [vmem:[%s9274_s10] sm:$0xff] %v1164_v49  ;;  %v1478_v50 = vpack.c.bf16 %v1164_v49, %v1164_v49  ;;  %1980 = vmatprep.subr.bf16.mxu0 %v7621_v2  ;;  %2021 = vmatprep.subr.bf16.mxu1 %v7626_v52  ;;  %v1170_v49 = vld [vmem:[#allocation2 + $0x38] sm:$0xff] }
 0x155   :  { %1704 = vmatmul.mubr.bf16.vlgmr.msra.gmra.mrb[12].mxu0 %v1478_v50  ;;  %1745 = vmatmul.mubr.bf16.vlgmr.msra.gmra.mrb[12].mxu1 %v1478_v50 }
 0x156   :  { %2012 = vmatprep.mubr.bf16.mxu0 %v9315_v3  ;;  %2053 = vmatprep.mubr.bf16.mxu1 %v9315_v3 }
 0x157   :  { %1981 = vmatpush1.bf16.msra.mxu0 %v7631_v57  ;;  %2022 = vmatpush1.bf16.msra.mxu1 %v7636_v58 }
 0x158   :  { %1982 = vmatprep.subr.bf16.mxu0 %v7645_v59  ;;  %2023 = vmatprep.subr.bf16.mxu1 %v7650_v60 }
 0x15b   :  { %1983 = vmatpush1.bf16.msra.mxu0 %v7655_v61  ;;  %2024 = vmatpush1.bf16.msra.mxu1 %v7660_v62 }
 0x15c   :  { %1984 = vmatprep.subr.bf16.mxu0 %v7672_v42  ;;  %2025 = vmatprep.subr.bf16.mxu1 %v7677_v53 }
 0x15f   :  { %1985 = vmatpush1.bf16.msra.mxu0 %v7686_v55  ;;  %2026 = vmatpush1.bf16.msra.mxu1 %v7691_v56 }
 0x160   :  { %1986 = vmatprep.subr.bf16.mxu0 %v7703_v5  ;;  %2027 = vmatprep.subr.bf16.mxu1 %v7708_v6 }
 0x163   :  { %1987 = vmatpush1.bf16.msra.mxu0 %v7713_v7  ;;  %2028 = vmatpush1.bf16.msra.mxu1 %v7718_v8 }
 0x164   :  { %1988 = vmatprep.subr.bf16.mxu0 %v7729_v10  ;;  %2029 = vmatprep.subr.bf16.mxu1 %v7734_v11 }
 0x167   :  { %1989 = vmatpush1.bf16.msra.mxu0 %v7739_v12  ;;  %2030 = vmatpush1.bf16.msra.mxu1 %v7744_v13 }
 0x168   :  { %1990 = vmatprep.subr.bf16.mxu0 %v7758_v15  ;;  %2031 = vmatprep.subr.bf16.mxu1 %v7768_v17 }
 0x16b   :  { %1991 = vmatpush1.bf16.msra.mxu0 %v7753_v14  ;;  %2032 = vmatpush1.bf16.msra.mxu1 %v7763_v16 }
 0x16c   :  { %1992 = vmatprep.subr.bf16.mxu0 %v7776_v18  ;;  %2033 = vmatprep.subr.bf16.mxu1 %v7781_v19 }
 0x16f   :  { %1993 = vmatpush1.bf16.msra.mxu0 %v7787_v20  ;;  %2034 = vmatpush1.bf16.msra.mxu1 %v7792_v21 }
 0x170   :  { %1994 = vmatprep.subr.bf16.mxu0 %v7800_v22  ;;  %2035 = vmatprep.subr.bf16.mxu1 %v7805_v23 }
 0x173   :  { %1995 = vmatpush1.bf16.msra.mxu0 %v7811_v24  ;;  %2036 = vmatpush1.bf16.msra.mxu1 %v7816_v25 }
 0x174   :  { %2287 = vmatprep.subr.bf16.mxu0 %v7824_v26  ;;  %2328 = vmatprep.subr.bf16.mxu1 %v7829_v27 }
 0x208   :  { %v1398_v34 = vpop.f32.mrb[8].mxu0  ;;  %v1439_v37 = vpop.f32.mrb[8].mxu1 }
 0x209   :  { %v1446_v35 = vadd.f32 %v1398_v34, %v1167_v33  ;;  %v1400_v40 = vpop.f32.mrb[9].mxu0  ;;  %v1441_v41 = vpop.f32.mrb[9].mxu1  ;;  %v1448_v1 = vadd.f32 %v1439_v37, %v1169_v63 }
 0x20a   :  { %v1447_v38 = vadd.f32 %v1400_v40, %v1168_v36  ;;  %v1402_v51 = vpop.f32.mrb[10].mxu0  ;;  %v1443_v43 = vpop.f32.mrb[10].mxu1  ;;  %v1449_v50 = vadd.f32 %v1441_v41, %v1170_v49  ;;  %v1474_v41 = vld [vmem:[#allocation3 + $0x20] sm:$0xff] }
 0x20b   :  { %v5800_v44 = vmul.f32 -1.442695, %v1446_v35  ;;  %v1403_v45 = vpop.f32.mrb[11].mxu0  ;;  %v1444_v46 = vpop.f32.mrb[11].mxu1  ;;  %v1475_v51 = vld [vmem:[#allocation3 + $0x28] sm:$0xff] }
 0x20c   :  { %v5801_v47 = vmul.f32 -1.442695, %v1447_v38  ;;  %v5802_v54 = vmul.f32 -1.442695, %v1449_v50 }
 0x20d   :  { %6709 = vpow2.f32 %v5800_v44 }
 0x20e   :  { %6711 = vpow2.f32 %v5801_v47 }
 0x20f   :  { %6713 = vpow2.f32 %v5802_v54 }
 0x210   :  { %6715 = vtanh.f32 %v1448_v1 }
 0x217   :  { %v6710_v4 = vpop.eup %6709 }
 0x218   :  { %v6712_v28 = vpop.eup %6711  ;;  %v1453_v30 = vadd.f32 1.0, %v6710_v4 }
 0x219   :  { %v1459_v31 = vadd.f32 1.0, %v6712_v28  ;;  %v6714_v32 = vpop.eup %6713 }
 0x21a   :  { %6717 = vrcp.f32 %v1453_v30  ;;  %v6716_v33 = vpop.eup %6715  ;;  %v1466_v40 = vadd.f32 1.0, %v6714_v32 }
 0x21b   :  { %6719 = vrcp.f32 %v1459_v31  ;;  %v1476_v31 = vld [vmem:[#allocation3 + $0x30] sm:$0xff] }
 0x21c   :  { %6721 = vrcp.f32 %v1466_v40  ;;  %v7858_v40 = vld [vmem:[%s9269_s5] ss:$16 sps:$4 sm:$0xff]  }
 0x224   :  { %v6718_v36 = vpop.eup %6717 }
 0x225   :  { %v6720_v34 = vpop.eup %6719  ;;  %v1470_v35 = vmul.f32 %v6718_v36, %v6716_v33 }
 0x226   :  { %v1469_v38 = vmul.f32 %v6720_v34, %v7572_v9  ;;  %v1477_v9 = vld [vmem:[#allocation3 + $0x38] sm:$0xff]  ;;  %v6722_v32 = vpop.eup %6721 }
 0x228   :  { %v7852_v43 = vadd.f32 %v1470_v35, %v1469_v38  ;;  %v1705_v37 = vpop.f32.mrb[12].mxu0  ;;  %v1746_v44 = vpop.f32.mrb[12].mxu1  ;;  %v7863_v38 = vld [vmem:[%s9269_s5 + $0x8] ss:$16 sps:$4 sm:$0xff]  }
 0x229   :  { %v1753_v45 = vadd.f32 %v1705_v37, %v1474_v41  ;;  %v1707_v46 = vpop.f32.mrb[13].mxu0  ;;  %v1748_v47 = vpop.f32.mrb[13].mxu1  ;;  %v1755_v34 = vadd.f32 %v1746_v44, %v1476_v31  ;;  %v7871_v37 = vld [vmem:[%s9269_s5 + $0x24] ss:$16 sps:$4 sm:$0xff]   ;;  %v7876_v44 = vld [vmem:[%s9269_s5 + $0x2c] ss:$16 sps:$4 sm:$0xff]  }
 0x22a   :  { %6723 = vtanh.f32 %v7852_v43  ;;  %v1754_v49 = vadd.f32 %v1707_v46, %v1475_v51  ;;  %v1709_v50 = vpop.f32.mrb[14].mxu0  ;;  %v1750_v63 = vpop.f32.mrb[14].mxu1  ;;  %v1756_v30 = vadd.f32 %v1748_v47, %v1477_v9  ;;  %v7926_v9 = vld [vmem:[%s9269_s5 + $0x6c] ss:$16 sps:$4 sm:$0xff]   ;;  %v7933_v31 = vld [vmem:[%s9269_s5 + $0x60] ss:$16 sps:$4 sm:$0xff]  }
 0x22b   :  { %v5835_v54 = vmul.f32 -1.442695, %v1753_v45  ;;  %v1710_v1 = vpop.f32.mrb[15].mxu0  ;;  %v1751_v4 = vpop.f32.mrb[15].mxu1  ;;  %v7888_v50 = vld [vmem:[%s9269_s5 + $0x28] ss:$16 sps:$4 sm:$0xff]  }
 0x22c   :  { %v5836_v28 = vmul.f32 -1.442695, %v1754_v49  ;;  %v5837_v36 = vmul.f32 -1.442695, %v1756_v30  ;;  %v7883_v49 = vld [vmem:[%s9269_s5 + $0x20] ss:$16 sps:$4 sm:$0xff]  }
 0x22d   :  { %6725 = vpow2.f32 %v5835_v54  ;;  %v7895_v63 = vld [vmem:[%s9269_s5 + $0x44] ss:$16 sps:$4 sm:$0xff]   ;;  %v7900_v54 = vld [vmem:[%s9269_s5 + $0x4c] ss:$16 sps:$4 sm:$0xff]   ;;  %v7909_v1 = vld [vmem:[%s9269_s5 + $0x40] ss:$16 sps:$4 sm:$0xff]  }
 0x22e   :  { %6727 = vpow2.f32 %v5836_v28  ;;  %v7914_v4 = vld [vmem:[%s9269_s5 + $0x48] ss:$16 sps:$4 sm:$0xff]   ;;  %v7921_v28 = vld [vmem:[%s9269_s5 + $0x64] ss:$16 sps:$4 sm:$0xff]   ;;  %9319 = vst [vmem:[#allocation7_spill] sm:$0xff] %v7926_v9 }
 0x22f   :  { %6729 = vpow2.f32 %v5837_v36  ;;  %v7945_v36 = vld [vmem:[%s9269_s5 + $0x84] ss:$16 sps:$4 sm:$0xff]  }
 0x230   :  { %6731 = vtanh.f32 %v1755_v34  ;;  %v7950_v34 = vld [vmem:[%s9269_s5 + $0x8c] ss:$16 sps:$4 sm:$0xff]  }
 0x234   :  { %v6724_v33 = vpop.eup %6723 }
 0x235   :  { %v1473_v35 = vmul.f32 %v6724_v33, %v6722_v32  ;;  %v7938_v32 = vld [vmem:[%s9269_s5 + $0x68] ss:$16 sps:$4 sm:$0xff]  }
 0x237   :  { %v6726_v41 = vpop.eup %6725  ;;  %1781 = vst [vmem:[%s9271_s7 + $0x8] sm:$0xff] %v1473_v35  ;;  %v1787_v51 = vpack.c.bf16 %v1473_v35, %v1473_v35 }
 0x238   :  { %v6728_v45 = vpop.eup %6727  ;;  %v1760_v46 = vadd.f32 1.0, %v6726_v41 }
 0x239   :  { %v1766_v47 = vadd.f32 1.0, %v6728_v45  ;;  %2013 = vmatmul.mubr.bf16.vlgmr.msra.gmra.mrb[16].mxu0 %v1787_v51  ;;  %2054 = vmatmul.mubr.bf16.vlgmr.msra.gmra.mrb[16].mxu1 %v1787_v51  ;;  %v6730_v30 = vpop.eup %6729 }
 0x23a   :  { %6733 = vrcp.f32 %v1760_v46  ;;  %2288 = vmatpush1.bf16.msra.mxu0 %v7858_v40  ;;  %2329 = vmatpush1.bf16.msra.mxu1 %v7863_v38  ;;  %v6732_v33 = vpop.eup %6731  ;;  %v1773_v45 = vadd.f32 1.0, %v6730_v30  ;;  %v7975_v30 = vld [vmem:[%s9269_s5 + $0xac] ss:$16 sps:$4 sm:$0xff]  }
 0x23b   :  { %6735 = vrcp.f32 %v1766_v47  ;;  %2289 = vmatprep.subr.bf16.mxu0 %v7871_v37  ;;  %2330 = vmatprep.subr.bf16.mxu1 %v7876_v44  ;;  %v7958_v47 = vld [vmem:[%s9269_s5 + $0x80] ss:$16 sps:$4 sm:$0xff]   ;;  %9323 = vst [vmem:[#allocation11_spill] sm:$0xff] %v7975_v30 }
 0x23c   :  { %2319 = vmatprep.mubr.bf16.mxu0 %v9315_v3  ;;  %2360 = vmatprep.mubr.bf16.mxu1 %v9315_v3  ;;  %9320 = vst [vmem:[#allocation8_spill] sm:$0xff] %v7958_v47  ;;  %6737 = vrcp.f32 %v1773_v45  ;;  %v8002_v45 = vld [vmem:[%s9269_s5 + $0xcc] ss:$16 sps:$4 sm:$0xff]  }
 0x23d   :  { %9327 = vst [vmem:[#allocation15_spill] sm:$0xff] %v8002_v45 }
 0x23e   :  { %2290 = vmatpush1.bf16.msra.mxu0 %v7883_v49  ;;  %2331 = vmatpush1.bf16.msra.mxu1 %v7888_v50 }
 0x23f   :  { %2291 = vmatprep.subr.bf16.mxu0 %v7895_v63  ;;  %2332 = vmatprep.subr.bf16.mxu1 %v7900_v54 }
 0x242   :  { %2292 = vmatpush1.bf16.msra.mxu0 %v7909_v1  ;;  %2333 = vmatpush1.bf16.msra.mxu1 %v7914_v4 }
 0x243   :  { %2293 = vmatprep.subr.bf16.mxu0 %v7921_v28  ;;  %2334 = vmatprep.subr.bf16.mxu1 %v7926_v9  ;;  %v7963_v9 = vld [vmem:[%s9269_s5 + $0x88] ss:$16 sps:$4 sm:$0xff]  }
 0x244   :  { %v6734_v35 = vpop.eup %6733  ;;  %9321 = vst [vmem:[#allocation9_spill] sm:$0xff] %v7963_v9 }
 0x245   :  { %v6736_v41 = vpop.eup %6735  ;;  %v1777_v51 = vmul.f32 %v6734_v35, %v6732_v33  ;;  %v7985_v35 = vld [vmem:[%s9269_s5 + $0xa0] ss:$16 sps:$4 sm:$0xff]  }
 0x246   :  { %v1776_v46 = vmul.f32 %v6736_v41, %v7596_v39  ;;  %2294 = vmatpush1.bf16.msra.mxu0 %v7933_v31  ;;  %2335 = vmatpush1.bf16.msra.mxu1 %v7938_v32  ;;  %v7970_v39 = vld [vmem:[%s9269_s5 + $0xa4] ss:$16 sps:$4 sm:$0xff]   ;;  %9324 = vst [vmem:[#allocation12_spill] sm:$0xff] %v7985_v35  ;;  %v7990_v41 = vld [vmem:[%s9269_s5 + $0xa8] ss:$16 sps:$4 sm:$0xff]  }
 0x247   :  { %2295 = vmatprep.subr.bf16.mxu0 %v7945_v36  ;;  %2336 = vmatprep.subr.bf16.mxu1 %v7950_v34  ;;  %9322 = vst [vmem:[#allocation10_spill] sm:$0xff] %v7970_v39  ;;  %9325 = vst [vmem:[#allocation13_spill] sm:$0xff] %v7990_v41 }
 0x248   :  { %v7977_v33 = vadd.f32 %v1777_v51, %v1776_v46  ;;  %v7997_v51 = vld [vmem:[%s9269_s5 + $0xc4] ss:$16 sps:$4 sm:$0xff]   ;;  %v8009_v46 = vld [vmem:[%s9269_s5 + $0xc0] ss:$16 sps:$4 sm:$0xff]  }
 0x249   :  { %9326 = vst [vmem:[#allocation14_spill] sm:$0xff] %v7997_v51 }
 0x24a   :  { %6739 = vtanh.f32 %v7977_v33  ;;  %2296 = vmatpush1.bf16.msra.mxu0 %v7958_v47  ;;  %2337 = vmatpush1.bf16.msra.mxu1 %v7963_v9 }
 0x24b   :  { %2297 = vmatprep.subr.bf16.mxu0 %v7970_v39  ;;  %2338 = vmatprep.subr.bf16.mxu1 %v7975_v30  ;;  %v8014_v30 = vld [vmem:[%s9269_s5 + $0xc8] ss:$16 sps:$4 sm:$0xff]   ;;  %v6738_v39 = vpop.eup %6737 }
 0x24c   :  { %9328 = vst [vmem:[#allocation16_spill] sm:$0xff] %v8014_v30 }
 0x24e   :  { %2298 = vmatpush1.bf16.msra.mxu0 %v7985_v35  ;;  %2339 = vmatpush1.bf16.msra.mxu1 %v7990_v41  ;;  %v8021_v35 = vld [vmem:[%s9269_s5 + $0xe4] ss:$16 sps:$4 sm:$0xff]   ;;  %v8026_v41 = vld [vmem:[%s9269_s5 + $0xec] ss:$16 sps:$4 sm:$0xff]  }
 0x24f   :  { %2299 = vmatprep.subr.bf16.mxu0 %v7997_v51  ;;  %2340 = vmatprep.subr.bf16.mxu1 %v8002_v45  ;;  %v8033_v51 = vld [vmem:[%s9269_s5 + $0xe0] ss:$16 sps:$4 sm:$0xff]   ;;  %v8038_v45 = vld [vmem:[%s9269_s5 + $0xe8] ss:$16 sps:$4 sm:$0xff]  }
 0x252   :  { %2300 = vmatpush1.bf16.msra.mxu0 %v8009_v46  ;;  %2341 = vmatpush1.bf16.msra.mxu1 %v8014_v30 }
 0x253   :  { %2301 = vmatprep.subr.bf16.mxu0 %v8021_v35  ;;  %2342 = vmatprep.subr.bf16.mxu1 %v8026_v41 }
 0x254   :  { %v6740_v9 = vpop.eup %6739 }
 0x255   :  { %v1780_v47 = vmul.f32 %v6740_v9, %v6738_v39 }
 0x256   :  { %2302 = vmatpush1.bf16.msra.mxu0 %v8033_v51  ;;  %2343 = vmatpush1.bf16.msra.mxu1 %v8038_v45 }
 0x257   :  { %1782 = vst [vmem:[%s9274_s10 + $0x8] sm:$0xff] %v1780_v47  ;;  %v2094_v30 = vpack.c.bf16 %v1780_v47, %v1780_v47  ;;  %2596 = vmatprep.subr.bf16.mxu0 %v7621_v2  ;;  %2637 = vmatprep.subr.bf16.mxu1 %v7626_v52  ;;  %v394_v2 = vld [vmem:[%s393_s0] ss:$8 sm:$0xf]  ;;  %s5626_s0 = sld [smem:[#allocation5 + $0x8]] }
 0x258   :  { %v395_v52 = vadd.f32 %v394_v2, %v7549_v0 }
 0x259   :  { %2320 = vmatmul.mubr.bf16.vlgmr.msra.gmra.mrb[20].mxu0 %v2094_v30  ;;  %2361 = vmatmul.mubr.bf16.vlgmr.msra.gmra.mrb[20].mxu1 %v2094_v30 }
 0x25a   :  { %2597 = vmatpush1.bf16.msra.mxu0 %v7631_v57  ;;  %2638 = vmatpush1.bf16.msra.mxu1 %v7636_v58  ;;  %v408_v57 = vld [vmem:[%s407_s15] ss:$8 sm:$0xf]  ;;  %397 = vst.msk [vmem:[#allocation3 + $0x40] ss:$8 sm:$0xf] %vm7371_vm0, %v395_v52 }
 0x25b   :  { %2598 = vmatprep.subr.bf16.mxu0 %v7645_v59  ;;  %2639 = vmatprep.subr.bf16.mxu1 %v7650_v60  ;;  %v409_v58 = vadd.f32 %v408_v57, %v7549_v0  ;;  %v166_v59 = vld [vmem:[%s165_s26] ss:$8 sm:$0xf]  ;;  %s6280_s15 = sshll.u32 %s414_s27, 5  ;;  %s6281_s26 = sshll.u32 %s428_s28, 5 }
 0x25c   :  { %2628 = vmatprep.mubr.bf16.mxu0 %v9315_v3  ;;  %2669 = vmatprep.mubr.bf16.mxu1 %v9315_v3  ;;  %v167_v0 = vadd.f32 %v7840_v29, %v166_v59  ;;  %v180_v60 = vld [vmem:[%s179_s22] ss:$8 sm:$0xf]  ;;  %s420_s19 = sadd.s32 %s6280_s15, %s417_s30  ;;  %s434_s27 = sadd.s32 %s6281_s26, %s431_s21 }
 0x25d   :  { %411 = vst.msk [vmem:[#allocation3 + $0x41] ss:$8 sm:$0xf] %vm7371_vm0, %v409_v58  ;;  %s421_s23 = scalar_lea.vmem %s9268_s4, %s420_s19  ;;  %s435_s18 = scalar_lea.vmem %s9268_s4, %s434_s27 }
 0x25e   :  { %2599 = vmatpush1.bf16.msra.mxu0 %v7655_v61  ;;  %2640 = vmatpush1.bf16.msra.mxu1 %v7660_v62  ;;  %169 = vst.msk [vmem:[#allocation2 + $0x60] ss:$8 sm:$0xf] %vm7371_vm0, %v167_v0  ;;  %v181_v61 = vadd.f32 %v7840_v29, %v180_v60  ;;  %v1783_v62 = vld [vmem:[#allocation2 + $0x40] sm:$0xff]  ;;  %s186_s17 = sshra.s32 %s5626_s0, 3  ;;  %s189_s22 = sand.u32 7, %s5626_s0 }
 0x25f   :  { %2600 = vmatprep.subr.bf16.mxu0 %v7672_v42  ;;  %2641 = vmatprep.subr.bf16.mxu1 %v7677_v53  ;;  %v1784_v42 = vld [vmem:[#allocation2 + $0x48] sm:$0xff]  ;;  %s6266_s13 = sshll.u32 %s186_s17, 5  ;;  %s200_s30 = sshra.s32 %s5629_s29, 3 }
 0x260   :  { %183 = vst.msk [vmem:[#allocation2 + $0x61] ss:$8 sm:$0xf] %vm7371_vm0, %v181_v61  ;;  %s192_s28 = sadd.s32 %s6266_s13, %s189_s22  ;;  %s203_s15 = sand.u32 7, %s5629_s29 }
 0x261   :  { %s193_s14 = scalar_lea.vmem %s9265_s1, %s192_s28  ;;  %s6267_s16 = sshll.u32 %s200_s30, 5 }
 0x262   :  { %2601 = vmatpush1.bf16.msra.mxu0 %v7686_v55  ;;  %2642 = vmatpush1.bf16.msra.mxu1 %v7691_v56  ;;  %s206_s19 = sadd.s32 %s6267_s16, %s203_s15  ;;  %s5674_s13 = sld [smem:[#allocation5 + $0x88]] }
 0x263   :  { %2602 = vmatprep.subr.bf16.mxu0 %v7703_v5  ;;  %2643 = vmatprep.subr.bf16.mxu1 %v7708_v6  ;;  %s207_s25 = scalar_lea.vmem %s9265_s1, %s206_s19  ;;  %s5677_s30 = sld [smem:[#allocation5 + $0x89]] }
 0x264   :  { %v2090_v30 = vld [vmem:[#allocation3 + $0x40] sm:$0xff]  ;;  %v2091_v2 = vld [vmem:[#allocation3 + $0x48] sm:$0xff]  ;;  %s5632_s29 = sld [smem:[#allocation5 + $0xa]]  ;;  %s5635_s17 = sld [smem:[#allocation5 + $0xb]] }
 0x266   :  { %2603 = vmatpush1.bf16.msra.mxu0 %v7713_v7  ;;  %2644 = vmatpush1.bf16.msra.mxu1 %v7718_v8 }
 0x267   :  { %2604 = vmatprep.subr.bf16.mxu0 %v7729_v10  ;;  %2645 = vmatprep.subr.bf16.mxu1 %v7734_v11 }
 0x268   :  { %s442_s28 = sshra.s32 %s5674_s13, 3 }
 0x269   :  { %s456_s15 = sshra.s32 %s5677_s30, 3  ;;  %s6282_s20 = sshll.u32 %s442_s28, 5 }
 0x26a   :  { %2605 = vmatpush1.bf16.msra.mxu0 %v7739_v12  ;;  %2646 = vmatpush1.bf16.msra.mxu1 %v7744_v13  ;;  %s459_s16 = sand.u32 7, %s5677_s30  ;;  %s214_s22 = sshra.s32 %s5632_s29, 3 }
 0x26b   :  { %2606 = vmatprep.subr.bf16.mxu0 %v7758_v15  ;;  %2647 = vmatprep.subr.bf16.mxu1 %v7768_v17  ;;  %v1786_v15 = vld [vmem:[#allocation2 + $0x58] sm:$0xff]  ;;  %v1785_v17 = vld [vmem:[#allocation2 + $0x50] sm:$0xff]  ;;  %s6268_s30 = sshll.u32 %s214_s22, 5  ;;  %s228_s28 = sshra.s32 %s5635_s17, 3 }
 0x26c   :  { %s6269_s19 = sshll.u32 %s228_s28, 5  ;;  %s5680_s22 = sld [smem:[#allocation5 + $0x8a]] }
 0x26e   :  { %2607 = vmatpush1.bf16.msra.mxu0 %v7753_v14  ;;  %2648 = vmatpush1.bf16.msra.mxu1 %v7763_v16 }
 0x26f   :  { %2608 = vmatprep.subr.bf16.mxu0 %v7776_v18  ;;  %2649 = vmatprep.subr.bf16.mxu1 %v7781_v19 }
 0x272   :  { %2609 = vmatpush1.bf16.msra.mxu0 %v7787_v20  ;;  %2650 = vmatpush1.bf16.msra.mxu1 %v7792_v21 }
 0x273   :  { %2610 = vmatprep.subr.bf16.mxu0 %v7800_v22  ;;  %2651 = vmatprep.subr.bf16.mxu1 %v7805_v23 }
 0x276   :  { %2611 = vmatpush1.bf16.msra.mxu0 %v7811_v24  ;;  %2652 = vmatpush1.bf16.msra.mxu1 %v7816_v25 }
 0x277   :  { %2903 = vmatprep.subr.bf16.mxu0 %v7824_v26  ;;  %2944 = vmatprep.subr.bf16.mxu1 %v7829_v27 }
 0x30c   :  { %v2014_v53 = vpop.f32.mrb[16].mxu0  ;;  %v2055_v55 = vpop.f32.mrb[16].mxu1 }
 0x30d   :  { %v2062_v56 = vadd.f32 %v2014_v53, %v1783_v62  ;;  %v2016_v5 = vpop.f32.mrb[17].mxu0  ;;  %v2057_v6 = vpop.f32.mrb[17].mxu1  ;;  %v2064_v19 = vadd.f32 %v2055_v55, %v1785_v17 }
 0x30e   :  { %v2063_v7 = vadd.f32 %v2016_v5, %v1784_v42  ;;  %v2018_v8 = vpop.f32.mrb[18].mxu0  ;;  %v2059_v10 = vpop.f32.mrb[18].mxu1  ;;  %v2065_v16 = vadd.f32 %v2057_v6, %v1786_v15 }
 0x30f   :  { %v5870_v11 = vmul.f32 -1.442695, %v2062_v56  ;;  %v2019_v12 = vpop.f32.mrb[19].mxu0  ;;  %v2060_v13 = vpop.f32.mrb[19].mxu1 }
 0x310   :  { %v5871_v14 = vmul.f32 -1.442695, %v2063_v7  ;;  %v5872_v18 = vmul.f32 -1.442695, %v2065_v16  ;;  %v2092_v7 = vld [vmem:[#allocation3 + $0x50] sm:$0xff] }
 0x311   :  { %6741 = vpow2.f32 %v5870_v11 }
 0x312   :  { %6743 = vpow2.f32 %v5871_v14 }
 0x313   :  { %6745 = vpow2.f32 %v5872_v18 }
 0x314   :  { %6747 = vtanh.f32 %v2064_v19 }
 0x31b   :  { %v6742_v20 = vpop.eup %6741 }
 0x31c   :  { %v6744_v21 = vpop.eup %6743  ;;  %v2069_v22 = vadd.f32 1.0, %v6742_v20 }
 0x31d   :  { %v2075_v23 = vadd.f32 1.0, %v6744_v21  ;;  %v6746_v24 = vpop.eup %6745 }
 0x31e   :  { %6749 = vrcp.f32 %v2069_v22  ;;  %v6748_v25 = vpop.eup %6747  ;;  %v2082_v47 = vadd.f32 1.0, %v6746_v24 }
 0x31f   :  { %6751 = vrcp.f32 %v2075_v23 }
 0x320   :  { %6753 = vrcp.f32 %v2082_v47  ;;  %v8209_v47 = vld [vmem:[%s9266_s2 + $0x44] ss:$16 sps:$4 sm:$0xff]  }
 0x328   :  { %v6750_v26 = vpop.eup %6749 }
 0x329   :  { %v6752_v27 = vpop.eup %6751  ;;  %v2086_v9 = vmul.f32 %v6750_v26, %v6748_v25  ;;  %v8187_v25 = vld [vmem:[%s9266_s2 + $0x2c] ss:$16 sps:$4 sm:$0xff]   ;;  %v8192_v26 = vld [vmem:[%s9266_s2 + $0x20] ss:$16 sps:$4 sm:$0xff]  }
 0x32a   :  { %v2085_v39 = vmul.f32 %v6752_v27, %v7852_v43  ;;  %v2093_v43 = vld [vmem:[#allocation3 + $0x58] sm:$0xff]  ;;  %v6754_v8 = vpop.eup %6753 }
 0x32b   :  { %v8197_v27 = vld [vmem:[%s9266_s2 + $0x28] ss:$16 sps:$4 sm:$0xff]  }
 0x32c   :  { %v8108_v52 = vadd.f32 %v2086_v9, %v2085_v39  ;;  %v2321_v57 = vpop.f32.mrb[20].mxu0  ;;  %v2362_v58 = vpop.f32.mrb[20].mxu1  ;;  %v422_v9 = vld [vmem:[%s421_s23] ss:$8 sm:$0xf] }
 0x32d   :  { %v2369_v59 = vadd.f32 %v2321_v57, %v2090_v30  ;;  %v2323_v0 = vpop.f32.mrb[21].mxu0  ;;  %v2364_v60 = vpop.f32.mrb[21].mxu1  ;;  %v2371_v12 = vadd.f32 %v2362_v58, %v2092_v7  ;;  %v8214_v39 = vld [vmem:[%s9266_s2 + $0x4c] ss:$16 sps:$4 sm:$0xff]   ;;  %v8219_v30 = vld [vmem:[%s9270_s6] sm:$0xf] }
 0x32e   :  { %6755 = vtanh.f32 %v8108_v52  ;;  %v2370_v61 = vadd.f32 %v2323_v0, %v2091_v2  ;;  %v2325_v62 = vpop.f32.mrb[22].mxu0  ;;  %v2366_v42 = vpop.f32.mrb[22].mxu1  ;;  %v2372_v6 = vadd.f32 %v2364_v60, %v2093_v43  ;;  %v423_v2 = vadd.f32 %v8219_v30, %v422_v9  ;;  %v8228_v57 = vld [vmem:[%s9266_s2 + $0x40] ss:$16 sps:$4 sm:$0xff]   ;;  %v8233_v58 = vld [vmem:[%s9266_s2 + $0x48] ss:$16 sps:$4 sm:$0xff]  }
 0x32f   :  { %v5905_v53 = vmul.f32 -1.442695, %v2369_v59  ;;  %v2326_v55 = vpop.f32.mrb[23].mxu0  ;;  %v2367_v56 = vpop.f32.mrb[23].mxu1  ;;  %v8245_v60 = vld [vmem:[%s9266_s2 + $0x64] ss:$16 sps:$4 sm:$0xff]  }
 0x330   :  { %v5906_v5 = vmul.f32 -1.442695, %v2370_v61  ;;  %v5907_v11 = vmul.f32 -1.442695, %v2372_v6  ;;  %v8250_v61 = vld [vmem:[%s9266_s2 + $0x6c] ss:$16 sps:$4 sm:$0xff]  }
 0x331   :  { %6757 = vpow2.f32 %v5905_v53  ;;  %425 = vst.msk [vmem:[#allocation3 + $0x60] ss:$8 sm:$0xf] %vm7371_vm0, %v423_v2  ;;  %v436_v59 = vld [vmem:[%s435_s18] ss:$8 sm:$0xf] }
 0x332   :  { %6759 = vpow2.f32 %v5906_v5  ;;  %v437_v0 = vadd.f32 %v8219_v30, %v436_v59  ;;  %v8255_v62 = vld [vmem:[%s9266_s2 + $0x60] ss:$16 sps:$4 sm:$0xff]   ;;  %v8260_v42 = vld [vmem:[%s9266_s2 + $0x68] ss:$16 sps:$4 sm:$0xff]   ;;  %v8271_v53 = vld [vmem:[%s9266_s2 + $0x84] ss:$16 sps:$4 sm:$0xff]  }
 0x333   :  { %6761 = vpow2.f32 %v5907_v11  ;;  %v8276_v55 = vld [vmem:[%s9266_s2 + $0x8c] ss:$16 sps:$4 sm:$0xff]   ;;  %v8281_v56 = vld [vmem:[%s9266_s2 + $0x80] ss:$16 sps:$4 sm:$0xff]   ;;  %v8286_v5 = vld [vmem:[%s9266_s2 + $0x88] ss:$16 sps:$4 sm:$0xff]  }
 0x334   :  { %6763 = vtanh.f32 %v2371_v12  ;;  %439 = vst.msk [vmem:[#allocation3 + $0x61] ss:$8 sm:$0xf] %vm7371_vm0, %v437_v0  ;;  %v8295_v43 = vld [vmem:[%s9266_s2 + $0xa0] ss:$16 sps:$4 sm:$0xff]   ;;  %s445_s18 = sand.u32 7, %s5674_s13 }
 0x335   :  { %v8300_v6 = vld [vmem:[%s9266_s2 + $0xa4] ss:$16 sps:$4 sm:$0xff]   ;;  %v8305_v7 = vld [vmem:[%s9266_s2 + $0xa8] ss:$16 sps:$4 sm:$0xff]   ;;  %v8323_v11 = vld [vmem:[%s9266_s2 + $0xcc] ss:$16 sps:$4 sm:$0xff]  }
 0x336   :  { %v8329_v12 = vld [vmem:[%s9266_s2 + $0xc0] ss:$16 sps:$4 sm:$0xff]   ;;  %s217_s13 = sand.u32 7, %s5632_s29 }
 0x338   :  { %v6756_v10 = vpop.eup %6755 }
 0x339   :  { %v2089_v13 = vmul.f32 %v6756_v10, %v6754_v8  ;;  %v8310_v8 = vld [vmem:[%s9266_s2 + $0xac] ss:$16 sps:$4 sm:$0xff]   ;;  %v8318_v10 = vld [vmem:[%s9266_s2 + $0xc4] ss:$16 sps:$4 sm:$0xff]  }
 0x33b   :  { %v6758_v14 = vpop.eup %6757  ;;  %2397 = vst [vmem:[%s9271_s7 + $0x10] sm:$0xff] %v2089_v13  ;;  %v2403_v15 = vpack.c.bf16 %v2089_v13, %v2089_v13  ;;  %v8334_v13 = vld [vmem:[%s9266_s2 + $0xc8] ss:$16 sps:$4 sm:$0xff]  }
 0x33c   :  { %v6760_v16 = vpop.eup %6759  ;;  %v2376_v17 = vadd.f32 1.0, %v6758_v14  ;;  %v8342_v14 = vld [vmem:[%s9266_s2 + $0xe4] ss:$16 sps:$4 sm:$0xff]  }
 0x33d   :  { %v2382_v18 = vadd.f32 1.0, %v6760_v16  ;;  %2629 = vmatmul.mubr.bf16.vlgmr.msra.gmra.mrb[24].mxu0 %v2403_v15  ;;  %2670 = vmatmul.mubr.bf16.vlgmr.msra.gmra.mrb[24].mxu1 %v2403_v15  ;;  %v8347_v15 = vld [vmem:[%s9266_s2 + $0xec] ss:$16 sps:$4 sm:$0xff]   ;;  %v8353_v16 = vld [vmem:[%s9266_s2 + $0xe0] ss:$16 sps:$4 sm:$0xff]  }
 0x33e   :  { %6765 = vrcp.f32 %v2376_v17  ;;  %2904 = vmatpush1.bf16.msra.mxu0 %v7858_v40  ;;  %2945 = vmatpush1.bf16.msra.mxu1 %v7863_v38  ;;  %v6762_v40 = vpop.eup %6761  ;;  %v8358_v17 = vld [vmem:[%s9266_s2 + $0xe8] ss:$16 sps:$4 sm:$0xff]  }
 0x33f   :  { %6767 = vrcp.f32 %v2382_v18  ;;  %2905 = vmatprep.subr.bf16.mxu0 %v7871_v37  ;;  %2946 = vmatprep.subr.bf16.mxu1 %v7876_v44  ;;  %v6764_v38 = vpop.eup %6763  ;;  %v9329_v37 = vld [vmem:[#allocation7_spill] sm:$0xff] }
 0x340   :  { %2935 = vmatprep.mubr.bf16.mxu0 %v9315_v3  ;;  %2976 = vmatprep.mubr.bf16.mxu1 %v9315_v3  ;;  %v8366_v18 = vld [vmem:[%s9269_s5 + $0x4] ss:$16 sps:$4 sm:$0xff]  }
 0x342   :  { %2906 = vmatpush1.bf16.msra.mxu0 %v7883_v49  ;;  %2947 = vmatpush1.bf16.msra.mxu1 %v7888_v50  ;;  %v2389_v49 = vadd.f32 1.0, %v6762_v40  ;;  %v8371_v40 = vld [vmem:[%s9269_s5 + $0xc] ss:$16 sps:$4 sm:$0xff]  }
 0x343   :  { %2907 = vmatprep.subr.bf16.mxu0 %v7895_v63  ;;  %2948 = vmatprep.subr.bf16.mxu1 %v7900_v54  ;;  %v9330_v54 = vld [vmem:[#allocation8_spill] sm:$0xff] }
 0x344   :  { %6769 = vrcp.f32 %v2389_v49  ;;  %v2400_v49 = vld [vmem:[#allocation2 + $0x68] sm:$0xff] }
 0x346   :  { %2908 = vmatpush1.bf16.msra.mxu0 %v7909_v1  ;;  %2949 = vmatpush1.bf16.msra.mxu1 %v7914_v4  ;;  %v9331_v1 = vld [vmem:[#allocation9_spill] sm:$0xff]  ;;  %v9332_v4 = vld [vmem:[#allocation10_spill] sm:$0xff] }
 0x347   :  { %2909 = vmatprep.subr.bf16.mxu0 %v7921_v28  ;;  %2950 = vmatprep.subr.bf16.mxu1 %v9329_v37  ;;  %v9333_v28 = vld [vmem:[#allocation11_spill] sm:$0xff] }
 0x348   :  { %v6766_v44 = vpop.eup %6765 }
 0x349   :  { %v6768_v19 = vpop.eup %6767  ;;  %v2393_v20 = vmul.f32 %v6766_v44, %v6764_v38  ;;  %v194_v38 = vld [vmem:[%s193_s14] ss:$8 sm:$0xf]  ;;  %s448_s14 = sadd.s32 %s6282_s20, %s445_s18  ;;  %s231_s18 = sand.u32 7, %s5635_s17 }
 0x34a   :  { %v2392_v50 = vmul.f32 %v6768_v19, %v7977_v33  ;;  %2910 = vmatpush1.bf16.msra.mxu0 %v7933_v31  ;;  %2951 = vmatpush1.bf16.msra.mxu1 %v7938_v32  ;;  %v9334_v31 = vld [vmem:[#allocation12_spill] sm:$0xff]  ;;  %v9335_v32 = vld [vmem:[#allocation13_spill] sm:$0xff]  ;;  %v195_v37 = vadd.f32 %v7840_v29, %v194_v38  ;;  %s449_s24 = scalar_lea.vmem %s9268_s4, %s448_s14  ;;  %s234_s21 = sadd.s32 %s6269_s19, %s231_s18 }
 0x34b   :  { %2911 = vmatprep.subr.bf16.mxu0 %v7945_v36  ;;  %2952 = vmatprep.subr.bf16.mxu1 %v7950_v34  ;;  %v9336_v36 = vld [vmem:[#allocation14_spill] sm:$0xff]  ;;  %v9337_v34 = vld [vmem:[#allocation15_spill] sm:$0xff]  ;;  %v9338_v33 = vld [vmem:[#allocation16_spill] sm:$0xff]  ;;  %s235_s27 = scalar_lea.vmem %s9265_s1, %s234_s21  ;;  %s470_s21 = sshra.s32 %s5680_s22, 3 }
 0x34c   :  { %v8133_v63 = vadd.f32 %v2393_v20, %v2392_v50  ;;  %v208_v44 = vld [vmem:[%s207_s25] ss:$8 sm:$0xf]  ;;  %197 = vst.msk [vmem:[#allocation2 + $0x80] ss:$8 sm:$0xf] %vm7371_vm0, %v195_v37 }
 0x34d   :  { %v209_v19 = vadd.f32 %v7840_v29, %v208_v44  ;;  %v2399_v20 = vld [vmem:[#allocation2 + $0x60] sm:$0xff]  ;;  %s6283_s25 = sshll.u32 %s456_s15, 5  ;;  %s220_s15 = sadd.s32 %s6268_s30, %s217_s13 }
 0x34e   :  { %6771 = vtanh.f32 %v8133_v63  ;;  %2912 = vmatpush1.bf16.msra.mxu0 %v9330_v54  ;;  %2953 = vmatpush1.bf16.msra.mxu1 %v9331_v1  ;;  %v6770_v21 = vpop.eup %6769  ;;  %s462_s23 = sadd.s32 %s6283_s25, %s459_s16  ;;  %s221_s16 = scalar_lea.vmem %s9265_s1, %s220_s15 }
 0x34f   :  { %2913 = vmatprep.subr.bf16.mxu0 %v9332_v4  ;;  %2954 = vmatprep.subr.bf16.mxu1 %v9333_v28  ;;  %211 = vst.msk [vmem:[#allocation2 + $0x81] ss:$8 sm:$0xf] %vm7371_vm0, %v209_v19  ;;  %s463_s0 = scalar_lea.vmem %s9268_s4, %s462_s23  ;;  %s5683_s13 = sld [smem:[#allocation5 + $0x8b]] }
 0x350   :  { %s5641_s20 = sld [smem:[#allocation5 + $0xd]]  ;;  %s5692_s23 = sld [smem:[#allocation5 + $0x8e]] }
 0x351   :  { %s5689_s30 = sld [smem:[#allocation5 + $0x8d]] }
 0x352   :  { %2914 = vmatpush1.bf16.msra.mxu0 %v9334_v31  ;;  %2955 = vmatpush1.bf16.msra.mxu1 %v9335_v32 }
 0x353   :  { %2915 = vmatprep.subr.bf16.mxu0 %v9336_v36  ;;  %2956 = vmatprep.subr.bf16.mxu1 %v9337_v34 }
 0x355   :  { %s487_s18 = sand.u32 7, %s5683_s13 }
 0x356   :  { %2916 = vmatpush1.bf16.msra.mxu0 %v8009_v46  ;;  %2957 = vmatpush1.bf16.msra.mxu1 %v9338_v33  ;;  %v8182_v46 = vld [vmem:[%s9266_s2 + $0x24] ss:$16 sps:$4 sm:$0xff]   ;;  %s259_s25 = sand.u32 7, %s5641_s20 }
 0x357   :  { %2917 = vmatprep.subr.bf16.mxu0 %v8021_v35  ;;  %2958 = vmatprep.subr.bf16.mxu1 %v8026_v41  ;;  %v8158_v35 = vld [vmem:[%s9266_s2 + $0x4] ss:$16 sps:$4 sm:$0xff]   ;;  %v8163_v41 = vld [vmem:[%s9266_s2 + $0xc] ss:$16 sps:$4 sm:$0xff]  }
 0x358   :  { %v6772_v22 = vpop.eup %6771 }
 0x359   :  { %v2396_v23 = vmul.f32 %v6772_v22, %v6770_v21 }
 0x35a   :  { %2918 = vmatpush1.bf16.msra.mxu0 %v8033_v51  ;;  %2959 = vmatpush1.bf16.msra.mxu1 %v8038_v45  ;;  %v8168_v51 = vld [vmem:[%s9266_s2] ss:$16 sps:$4 sm:$0xff]   ;;  %v8173_v45 = vld [vmem:[%s9266_s2 + $0x8] ss:$16 sps:$4 sm:$0xff]  }
 0x35b   :  { %2398 = vst [vmem:[%s9274_s10 + $0x10] sm:$0xff] %v2396_v23  ;;  %v2710_v24 = vpack.c.bf16 %v2396_v23, %v2396_v23  ;;  %3212 = vmatprep.subr.bf16.mxu0 %v8158_v35  ;;  %3253 = vmatprep.subr.bf16.mxu1 %v8163_v41  ;;  %v2402_v23 = vld [vmem:[#allocation2 + $0x78] sm:$0xff] }
 0x35d   :  { %2936 = vmatmul.mubr.bf16.vlgmr.msra.gmra.mrb[28].mxu0 %v2710_v24  ;;  %2977 = vmatmul.mubr.bf16.vlgmr.msra.gmra.mrb[28].mxu1 %v2710_v24  ;;  %v2401_v24 = vld [vmem:[#allocation2 + $0x70] sm:$0xff] }
 0x35e   :  { %3244 = vmatprep.mubr.bf16.mxu0 %v9315_v3  ;;  %3285 = vmatprep.mubr.bf16.mxu1 %v9315_v3 }
 0x35f   :  { %3213 = vmatpush1.bf16.msra.mxu0 %v8168_v51  ;;  %3254 = vmatpush1.bf16.msra.mxu1 %v8173_v45 }
 0x360   :  { %3214 = vmatprep.subr.bf16.mxu0 %v8182_v46  ;;  %3255 = vmatprep.subr.bf16.mxu1 %v8187_v25 }
 0x363   :  { %3215 = vmatpush1.bf16.msra.mxu0 %v8192_v26  ;;  %3256 = vmatpush1.bf16.msra.mxu1 %v8197_v27 }
 0x364   :  { %3216 = vmatprep.subr.bf16.mxu0 %v8209_v47  ;;  %3257 = vmatprep.subr.bf16.mxu1 %v8214_v39 }
 0x367   :  { %3217 = vmatpush1.bf16.msra.mxu0 %v8228_v57  ;;  %3258 = vmatpush1.bf16.msra.mxu1 %v8233_v58 }
 0x368   :  { %3218 = vmatprep.subr.bf16.mxu0 %v8245_v60  ;;  %3259 = vmatprep.subr.bf16.mxu1 %v8250_v61 }
 0x36b   :  { %3219 = vmatpush1.bf16.msra.mxu0 %v8255_v62  ;;  %3260 = vmatpush1.bf16.msra.mxu1 %v8260_v42 }
 0x36c   :  { %3220 = vmatprep.subr.bf16.mxu0 %v8271_v53  ;;  %3261 = vmatprep.subr.bf16.mxu1 %v8276_v55 }
 0x36f   :  { %3221 = vmatpush1.bf16.msra.mxu0 %v8281_v56  ;;  %3262 = vmatpush1.bf16.msra.mxu1 %v8286_v5 }
 0x370   :  { %3222 = vmatprep.subr.bf16.mxu0 %v8300_v6  ;;  %3263 = vmatprep.subr.bf16.mxu1 %v8310_v8 }
 0x373   :  { %3223 = vmatpush1.bf16.msra.mxu0 %v8295_v43  ;;  %3264 = vmatpush1.bf16.msra.mxu1 %v8305_v7 }
 0x374   :  { %3224 = vmatprep.subr.bf16.mxu0 %v8318_v10  ;;  %3265 = vmatprep.subr.bf16.mxu1 %v8323_v11 }
 0x377   :  { %3225 = vmatpush1.bf16.msra.mxu0 %v8329_v12  ;;  %3266 = vmatpush1.bf16.msra.mxu1 %v8334_v13 }
 0x378   :  { %3226 = vmatprep.subr.bf16.mxu0 %v8342_v14  ;;  %3267 = vmatprep.subr.bf16.mxu1 %v8347_v15 }
 0x37b   :  { %3227 = vmatpush1.bf16.msra.mxu0 %v8353_v16  ;;  %3268 = vmatpush1.bf16.msra.mxu1 %v8358_v17 }
 0x37c   :  { %3519 = vmatprep.subr.bf16.mxu0 %v8366_v18  ;;  %3560 = vmatprep.subr.bf16.mxu1 %v8371_v40 }
 0x410   :  { %v2630_v50 = vpop.f32.mrb[24].mxu0  ;;  %v2671_v54 = vpop.f32.mrb[24].mxu1 }
 0x411   :  { %v2678_v1 = vadd.f32 %v2630_v50, %v2399_v20  ;;  %v2632_v4 = vpop.f32.mrb[25].mxu0  ;;  %v2673_v28 = vpop.f32.mrb[25].mxu1  ;;  %v2680_v2 = vadd.f32 %v2671_v54, %v2401_v24 }
 0x412   :  { %v2679_v31 = vadd.f32 %v2632_v4, %v2400_v49  ;;  %v2634_v32 = vpop.f32.mrb[26].mxu0  ;;  %v2675_v36 = vpop.f32.mrb[26].mxu1  ;;  %v2681_v29 = vadd.f32 %v2673_v28, %v2402_v23  ;;  %v2706_v28 = vld [vmem:[#allocation3 + $0x60] sm:$0xff] }
 0x413   :  { %v5940_v34 = vmul.f32 -1.442695, %v2678_v1  ;;  %v2635_v33 = vpop.f32.mrb[27].mxu0  ;;  %v2676_v21 = vpop.f32.mrb[27].mxu1 }
 0x414   :  { %v5941_v22 = vmul.f32 -1.442695, %v2679_v31  ;;  %v5942_v9 = vmul.f32 -1.442695, %v2681_v29  ;;  %v2707_v31 = vld [vmem:[#allocation3 + $0x68] sm:$0xff] }
 0x415   :  { %6773 = vpow2.f32 %v5940_v34 }
 0x416   :  { %6775 = vpow2.f32 %v5941_v22 }
 0x417   :  { %6777 = vpow2.f32 %v5942_v9 }
 0x418   :  { %6779 = vtanh.f32 %v2680_v2 }
 0x41f   :  { %v6774_v59 = vpop.eup %6773 }
 0x420   :  { %v6776_v0 = vpop.eup %6775  ;;  %v2685_v38 = vadd.f32 1.0, %v6774_v59 }
 0x421   :  { %v2691_v37 = vadd.f32 1.0, %v6776_v0  ;;  %v6778_v44 = vpop.eup %6777 }
 0x422   :  { %6781 = vrcp.f32 %v2685_v38  ;;  %v6780_v19 = vpop.eup %6779  ;;  %v2698_v1 = vadd.f32 1.0, %v6778_v44  ;;  %v2708_v38 = vld [vmem:[#allocation3 + $0x70] sm:$0xff] }
 0x423   :  { %6783 = vrcp.f32 %v2691_v37 }
 0x424   :  { %6785 = vrcp.f32 %v2698_v1  ;;  %v8400_v1 = vld [vmem:[%s9269_s5 + $0x8] ss:$16 sps:$4 sm:$0xff]  }
 0x42c   :  { %v6782_v20 = vpop.eup %6781 }
 0x42d   :  { %v6784_v49 = vpop.eup %6783  ;;  %v2702_v50 = vmul.f32 %v6782_v20, %v6780_v19 }
 0x42e   :  { %v2701_v4 = vmul.f32 %v6784_v49, %v8108_v52  ;;  %v2709_v52 = vld [vmem:[#allocation3 + $0x78] sm:$0xff]  ;;  %v6786_v37 = vpop.eup %6785 }
 0x430   :  { %v8389_v32 = vadd.f32 %v2702_v50, %v2701_v4  ;;  %v2937_v54 = vpop.f32.mrb[28].mxu0  ;;  %v2978_v36 = vpop.f32.mrb[28].mxu1  ;;  %v8395_v50 = vld [vmem:[%s9269_s5] ss:$16 sps:$4 sm:$0xff]  }
 0x431   :  { %v2985_v34 = vadd.f32 %v2937_v54, %v2706_v28  ;;  %v2939_v33 = vpop.f32.mrb[29].mxu0  ;;  %v2980_v21 = vpop.f32.mrb[29].mxu1  ;;  %v2987_v20 = vadd.f32 %v2978_v36, %v2708_v38  ;;  %v8413_v54 = vld [vmem:[%s9269_s5 + $0x2c] ss:$16 sps:$4 sm:$0xff]   ;;  %v8475_v38 = vld [vmem:[%s9269_s5 + $0x68] ss:$16 sps:$4 sm:$0xff]  }
 0x432   :  { %6787 = vtanh.f32 %v8389_v32  ;;  %v2986_v22 = vadd.f32 %v2939_v33, %v2707_v31  ;;  %v2941_v23 = vpop.f32.mrb[30].mxu0  ;;  %v2982_v29 = vpop.f32.mrb[30].mxu1  ;;  %v2988_v0 = vadd.f32 %v2980_v21, %v2709_v52  ;;  %v8408_v31 = vld [vmem:[%s9269_s5 + $0x24] ss:$16 sps:$4 sm:$0xff]   ;;  %v8420_v21 = vld [vmem:[%s9269_s5 + $0x20] ss:$16 sps:$4 sm:$0xff]  }
 0x433   :  { %v5975_v24 = vmul.f32 -1.442695, %v2985_v34  ;;  %v2942_v9 = vpop.f32.mrb[31].mxu0  ;;  %v2983_v2 = vpop.f32.mrb[31].mxu1  ;;  %v8432_v23 = vld [vmem:[%s9269_s5 + $0x44] ss:$16 sps:$4 sm:$0xff]  }
 0x434   :  { %v5976_v59 = vmul.f32 -1.442695, %v2986_v22  ;;  %v5977_v19 = vmul.f32 -1.442695, %v2988_v0  ;;  %v8425_v22 = vld [vmem:[%s9269_s5 + $0x28] ss:$16 sps:$4 sm:$0xff]  }
 0x435   :  { %6789 = vpow2.f32 %v5975_v24  ;;  %v8437_v29 = vld [vmem:[%s9269_s5 + $0x4c] ss:$16 sps:$4 sm:$0xff]   ;;  %v8446_v24 = vld [vmem:[%s9269_s5 + $0x40] ss:$16 sps:$4 sm:$0xff]   ;;  %v8451_v9 = vld [vmem:[%s9269_s5 + $0x48] ss:$16 sps:$4 sm:$0xff]  }
 0x436   :  { %6791 = vpow2.f32 %v5976_v59  ;;  %v8458_v2 = vld [vmem:[%s9269_s5 + $0x64] ss:$16 sps:$4 sm:$0xff]   ;;  %v8463_v59 = vld [vmem:[%s9269_s5 + $0x6c] ss:$16 sps:$4 sm:$0xff]   ;;  %v8470_v0 = vld [vmem:[%s9269_s5 + $0x60] ss:$16 sps:$4 sm:$0xff]  }
 0x437   :  { %6793 = vpow2.f32 %v5977_v19  ;;  %v8487_v19 = vld [vmem:[%s9269_s5 + $0x8c] ss:$16 sps:$4 sm:$0xff]  }
 0x438   :  { %6795 = vtanh.f32 %v2987_v20 }
 0x43c   :  { %v6788_v44 = vpop.eup %6787 }
 0x43d   :  { %v2705_v49 = vmul.f32 %v6788_v44, %v6786_v37  ;;  %v8482_v44 = vld [vmem:[%s9269_s5 + $0x84] ss:$16 sps:$4 sm:$0xff]  }
 0x43f   :  { %v6790_v4 = vpop.eup %6789  ;;  %3013 = vst [vmem:[%s9271_s7 + $0x18] sm:$0xff] %v2705_v49  ;;  %v3019_v28 = vpack.c.bf16 %v2705_v49, %v2705_v49 }
 0x440   :  { %v6792_v36 = vpop.eup %6791  ;;  %v2992_v34 = vadd.f32 1.0, %v6790_v4 }
 0x441   :  { %v2998_v33 = vadd.f32 1.0, %v6792_v36  ;;  %3245 = vmatmul.mubr.bf16.vlgmr.msra.gmra.mrb[32].mxu0 %v3019_v28  ;;  %3286 = vmatmul.mubr.bf16.vlgmr.msra.gmra.mrb[32].mxu1 %v3019_v28  ;;  %v6794_v52 = vpop.eup %6793 }
 0x442   :  { %6797 = vrcp.f32 %v2992_v34  ;;  %3520 = vmatpush1.bf16.msra.mxu0 %v8395_v50  ;;  %3561 = vmatpush1.bf16.msra.mxu1 %v8400_v1  ;;  %v6796_v37 = vpop.eup %6795  ;;  %v3005_v28 = vadd.f32 1.0, %v6794_v52  ;;  %v8495_v34 = vld [vmem:[%s9269_s5 + $0x80] ss:$16 sps:$4 sm:$0xff]   ;;  %v8512_v52 = vld [vmem:[%s9269_s5 + $0xac] ss:$16 sps:$4 sm:$0xff]  }
 0x443   :  { %6799 = vrcp.f32 %v2998_v33  ;;  %3521 = vmatprep.subr.bf16.mxu0 %v8408_v31  ;;  %3562 = vmatprep.subr.bf16.mxu1 %v8413_v54  ;;  %9339 = vst [vmem:[#allocation7_spill] sm:$0xff] %v8495_v34  ;;  %v8500_v33 = vld [vmem:[%s9269_s5 + $0x88] ss:$16 sps:$4 sm:$0xff]   ;;  %9342 = vst [vmem:[#allocation10_spill] sm:$0xff] %v8512_v52 }
 0x444   :  { %3551 = vmatprep.mubr.bf16.mxu0 %v9315_v3  ;;  %3592 = vmatprep.mubr.bf16.mxu1 %v9315_v3  ;;  %9340 = vst [vmem:[#allocation8_spill] sm:$0xff] %v8500_v33  ;;  %6801 = vrcp.f32 %v3005_v28  ;;  %v8539_v28 = vld [vmem:[%s9269_s5 + $0xcc] ss:$16 sps:$4 sm:$0xff]  }
 0x445   :  { %9346 = vst [vmem:[#allocation14_spill] sm:$0xff] %v8539_v28 }
 0x446   :  { %3522 = vmatpush1.bf16.msra.mxu0 %v8420_v21  ;;  %3563 = vmatpush1.bf16.msra.mxu1 %v8425_v22 }
 0x447   :  { %3523 = vmatprep.subr.bf16.mxu0 %v8432_v23  ;;  %3564 = vmatprep.subr.bf16.mxu1 %v8437_v29 }
 0x44a   :  { %3524 = vmatpush1.bf16.msra.mxu0 %v8446_v24  ;;  %3565 = vmatpush1.bf16.msra.mxu1 %v8451_v9 }
 0x44b   :  { %3525 = vmatprep.subr.bf16.mxu0 %v8458_v2  ;;  %3566 = vmatprep.subr.bf16.mxu1 %v8463_v59 }
 0x44c   :  { %v6798_v20 = vpop.eup %6797 }
 0x44d   :  { %v6800_v49 = vpop.eup %6799  ;;  %v3009_v4 = vmul.f32 %v6798_v20, %v6796_v37  ;;  %v8522_v20 = vld [vmem:[%s9269_s5 + $0xa0] ss:$16 sps:$4 sm:$0xff]  }
 0x44e   :  { %v3008_v36 = vmul.f32 %v6800_v49, %v8133_v63  ;;  %3526 = vmatpush1.bf16.msra.mxu0 %v8470_v0  ;;  %3567 = vmatpush1.bf16.msra.mxu1 %v8475_v38  ;;  %v8507_v63 = vld [vmem:[%s9269_s5 + $0xa4] ss:$16 sps:$4 sm:$0xff]   ;;  %9343 = vst [vmem:[#allocation11_spill] sm:$0xff] %v8522_v20  ;;  %v8527_v49 = vld [vmem:[%s9269_s5 + $0xa8] ss:$16 sps:$4 sm:$0xff]  }
 0x44f   :  { %3527 = vmatprep.subr.bf16.mxu0 %v8482_v44  ;;  %3568 = vmatprep.subr.bf16.mxu1 %v8487_v19  ;;  %9341 = vst [vmem:[#allocation9_spill] sm:$0xff] %v8507_v63  ;;  %9344 = vst [vmem:[#allocation12_spill] sm:$0xff] %v8527_v49 }
 0x450   :  { %v8514_v37 = vadd.f32 %v3009_v4, %v3008_v36  ;;  %v8534_v4 = vld [vmem:[%s9269_s5 + $0xc4] ss:$16 sps:$4 sm:$0xff]   ;;  %v8546_v36 = vld [vmem:[%s9269_s5 + $0xc0] ss:$16 sps:$4 sm:$0xff]  }
 0x451   :  { %9345 = vst [vmem:[#allocation13_spill] sm:$0xff] %v8534_v4 }
 0x452   :  { %6803 = vtanh.f32 %v8514_v37  ;;  %3528 = vmatpush1.bf16.msra.mxu0 %v8495_v34  ;;  %3569 = vmatpush1.bf16.msra.mxu1 %v8500_v33 }
 0x453   :  { %3529 = vmatprep.subr.bf16.mxu0 %v8507_v63  ;;  %3570 = vmatprep.subr.bf16.mxu1 %v8512_v52  ;;  %v8551_v52 = vld [vmem:[%s9269_s5 + $0xc8] ss:$16 sps:$4 sm:$0xff]   ;;  %v6802_v63 = vpop.eup %6801 }
 0x454   :  { %9347 = vst [vmem:[#allocation15_spill] sm:$0xff] %v8551_v52 }
 0x456   :  { %3530 = vmatpush1.bf16.msra.mxu0 %v8522_v20  ;;  %3571 = vmatpush1.bf16.msra.mxu1 %v8527_v49  ;;  %v8558_v20 = vld [vmem:[%s9269_s5 + $0xe4] ss:$16 sps:$4 sm:$0xff]   ;;  %v8563_v49 = vld [vmem:[%s9269_s5 + $0xec] ss:$16 sps:$4 sm:$0xff]  }
 0x457   :  { %3531 = vmatprep.subr.bf16.mxu0 %v8534_v4  ;;  %3572 = vmatprep.subr.bf16.mxu1 %v8539_v28  ;;  %v8570_v4 = vld [vmem:[%s9269_s5 + $0xe0] ss:$16 sps:$4 sm:$0xff]   ;;  %v8575_v28 = vld [vmem:[%s9269_s5 + $0xe8] ss:$16 sps:$4 sm:$0xff]  }
 0x45a   :  { %3532 = vmatpush1.bf16.msra.mxu0 %v8546_v36  ;;  %3573 = vmatpush1.bf16.msra.mxu1 %v8551_v52 }
 0x45b   :  { %3533 = vmatprep.subr.bf16.mxu0 %v8558_v20  ;;  %3574 = vmatprep.subr.bf16.mxu1 %v8563_v49 }
 0x45c   :  { %v6804_v33 = vpop.eup %6803 }
 0x45d   :  { %v3012_v34 = vmul.f32 %v6804_v33, %v6802_v63 }
 0x45e   :  { %3534 = vmatpush1.bf16.msra.mxu0 %v8570_v4  ;;  %3575 = vmatpush1.bf16.msra.mxu1 %v8575_v28 }
 0x45f   :  { %3014 = vst [vmem:[%s9274_s10 + $0x18] sm:$0xff] %v3012_v34  ;;  %v3326_v52 = vpack.c.bf16 %v3012_v34, %v3012_v34  ;;  %3828 = vmatprep.subr.bf16.mxu0 %v8158_v35  ;;  %3869 = vmatprep.subr.bf16.mxu1 %v8163_v41  ;;  %v450_v35 = vld [vmem:[%s449_s24] ss:$8 sm:$0xf]  ;;  %s484_s24 = sshra.s32 %s5683_s13, 3 }
 0x460   :  { %v451_v41 = vadd.f32 %v8219_v30, %v450_v35 }
 0x461   :  { %3552 = vmatmul.mubr.bf16.vlgmr.msra.gmra.mrb[36].mxu0 %v3326_v52  ;;  %3593 = vmatmul.mubr.bf16.vlgmr.msra.gmra.mrb[36].mxu1 %v3326_v52 }
 0x462   :  { %3829 = vmatpush1.bf16.msra.mxu0 %v8168_v51  ;;  %3870 = vmatpush1.bf16.msra.mxu1 %v8173_v45  ;;  %v464_v51 = vld [vmem:[%s463_s0] ss:$8 sm:$0xf]  ;;  %453 = vst.msk [vmem:[#allocation3 + $0x80] ss:$8 sm:$0xf] %vm7371_vm0, %v451_v41 }
 0x463   :  { %3830 = vmatprep.subr.bf16.mxu0 %v8182_v46  ;;  %3871 = vmatprep.subr.bf16.mxu1 %v8187_v25  ;;  %v465_v45 = vadd.f32 %v8219_v30, %v464_v51  ;;  %v222_v46 = vld [vmem:[%s221_s16] ss:$8 sm:$0xf]  ;;  %s6284_s0 = sshll.u32 %s470_s21, 5  ;;  %s6285_s16 = sshll.u32 %s484_s24, 5 }
 0x464   :  { %3860 = vmatprep.mubr.bf16.mxu0 %v9315_v3  ;;  %3901 = vmatprep.mubr.bf16.mxu1 %v9315_v3  ;;  %v8638_v25 = vld [vmem:[%s9267_s3] sm:$0xf]  ;;  %s473_s3 = sand.u32 7, %s5680_s22  ;;  %s490_s19 = sadd.s32 %s6285_s16, %s487_s18 }
 0x465   :  { %467 = vst.msk [vmem:[#allocation3 + $0x81] ss:$8 sm:$0xf] %vm7371_vm0, %v465_v45  ;;  %s476_s15 = sadd.s32 %s6284_s0, %s473_s3  ;;  %s5644_s3 = sld [smem:[#allocation5 + $0xe]] }
 0x466   :  { %3831 = vmatpush1.bf16.msra.mxu0 %v8192_v26  ;;  %3872 = vmatpush1.bf16.msra.mxu1 %v8197_v27  ;;  %v223_v26 = vadd.f32 %v8638_v25, %v222_v46  ;;  %v236_v27 = vld [vmem:[%s235_s27] ss:$8 sm:$0xf]  ;;  %s477_s22 = scalar_lea.vmem %s9268_s4, %s476_s15  ;;  %s491_s27 = scalar_lea.vmem %s9268_s4, %s490_s19 }
 0x467   :  { %3832 = vmatprep.subr.bf16.mxu0 %v8209_v47  ;;  %3873 = vmatprep.subr.bf16.mxu1 %v8214_v39  ;;  %v237_v47 = vadd.f32 %v8638_v25, %v236_v27  ;;  %v3015_v39 = vld [vmem:[#allocation2 + $0x80] sm:$0xff]  ;;  %s256_s19 = sshra.s32 %s5641_s20, 3  ;;  %s512_s15 = sshra.s32 %s5689_s30, 3 }
 0x468   :  { %225 = vst.msk [vmem:[#allocation2 + $0xa0] ss:$8 sm:$0xf] %vm7371_vm0, %v223_v26  ;;  %s6271_s24 = sshll.u32 %s256_s19, 5  ;;  %s5647_s0 = sld [smem:[#allocation5 + $0xf]] }
 0x469   :  { %239 = vst.msk [vmem:[#allocation2 + $0xa1] ss:$8 sm:$0xf] %vm7371_vm0, %v237_v47 }
 0x46a   :  { %3833 = vmatpush1.bf16.msra.mxu0 %v8228_v57  ;;  %3874 = vmatpush1.bf16.msra.mxu1 %v8233_v58  ;;  %v3016_v57 = vld [vmem:[#allocation2 + $0x88] sm:$0xff] }
 0x46b   :  { %3834 = vmatprep.subr.bf16.mxu0 %v8245_v60  ;;  %3875 = vmatprep.subr.bf16.mxu1 %v8250_v61 }
 0x46c   :  { %v3322_v41 = vld [vmem:[#allocation3 + $0x80] sm:$0xff]  ;;  %v3323_v51 = vld [vmem:[#allocation3 + $0x88] sm:$0xff] }
 0x46e   :  { %3835 = vmatpush1.bf16.msra.mxu0 %v8255_v62  ;;  %3876 = vmatpush1.bf16.msra.mxu1 %v8260_v42 }
 0x46f   :  { %3836 = vmatprep.subr.bf16.mxu0 %v8271_v53  ;;  %3877 = vmatprep.subr.bf16.mxu1 %v8276_v55 }
 0x472   :  { %3837 = vmatpush1.bf16.msra.mxu0 %v8281_v56  ;;  %3878 = vmatpush1.bf16.msra.mxu1 %v8286_v5 }
 0x473   :  { %3838 = vmatprep.subr.bf16.mxu0 %v8300_v6  ;;  %3879 = vmatprep.subr.bf16.mxu1 %v8310_v8  ;;  %v3018_v8 = vld [vmem:[#allocation2 + $0x98] sm:$0xff] }
 0x476   :  { %3839 = vmatpush1.bf16.msra.mxu0 %v8295_v43  ;;  %3880 = vmatpush1.bf16.msra.mxu1 %v8305_v7 }
 0x477   :  { %3840 = vmatprep.subr.bf16.mxu0 %v8318_v10  ;;  %3881 = vmatprep.subr.bf16.mxu1 %v8323_v11  ;;  %v3017_v11 = vld [vmem:[#allocation2 + $0x90] sm:$0xff] }
 0x47a   :  { %3841 = vmatpush1.bf16.msra.mxu0 %v8329_v12  ;;  %3882 = vmatpush1.bf16.msra.mxu1 %v8334_v13 }
 0x47b   :  { %3842 = vmatprep.subr.bf16.mxu0 %v8342_v14  ;;  %3883 = vmatprep.subr.bf16.mxu1 %v8347_v15 }
 0x47e   :  { %3843 = vmatpush1.bf16.msra.mxu0 %v8353_v16  ;;  %3884 = vmatpush1.bf16.msra.mxu1 %v8358_v17 }
 0x47f   :  { %4135 = vmatprep.subr.bf16.mxu0 %v8366_v18  ;;  %4176 = vmatprep.subr.bf16.mxu1 %v8371_v40 }
 0x514   :  { %v3246_v58 = vpop.f32.mrb[32].mxu0  ;;  %v3287_v60 = vpop.f32.mrb[32].mxu1 }
 0x515   :  { %v3294_v61 = vadd.f32 %v3246_v58, %v3015_v39  ;;  %v3248_v62 = vpop.f32.mrb[33].mxu0  ;;  %v3289_v42 = vpop.f32.mrb[33].mxu1  ;;  %v3296_v13 = vadd.f32 %v3287_v60, %v3017_v11 }
 0x516   :  { %v3295_v53 = vadd.f32 %v3248_v62, %v3016_v57  ;;  %v3250_v55 = vpop.f32.mrb[34].mxu0  ;;  %v3291_v56 = vpop.f32.mrb[34].mxu1  ;;  %v3297_v10 = vadd.f32 %v3289_v42, %v3018_v8 }
 0x517   :  { %v6010_v5 = vmul.f32 -1.442695, %v3294_v61  ;;  %v3251_v43 = vpop.f32.mrb[35].mxu0  ;;  %v3292_v6 = vpop.f32.mrb[35].mxu1  ;;  %v3324_v56 = vld [vmem:[#allocation3 + $0x90] sm:$0xff] }
 0x518   :  { %v6011_v7 = vmul.f32 -1.442695, %v3295_v53  ;;  %v6012_v12 = vmul.f32 -1.442695, %v3297_v10 }
 0x519   :  { %6805 = vpow2.f32 %v6010_v5 }
 0x51a   :  { %6807 = vpow2.f32 %v6011_v7 }
 0x51b   :  { %6809 = vpow2.f32 %v6012_v12 }
 0x51c   :  { %6811 = vtanh.f32 %v3296_v13 }
 0x523   :  { %v6806_v14 = vpop.eup %6805 }
 0x524   :  { %v6808_v15 = vpop.eup %6807  ;;  %v3301_v16 = vadd.f32 1.0, %v6806_v14 }
 0x525   :  { %v3307_v17 = vadd.f32 1.0, %v6808_v15  ;;  %v6810_v18 = vpop.eup %6809 }
 0x526   :  { %6813 = vrcp.f32 %v3301_v16  ;;  %v6812_v40 = vpop.eup %6811  ;;  %v3314_v52 = vadd.f32 1.0, %v6810_v18 }
 0x527   :  { %6815 = vrcp.f32 %v3307_v17 }
 0x528   :  { %6817 = vrcp.f32 %v3314_v52  ;;  %v8751_v52 = vld [vmem:[%s9266_s2 + $0x44] ss:$16 sps:$4 sm:$0xff]  }
 0x530   :  { %v6814_v34 = vpop.eup %6813 }
 0x531   :  { %v6816_v33 = vpop.eup %6815  ;;  %v3318_v63 = vmul.f32 %v6814_v34, %v6812_v40  ;;  %v8729_v40 = vld [vmem:[%s9266_s2 + $0x2c] ss:$16 sps:$4 sm:$0xff]   ;;  %v8734_v34 = vld [vmem:[%s9266_s2 + $0x20] ss:$16 sps:$4 sm:$0xff]  }
 0x532   :  { %v3317_v35 = vmul.f32 %v6816_v33, %v8389_v32  ;;  %v3325_v32 = vld [vmem:[#allocation3 + $0x98] sm:$0xff]  ;;  %v6818_v5 = vpop.eup %6817 }
 0x533   :  { %v8739_v33 = vld [vmem:[%s9266_s2 + $0x28] ss:$16 sps:$4 sm:$0xff]  }
 0x534   :  { %v8650_v45 = vadd.f32 %v3318_v63, %v3317_v35  ;;  %v3553_v46 = vpop.f32.mrb[36].mxu0  ;;  %v3594_v26 = vpop.f32.mrb[36].mxu1  ;;  %v478_v63 = vld [vmem:[%s477_s22] ss:$8 sm:$0xf] }
 0x535   :  { %v3601_v27 = vadd.f32 %v3553_v46, %v3322_v41  ;;  %v3555_v47 = vpop.f32.mrb[37].mxu0  ;;  %v3596_v39 = vpop.f32.mrb[37].mxu1  ;;  %v3603_v7 = vadd.f32 %v3594_v26, %v3324_v56  ;;  %v8756_v35 = vld [vmem:[%s9266_s2 + $0x4c] ss:$16 sps:$4 sm:$0xff]   ;;  %v479_v41 = vadd.f32 %v8219_v30, %v478_v63  ;;  %v8770_v46 = vld [vmem:[%s9266_s2 + $0x48] ss:$16 sps:$4 sm:$0xff]  }
 0x536   :  { %6819 = vtanh.f32 %v8650_v45  ;;  %v3602_v57 = vadd.f32 %v3555_v47, %v3323_v51  ;;  %v3557_v58 = vpop.f32.mrb[38].mxu0  ;;  %v3598_v60 = vpop.f32.mrb[38].mxu1  ;;  %v3604_v55 = vadd.f32 %v3596_v39, %v3325_v32  ;;  %v8765_v51 = vld [vmem:[%s9266_s2 + $0x40] ss:$16 sps:$4 sm:$0xff]   ;;  %v8782_v47 = vld [vmem:[%s9266_s2 + $0x64] ss:$16 sps:$4 sm:$0xff]  }
 0x537   :  { %v6045_v61 = vmul.f32 -1.442695, %v3601_v27  ;;  %v3558_v62 = vpop.f32.mrb[39].mxu0  ;;  %v3599_v42 = vpop.f32.mrb[39].mxu1  ;;  %v8787_v39 = vld [vmem:[%s9266_s2 + $0x6c] ss:$16 sps:$4 sm:$0xff]  }
 0x538   :  { %v6046_v53 = vmul.f32 -1.442695, %v3602_v57  ;;  %v6047_v6 = vmul.f32 -1.442695, %v3604_v55  ;;  %v8792_v57 = vld [vmem:[%s9266_s2 + $0x60] ss:$16 sps:$4 sm:$0xff]  }
 0x539   :  { %6821 = vpow2.f32 %v6045_v61  ;;  %481 = vst.msk [vmem:[#allocation3 + $0xa0] ss:$8 sm:$0xf] %vm7371_vm0, %v479_v41  ;;  %v492_v26 = vld [vmem:[%s491_s27] ss:$8 sm:$0xf]  ;;  %s262_s27 = sadd.s32 %s6271_s24, %s259_s25 }
 0x53a   :  { %6823 = vpow2.f32 %v6046_v53  ;;  %v493_v27 = vadd.f32 %v8219_v30, %v492_v26  ;;  %v8797_v58 = vld [vmem:[%s9266_s2 + $0x68] ss:$16 sps:$4 sm:$0xff]   ;;  %v8808_v30 = vld [vmem:[%s9266_s2 + $0x84] ss:$16 sps:$4 sm:$0xff]   ;;  %v8813_v60 = vld [vmem:[%s9266_s2 + $0x8c] ss:$16 sps:$4 sm:$0xff]   ;;  %s263_s29 = scalar_lea.vmem %s9265_s1, %s262_s27 }
 0x53b   :  { %6825 = vpow2.f32 %v6047_v6  ;;  %v8818_v61 = vld [vmem:[%s9266_s2 + $0x80] ss:$16 sps:$4 sm:$0xff]   ;;  %v8823_v62 = vld [vmem:[%s9266_s2 + $0x88] ss:$16 sps:$4 sm:$0xff]   ;;  %v8837_v53 = vld [vmem:[%s9266_s2 + $0xa4] ss:$16 sps:$4 sm:$0xff]  }
 0x53c   :  { %6827 = vtanh.f32 %v3603_v7  ;;  %495 = vst.msk [vmem:[#allocation3 + $0xa1] ss:$8 sm:$0xf] %vm7371_vm0, %v493_v27  ;;  %v8832_v42 = vld [vmem:[%s9266_s2 + $0xa0] ss:$16 sps:$4 sm:$0xff]   ;;  %s526_s24 = sshra.s32 %s5692_s23, 3 }
 0x53d   :  { %v8842_v32 = vld [vmem:[%s9266_s2 + $0xa8] ss:$16 sps:$4 sm:$0xff]   ;;  %v8847_v55 = vld [vmem:[%s9266_s2 + $0xac] ss:$16 sps:$4 sm:$0xff]   ;;  %v8855_v56 = vld [vmem:[%s9266_s2 + $0xc4] ss:$16 sps:$4 sm:$0xff]  }
 0x53e   :  { %v8871_v6 = vld [vmem:[%s9266_s2 + $0xc8] ss:$16 sps:$4 sm:$0xff]   ;;  %v8879_v7 = vld [vmem:[%s9266_s2 + $0xe4] ss:$16 sps:$4 sm:$0xff]  }
 0x540   :  { %v6820_v43 = vpop.eup %6819 }
 0x541   :  { %v3321_v8 = vmul.f32 %v6820_v43, %v6818_v5  ;;  %v8860_v5 = vld [vmem:[%s9266_s2 + $0xcc] ss:$16 sps:$4 sm:$0xff]   ;;  %v8866_v43 = vld [vmem:[%s9266_s2 + $0xc0] ss:$16 sps:$4 sm:$0xff]  }
 0x543   :  { %v6822_v10 = vpop.eup %6821  ;;  %3629 = vst [vmem:[%s9271_s7 + $0x20] sm:$0xff] %v3321_v8  ;;  %v3635_v11 = vpack.c.bf16 %v3321_v8, %v3321_v8  ;;  %v8884_v8 = vld [vmem:[%s9266_s2 + $0xec] ss:$16 sps:$4 sm:$0xff]  }
 0x544   :  { %v6824_v12 = vpop.eup %6823  ;;  %v3608_v13 = vadd.f32 1.0, %v6822_v10  ;;  %v8890_v10 = vld [vmem:[%s9266_s2 + $0xe0] ss:$16 sps:$4 sm:$0xff]  }
 0x545   :  { %v3614_v14 = vadd.f32 1.0, %v6824_v12  ;;  %3861 = vmatmul.mubr.bf16.vlgmr.msra.gmra.mrb[40].mxu0 %v3635_v11  ;;  %3902 = vmatmul.mubr.bf16.vlgmr.msra.gmra.mrb[40].mxu1 %v3635_v11  ;;  %v8895_v11 = vld [vmem:[%s9266_s2 + $0xe8] ss:$16 sps:$4 sm:$0xff]   ;;  %v8903_v12 = vld [vmem:[%s9269_s5 + $0x4] ss:$16 sps:$4 sm:$0xff]  }
 0x546   :  { %6829 = vrcp.f32 %v3608_v13  ;;  %4136 = vmatpush1.bf16.msra.mxu0 %v8395_v50  ;;  %4177 = vmatpush1.bf16.msra.mxu1 %v8400_v1  ;;  %v6826_v50 = vpop.eup %6825  ;;  %v8908_v13 = vld [vmem:[%s9269_s5 + $0xc] ss:$16 sps:$4 sm:$0xff]  }
 0x547   :  { %6831 = vrcp.f32 %v3614_v14  ;;  %4137 = vmatprep.subr.bf16.mxu0 %v8408_v31  ;;  %4178 = vmatprep.subr.bf16.mxu1 %v8413_v54  ;;  %v6828_v1 = vpop.eup %6827 }
 0x548   :  { %4167 = vmatprep.mubr.bf16.mxu0 %v9315_v3  ;;  %4208 = vmatprep.mubr.bf16.mxu1 %v9315_v3 }
 0x54a   :  { %4138 = vmatpush1.bf16.msra.mxu0 %v8420_v21  ;;  %4179 = vmatpush1.bf16.msra.mxu1 %v8425_v22  ;;  %v3621_v21 = vadd.f32 1.0, %v6826_v50 }
 0x54b   :  { %4139 = vmatprep.subr.bf16.mxu0 %v8432_v23  ;;  %4180 = vmatprep.subr.bf16.mxu1 %v8437_v29  ;;  %v9348_v29 = vld [vmem:[#allocation7_spill] sm:$0xff] }
 0x54c   :  { %6833 = vrcp.f32 %v3621_v21 }
 0x54e   :  { %4140 = vmatpush1.bf16.msra.mxu0 %v8446_v24  ;;  %4181 = vmatpush1.bf16.msra.mxu1 %v8451_v9  ;;  %v9349_v24 = vld [vmem:[#allocation8_spill] sm:$0xff]  ;;  %v9350_v9 = vld [vmem:[#allocation9_spill] sm:$0xff] }
 0x54f   :  { %4141 = vmatprep.subr.bf16.mxu0 %v8458_v2  ;;  %4182 = vmatprep.subr.bf16.mxu1 %v8463_v59  ;;  %v9351_v2 = vld [vmem:[#allocation10_spill] sm:$0xff]  ;;  %v9352_v59 = vld [vmem:[#allocation11_spill] sm:$0xff] }
 0x550   :  { %v6830_v31 = vpop.eup %6829 }
 0x551   :  { %v6832_v54 = vpop.eup %6831  ;;  %v3625_v15 = vmul.f32 %v6830_v31, %v6828_v1  ;;  %v264_v1 = vld [vmem:[%s263_s29] ss:$8 sm:$0xf]  ;;  %s270_s29 = sshra.s32 %s5644_s3, 3 }
 0x552   :  { %v3624_v22 = vmul.f32 %v6832_v54, %v8514_v37  ;;  %4142 = vmatpush1.bf16.msra.mxu0 %v8470_v0  ;;  %4183 = vmatpush1.bf16.msra.mxu1 %v8475_v38  ;;  %v9353_v0 = vld [vmem:[#allocation12_spill] sm:$0xff]  ;;  %v9354_v38 = vld [vmem:[#allocation13_spill] sm:$0xff]  ;;  %v265_v31 = vadd.f32 %v8638_v25, %v264_v1  ;;  %v3631_v54 = vld [vmem:[#allocation2 + $0xa0] sm:$0xff]  ;;  %s6272_s17 = sshll.u32 %s270_s29, 5 }
 0x553   :  { %4143 = vmatprep.subr.bf16.mxu0 %v8482_v44  ;;  %4184 = vmatprep.subr.bf16.mxu1 %v8487_v19  ;;  %v9355_v44 = vld [vmem:[#allocation14_spill] sm:$0xff]  ;;  %v9356_v19 = vld [vmem:[#allocation15_spill] sm:$0xff] }
 0x554   :  { %v8675_v23 = vadd.f32 %v3625_v15, %v3624_v22  ;;  %267 = vst.msk [vmem:[#allocation2 + $0xc1] ss:$8 sm:$0xf] %vm7371_vm0, %v265_v31  ;;  %v3632_v15 = vld [vmem:[#allocation2 + $0xa8] sm:$0xff] }
 0x556   :  { %6835 = vtanh.f32 %v8675_v23  ;;  %4144 = vmatpush1.bf16.msra.mxu0 %v9348_v29  ;;  %4185 = vmatpush1.bf16.msra.mxu1 %v9349_v24  ;;  %v6834_v37 = vpop.eup %6833 }
 0x557   :  { %4145 = vmatprep.subr.bf16.mxu0 %v9350_v9  ;;  %4186 = vmatprep.subr.bf16.mxu1 %v9351_v2 }
 0x55a   :  { %4146 = vmatpush1.bf16.msra.mxu0 %v9352_v59  ;;  %4187 = vmatpush1.bf16.msra.mxu1 %v9353_v0 }
 0x55b   :  { %4147 = vmatprep.subr.bf16.mxu0 %v9354_v38  ;;  %4188 = vmatprep.subr.bf16.mxu1 %v9355_v44 }
 0x55e   :  { %4148 = vmatpush1.bf16.msra.mxu0 %v8546_v36  ;;  %4189 = vmatpush1.bf16.msra.mxu1 %v9356_v19  ;;  %v8724_v36 = vld [vmem:[%s9266_s2 + $0x24] ss:$16 sps:$4 sm:$0xff]  }
 0x55f   :  { %4149 = vmatprep.subr.bf16.mxu0 %v8558_v20  ;;  %4190 = vmatprep.subr.bf16.mxu1 %v8563_v49  ;;  %v8700_v20 = vld [vmem:[%s9266_s2 + $0x4] ss:$16 sps:$4 sm:$0xff]   ;;  %v8705_v49 = vld [vmem:[%s9266_s2 + $0xc] ss:$16 sps:$4 sm:$0xff]  }
 0x560   :  { %v6836_v16 = vpop.eup %6835 }
 0x561   :  { %v3628_v17 = vmul.f32 %v6836_v16, %v6834_v37  ;;  %v3634_v16 = vld [vmem:[#allocation2 + $0xb8] sm:$0xff] }
 0x562   :  { %4150 = vmatpush1.bf16.msra.mxu0 %v8570_v4  ;;  %4191 = vmatpush1.bf16.msra.mxu1 %v8575_v28  ;;  %v8710_v4 = vld [vmem:[%s9266_s2] ss:$16 sps:$4 sm:$0xff]   ;;  %v8715_v28 = vld [vmem:[%s9266_s2 + $0x8] ss:$16 sps:$4 sm:$0xff]   ;;  %s5638_s2 = sld [smem:[#allocation5 + $0xc]] }
 0x563   :  { %3630 = vst [vmem:[%s9274_s10 + $0x20] sm:$0xff] %v3628_v17  ;;  %v3942_v18 = vpack.c.bf16 %v3628_v17, %v3628_v17  ;;  %4444 = vmatprep.subr.bf16.mxu0 %v8700_v20  ;;  %4485 = vmatprep.subr.bf16.mxu1 %v8705_v49 }
 0x565   :  { %4168 = vmatmul.mubr.bf16.vlgmr.msra.gmra.mrb[44].mxu0 %v3942_v18  ;;  %4209 = vmatmul.mubr.bf16.vlgmr.msra.gmra.mrb[44].mxu1 %v3942_v18  ;;  %v3633_v18 = vld [vmem:[#allocation2 + $0xb0] sm:$0xff] }
 0x566   :  { %4476 = vmatprep.mubr.bf16.mxu0 %v9315_v3  ;;  %4517 = vmatprep.mubr.bf16.mxu1 %v9315_v3 }
 0x567   :  { %4445 = vmatpush1.bf16.msra.mxu0 %v8710_v4  ;;  %4486 = vmatpush1.bf16.msra.mxu1 %v8715_v28 }
 0x568   :  { %4446 = vmatprep.subr.bf16.mxu0 %v8724_v36  ;;  %4487 = vmatprep.subr.bf16.mxu1 %v8729_v40  ;;  %s242_s14 = sshra.s32 %s5638_s2, 3  ;;  %s245_s22 = sand.u32 7, %s5638_s2 }
 0x569   :  { %s6270_s16 = sshll.u32 %s242_s14, 5  ;;  %s515_s14 = sand.u32 7, %s5689_s30 }
 0x56a   :  { %s248_s21 = sadd.s32 %s6270_s16, %s245_s22 }
 0x56b   :  { %4447 = vmatpush1.bf16.msra.mxu0 %v8734_v34  ;;  %4488 = vmatpush1.bf16.msra.mxu1 %v8739_v33  ;;  %s249_s26 = scalar_lea.vmem %s9265_s1, %s248_s21  ;;  %s6287_s21 = sshll.u32 %s512_s15, 5 }
 0x56c   :  { %4448 = vmatprep.subr.bf16.mxu0 %v8751_v52  ;;  %4489 = vmatprep.subr.bf16.mxu1 %v8756_v35  ;;  %v250_v14 = vld [vmem:[%s249_s26] ss:$8 sm:$0xf]  ;;  %s518_s25 = sadd.s32 %s6287_s21, %s515_s14  ;;  %s5695_s26 = sld [smem:[#allocation5 + $0x8f]] }
 0x56d   :  { %v251_v50 = vadd.f32 %v8638_v25, %v250_v14  ;;  %s519_s27 = scalar_lea.vmem %s9268_s4, %s518_s25 }
 0x56f   :  { %4449 = vmatpush1.bf16.msra.mxu0 %v8765_v51  ;;  %4490 = vmatpush1.bf16.msra.mxu1 %v8770_v46  ;;  %253 = vst.msk [vmem:[#allocation2 + $0xc0] ss:$8 sm:$0xf] %vm7371_vm0, %v251_v50 }
 0x570   :  { %4450 = vmatprep.subr.bf16.mxu0 %v8782_v47  ;;  %4491 = vmatprep.subr.bf16.mxu1 %v8787_v39 }
 0x573   :  { %4451 = vmatpush1.bf16.msra.mxu0 %v8792_v57  ;;  %4492 = vmatpush1.bf16.msra.mxu1 %v8797_v58 }
 0x574   :  { %4452 = vmatprep.subr.bf16.mxu0 %v8808_v30  ;;  %4493 = vmatprep.subr.bf16.mxu1 %v8813_v60 }
 0x577   :  { %4453 = vmatpush1.bf16.msra.mxu0 %v8818_v61  ;;  %4494 = vmatpush1.bf16.msra.mxu1 %v8823_v62 }
 0x578   :  { %4454 = vmatprep.subr.bf16.mxu0 %v8837_v53  ;;  %4495 = vmatprep.subr.bf16.mxu1 %v8847_v55 }
 0x57b   :  { %4455 = vmatpush1.bf16.msra.mxu0 %v8832_v42  ;;  %4496 = vmatpush1.bf16.msra.mxu1 %v8842_v32 }
 0x57c   :  { %4456 = vmatprep.subr.bf16.mxu0 %v8855_v56  ;;  %4497 = vmatprep.subr.bf16.mxu1 %v8860_v5 }
 0x57f   :  { %4457 = vmatpush1.bf16.msra.mxu0 %v8866_v43  ;;  %4498 = vmatpush1.bf16.msra.mxu1 %v8871_v6 }
 0x580   :  { %4458 = vmatprep.subr.bf16.mxu0 %v8879_v7  ;;  %4499 = vmatprep.subr.bf16.mxu1 %v8884_v8 }
 0x583   :  { %4459 = vmatpush1.bf16.msra.mxu0 %v8890_v10  ;;  %4500 = vmatpush1.bf16.msra.mxu1 %v8895_v11 }
 0x584   :  { %4751 = vmatprep.subr.bf16.mxu0 %v8903_v12  ;;  %4792 = vmatprep.subr.bf16.mxu1 %v8908_v13 }
 0x618   :  { %v3862_v21 = vpop.f32.mrb[40].mxu0  ;;  %v3903_v22 = vpop.f32.mrb[40].mxu1 }
 0x619   :  { %v3910_v29 = vadd.f32 %v3862_v21, %v3631_v54  ;;  %v3864_v24 = vpop.f32.mrb[41].mxu0  ;;  %v3905_v9 = vpop.f32.mrb[41].mxu1  ;;  %v3912_v41 = vadd.f32 %v3903_v22, %v3633_v18 }
 0x61a   :  { %v3911_v2 = vadd.f32 %v3864_v24, %v3632_v15  ;;  %v3866_v59 = vpop.f32.mrb[42].mxu0  ;;  %v3907_v0 = vpop.f32.mrb[42].mxu1  ;;  %v3913_v17 = vadd.f32 %v3905_v9, %v3634_v16  ;;  %v3938_v9 = vld [vmem:[#allocation3 + $0xa0] sm:$0xff] }
 0x61b   :  { %v6080_v38 = vmul.f32 -1.442695, %v3910_v29  ;;  %v3867_v44 = vpop.f32.mrb[43].mxu0  ;;  %v3908_v19 = vpop.f32.mrb[43].mxu1 }
 0x61c   :  { %v6081_v37 = vmul.f32 -1.442695, %v3911_v2  ;;  %v6082_v63 = vmul.f32 -1.442695, %v3913_v17  ;;  %v3939_v2 = vld [vmem:[#allocation3 + $0xa8] sm:$0xff] }
 0x61d   :  { %6837 = vpow2.f32 %v6080_v38 }
 0x61e   :  { %6839 = vpow2.f32 %v6081_v37 }
 0x61f   :  { %6841 = vpow2.f32 %v6082_v63 }
 0x620   :  { %6843 = vtanh.f32 %v3912_v41 }
 0x627   :  { %v6838_v26 = vpop.eup %6837 }
 0x628   :  { %v6840_v27 = vpop.eup %6839  ;;  %v3917_v14 = vadd.f32 1.0, %v6838_v26 }
 0x629   :  { %v3923_v50 = vadd.f32 1.0, %v6840_v27  ;;  %v6842_v1 = vpop.eup %6841 }
 0x62a   :  { %6845 = vrcp.f32 %v3917_v14  ;;  %v6844_v31 = vpop.eup %6843  ;;  %v3930_v29 = vadd.f32 1.0, %v6842_v1  ;;  %v3940_v14 = vld [vmem:[#allocation3 + $0xb0] sm:$0xff] }
 0x62b   :  { %6847 = vrcp.f32 %v3923_v50 }
 0x62c   :  { %6849 = vrcp.f32 %v3930_v29  ;;  %v8937_v29 = vld [vmem:[%s9269_s5 + $0x8] ss:$16 sps:$4 sm:$0xff]  }
 0x634   :  { %v6846_v54 = vpop.eup %6845 }
 0x635   :  { %v6848_v15 = vpop.eup %6847  ;;  %v3934_v21 = vmul.f32 %v6846_v54, %v6844_v31 }
 0x636   :  { %v3933_v24 = vmul.f32 %v6848_v15, %v8650_v45  ;;  %v3941_v45 = vld [vmem:[#allocation3 + $0xb8] sm:$0xff]  ;;  %v6850_v50 = vpop.eup %6849 }
 0x638   :  { %v8926_v59 = vadd.f32 %v3934_v21, %v3933_v24  ;;  %v4169_v22 = vpop.f32.mrb[44].mxu0  ;;  %v4210_v0 = vpop.f32.mrb[44].mxu1  ;;  %v8932_v21 = vld [vmem:[%s9269_s5] ss:$16 sps:$4 sm:$0xff]  }
 0x639   :  { %v4217_v38 = vadd.f32 %v4169_v22, %v3938_v9  ;;  %v4171_v44 = vpop.f32.mrb[45].mxu0  ;;  %v4212_v19 = vpop.f32.mrb[45].mxu1  ;;  %v4219_v54 = vadd.f32 %v4210_v0, %v3940_v14  ;;  %v8950_v22 = vld [vmem:[%s9269_s5 + $0x2c] ss:$16 sps:$4 sm:$0xff]   ;;  %v9012_v14 = vld [vmem:[%s9269_s5 + $0x68] ss:$16 sps:$4 sm:$0xff]  }
 0x63a   :  { %6851 = vtanh.f32 %v8926_v59  ;;  %v4218_v37 = vadd.f32 %v4171_v44, %v3939_v2  ;;  %v4173_v16 = vpop.f32.mrb[46].mxu0  ;;  %v4214_v17 = vpop.f32.mrb[46].mxu1  ;;  %v4220_v27 = vadd.f32 %v4212_v19, %v3941_v45  ;;  %v8945_v2 = vld [vmem:[%s9269_s5 + $0x24] ss:$16 sps:$4 sm:$0xff]   ;;  %v8957_v19 = vld [vmem:[%s9269_s5 + $0x20] ss:$16 sps:$4 sm:$0xff]  }
 0x63b   :  { %v6115_v18 = vmul.f32 -1.442695, %v4217_v38  ;;  %v4174_v63 = vpop.f32.mrb[47].mxu0  ;;  %v4215_v41 = vpop.f32.mrb[47].mxu1  ;;  %v8969_v16 = vld [vmem:[%s9269_s5 + $0x44] ss:$16 sps:$4 sm:$0xff]  }
 0x63c   :  { %v6116_v26 = vmul.f32 -1.442695, %v4218_v37  ;;  %v6117_v31 = vmul.f32 -1.442695, %v4220_v27  ;;  %v8962_v37 = vld [vmem:[%s9269_s5 + $0x28] ss:$16 sps:$4 sm:$0xff]  }
 0x63d   :  { %6853 = vpow2.f32 %v6115_v18  ;;  %v8974_v17 = vld [vmem:[%s9269_s5 + $0x4c] ss:$16 sps:$4 sm:$0xff]   ;;  %v8983_v18 = vld [vmem:[%s9269_s5 + $0x40] ss:$16 sps:$4 sm:$0xff]   ;;  %v8988_v63 = vld [vmem:[%s9269_s5 + $0x48] ss:$16 sps:$4 sm:$0xff]  }
 0x63e   :  { %6855 = vpow2.f32 %v6116_v26  ;;  %v8995_v41 = vld [vmem:[%s9269_s5 + $0x64] ss:$16 sps:$4 sm:$0xff]   ;;  %v9000_v26 = vld [vmem:[%s9269_s5 + $0x6c] ss:$16 sps:$4 sm:$0xff]   ;;  %v9007_v27 = vld [vmem:[%s9269_s5 + $0x60] ss:$16 sps:$4 sm:$0xff]  }
 0x63f   :  { %6857 = vpow2.f32 %v6117_v31  ;;  %v9024_v31 = vld [vmem:[%s9269_s5 + $0x8c] ss:$16 sps:$4 sm:$0xff]  }
 0x640   :  { %6859 = vtanh.f32 %v4219_v54 }
 0x644   :  { %v6852_v1 = vpop.eup %6851 }
 0x645   :  { %v3937_v15 = vmul.f32 %v6852_v1, %v6850_v50  ;;  %v9019_v1 = vld [vmem:[%s9269_s5 + $0x84] ss:$16 sps:$4 sm:$0xff]  }
 0x647   :  { %v6854_v24 = vpop.eup %6853  ;;  %4245 = vst [vmem:[%s9271_s7 + $0x28] sm:$0xff] %v3937_v15  ;;  %v4251_v9 = vpack.c.bf16 %v3937_v15, %v3937_v15 }
 0x648   :  { %v6856_v0 = vpop.eup %6855  ;;  %v4224_v38 = vadd.f32 1.0, %v6854_v24 }
 0x649   :  { %v4230_v44 = vadd.f32 1.0, %v6856_v0  ;;  %4477 = vmatmul.mubr.bf16.vlgmr.msra.gmra.mrb[48].mxu0 %v4251_v9  ;;  %4518 = vmatmul.mubr.bf16.vlgmr.msra.gmra.mrb[48].mxu1 %v4251_v9  ;;  %v6858_v45 = vpop.eup %6857 }
 0x64a   :  { %6861 = vrcp.f32 %v4224_v38  ;;  %4752 = vmatpush1.bf16.msra.mxu0 %v8932_v21  ;;  %4793 = vmatpush1.bf16.msra.mxu1 %v8937_v29  ;;  %v6860_v50 = vpop.eup %6859  ;;  %v4237_v9 = vadd.f32 1.0, %v6858_v45  ;;  %v9032_v38 = vld [vmem:[%s9269_s5 + $0x80] ss:$16 sps:$4 sm:$0xff]   ;;  %v9049_v45 = vld [vmem:[%s9269_s5 + $0xac] ss:$16 sps:$4 sm:$0xff]  }
 0x64b   :  { %6863 = vrcp.f32 %v4230_v44  ;;  %4753 = vmatprep.subr.bf16.mxu0 %v8945_v2  ;;  %4794 = vmatprep.subr.bf16.mxu1 %v8950_v22  ;;  %9357 = vst [vmem:[#allocation16_spill] sm:$0xff] %v9032_v38  ;;  %v9037_v44 = vld [vmem:[%s9269_s5 + $0x88] ss:$16 sps:$4 sm:$0xff]   ;;  %9360 = vst [vmem:[#allocation9_spill] sm:$0xff] %v9049_v45 }
 0x64c   :  { %4783 = vmatprep.mubr.bf16.mxu0 %v9315_v3  ;;  %4824 = vmatprep.mubr.bf16.mxu1 %v9315_v3  ;;  %9358 = vst [vmem:[#allocation7_spill] sm:$0xff] %v9037_v44  ;;  %6865 = vrcp.f32 %v4237_v9  ;;  %v9076_v9 = vld [vmem:[%s9269_s5 + $0xcc] ss:$16 sps:$4 sm:$0xff]  }
 0x64d   :  { %9364 = vst [vmem:[#allocation13_spill] sm:$0xff] %v9076_v9 }
 0x64e   :  { %4754 = vmatpush1.bf16.msra.mxu0 %v8957_v19  ;;  %4795 = vmatpush1.bf16.msra.mxu1 %v8962_v37 }
 0x64f   :  { %4755 = vmatprep.subr.bf16.mxu0 %v8969_v16  ;;  %4796 = vmatprep.subr.bf16.mxu1 %v8974_v17 }
 0x652   :  { %4756 = vmatpush1.bf16.msra.mxu0 %v8983_v18  ;;  %4797 = vmatpush1.bf16.msra.mxu1 %v8988_v63 }
 0x653   :  { %4757 = vmatprep.subr.bf16.mxu0 %v8995_v41  ;;  %4798 = vmatprep.subr.bf16.mxu1 %v9000_v26 }
 0x654   :  { %v6862_v54 = vpop.eup %6861 }
 0x655   :  { %v6864_v15 = vpop.eup %6863  ;;  %v4241_v24 = vmul.f32 %v6862_v54, %v6860_v50  ;;  %v9059_v54 = vld [vmem:[%s9269_s5 + $0xa0] ss:$16 sps:$4 sm:$0xff]  }
 0x656   :  { %v4240_v0 = vmul.f32 %v6864_v15, %v8675_v23  ;;  %4758 = vmatpush1.bf16.msra.mxu0 %v9007_v27  ;;  %4799 = vmatpush1.bf16.msra.mxu1 %v9012_v14  ;;  %v9044_v23 = vld [vmem:[%s9269_s5 + $0xa4] ss:$16 sps:$4 sm:$0xff]   ;;  %9361 = vst [vmem:[#allocation10_spill] sm:$0xff] %v9059_v54  ;;  %v9064_v15 = vld [vmem:[%s9269_s5 + $0xa8] ss:$16 sps:$4 sm:$0xff]  }
 0x657   :  { %4759 = vmatprep.subr.bf16.mxu0 %v9019_v1  ;;  %4800 = vmatprep.subr.bf16.mxu1 %v9024_v31  ;;  %9359 = vst [vmem:[#allocation8_spill] sm:$0xff] %v9044_v23  ;;  %9362 = vst [vmem:[#allocation11_spill] sm:$0xff] %v9064_v15 }
 0x658   :  { %v9051_v50 = vadd.f32 %v4241_v24, %v4240_v0  ;;  %v9071_v24 = vld [vmem:[%s9269_s5 + $0xc4] ss:$16 sps:$4 sm:$0xff]   ;;  %v9083_v0 = vld [vmem:[%s9269_s5 + $0xc0] ss:$16 sps:$4 sm:$0xff]  }
 0x659   :  { %9363 = vst [vmem:[#allocation12_spill] sm:$0xff] %v9071_v24 }
 0x65a   :  { %6867 = vtanh.f32 %v9051_v50  ;;  %4760 = vmatpush1.bf16.msra.mxu0 %v9032_v38  ;;  %4801 = vmatpush1.bf16.msra.mxu1 %v9037_v44 }
 0x65b   :  { %4761 = vmatprep.subr.bf16.mxu0 %v9044_v23  ;;  %4802 = vmatprep.subr.bf16.mxu1 %v9049_v45  ;;  %v9088_v45 = vld [vmem:[%s9269_s5 + $0xc8] ss:$16 sps:$4 sm:$0xff]   ;;  %v6866_v23 = vpop.eup %6865 }
 0x65c   :  { %9365 = vst [vmem:[#allocation14_spill] sm:$0xff] %v9088_v45 }
 0x65e   :  { %4762 = vmatpush1.bf16.msra.mxu0 %v9059_v54  ;;  %4803 = vmatpush1.bf16.msra.mxu1 %v9064_v15  ;;  %v9095_v54 = vld [vmem:[%s9269_s5 + $0xe4] ss:$16 sps:$4 sm:$0xff]   ;;  %v9100_v15 = vld [vmem:[%s9269_s5 + $0xec] ss:$16 sps:$4 sm:$0xff]  }
 0x65f   :  { %4763 = vmatprep.subr.bf16.mxu0 %v9071_v24  ;;  %4804 = vmatprep.subr.bf16.mxu1 %v9076_v9  ;;  %v9107_v24 = vld [vmem:[%s9269_s5 + $0xe0] ss:$16 sps:$4 sm:$0xff]   ;;  %v9112_v9 = vld [vmem:[%s9269_s5 + $0xe8] ss:$16 sps:$4 sm:$0xff]   ;;  %s5686_s5 = sld [smem:[#allocation5 + $0x8c]] }
 0x662   :  { %4764 = vmatpush1.bf16.msra.mxu0 %v9083_v0  ;;  %4805 = vmatpush1.bf16.msra.mxu1 %v9088_v45 }
 0x663   :  { %4765 = vmatprep.subr.bf16.mxu0 %v9095_v54  ;;  %4806 = vmatprep.subr.bf16.mxu1 %v9100_v15 }
 0x664   :  { %v6868_v44 = vpop.eup %6867 }
 0x665   :  { %v4244_v38 = vmul.f32 %v6868_v44, %v6866_v23  ;;  %s498_s28 = sshra.s32 %s5686_s5, 3  ;;  %s501_s18 = sand.u32 7, %s5686_s5 }
 0x666   :  { %4766 = vmatpush1.bf16.msra.mxu0 %v9107_v24  ;;  %4807 = vmatpush1.bf16.msra.mxu1 %v9112_v9  ;;  %s6286_s2 = sshll.u32 %s498_s28, 5  ;;  %s284_s5 = sshra.s32 %s5647_s0, 3 }
 0x667   :  { %4246 = vst [vmem:[%s9274_s10 + $0x28] sm:$0xff] %v4244_v38  ;;  %v4558_v45 = vpack.c.bf16 %v4244_v38, %v4244_v38  ;;  %5060 = vmatprep.subr.bf16.mxu0 %v8700_v20  ;;  %5101 = vmatprep.subr.bf16.mxu1 %v8705_v49  ;;  %s504_s20 = sadd.s32 %s6286_s2, %s501_s18  ;;  %v9163_v49 = vld [vmem:[%s9270_s6] sm:$0xf]  ;;  %s273_s6 = sand.u32 7, %s5644_s3 }
 0x668   :  { %s505_s19 = scalar_lea.vmem %s9268_s4, %s504_s20  ;;  %s276_s30 = sadd.s32 %s6272_s17, %s273_s6 }
 0x669   :  { %4784 = vmatmul.mubr.bf16.vlgmr.msra.gmra.mrb[52].mxu0 %v4558_v45  ;;  %4825 = vmatmul.mubr.bf16.vlgmr.msra.gmra.mrb[52].mxu1 %v4558_v45  ;;  %v506_v20 = vld [vmem:[%s505_s19] ss:$8 sm:$0xf]  ;;  %s287_s28 = sand.u32 7, %s5647_s0  ;;  %s277_s2 = scalar_lea.vmem %s9265_s1, %s276_s30 }
 0x66a   :  { %5061 = vmatpush1.bf16.msra.mxu0 %v8710_v4  ;;  %5102 = vmatpush1.bf16.msra.mxu1 %v8715_v28  ;;  %v507_v4 = vadd.f32 %v9163_v49, %v506_v20  ;;  %v520_v28 = vld [vmem:[%s519_s27] ss:$8 sm:$0xf]  ;;  %s6273_s20 = sshll.u32 %s284_s5, 5  ;;  %s540_s27 = sshra.s32 %s5695_s26, 3 }
 0x66b   :  { %5062 = vmatprep.subr.bf16.mxu0 %v8724_v36  ;;  %5103 = vmatprep.subr.bf16.mxu1 %v8729_v40  ;;  %v521_v36 = vadd.f32 %v9163_v49, %v520_v28  ;;  %v278_v40 = vld [vmem:[%s277_s2] ss:$8 sm:$0xf]  ;;  %s290_s14 = sadd.s32 %s6273_s20, %s287_s28  ;;  %s529_s3 = sand.u32 7, %s5692_s23 }
 0x66c   :  { %5092 = vmatprep.mubr.bf16.mxu0 %v9315_v3  ;;  %5133 = vmatprep.mubr.bf16.mxu1 %v9315_v3  ;;  %509 = vst.msk [vmem:[#allocation3 + $0xc0] ss:$8 sm:$0xf] %vm7371_vm0, %v507_v4  ;;  %s291_s19 = scalar_lea.vmem %s9265_s1, %s290_s14  ;;  %s6288_s0 = sshll.u32 %s526_s24, 5 }
 0x66d   :  { %523 = vst.msk [vmem:[#allocation3 + $0xc1] ss:$8 sm:$0xf] %vm7371_vm0, %v521_v36  ;;  %s532_s29 = sadd.s32 %s6288_s0, %s529_s3  ;;  %s543_s6 = sand.u32 7, %s5695_s26 }
 0x66e   :  { %5063 = vmatpush1.bf16.msra.mxu0 %v8734_v34  ;;  %5104 = vmatpush1.bf16.msra.mxu1 %v8739_v33  ;;  %v279_v34 = vadd.f32 %v8638_v25, %v278_v40  ;;  %v292_v33 = vld [vmem:[%s291_s19] ss:$8 sm:$0xf]  ;;  %s533_s30 = scalar_lea.vmem %s9268_s4, %s532_s29  ;;  %s6289_s28 = sshll.u32 %s540_s27, 5 }
 0x66f   :  { %5064 = vmatprep.subr.bf16.mxu0 %v8751_v52  ;;  %5105 = vmatprep.subr.bf16.mxu1 %v8756_v35  ;;  %v293_v52 = vadd.f32 %v8638_v25, %v292_v33  ;;  %v4247_v35 = vld [vmem:[#allocation2 + $0xc0] sm:$0xff]  ;;  %s546_s15 = sadd.s32 %s6289_s28, %s543_s6 }
 0x670   :  { %281 = vst.msk [vmem:[#allocation2 + $0xe0] ss:$8 sm:$0xf] %vm7371_vm0, %v279_v34  ;;  %s547_s20 = scalar_lea.vmem %s9268_s4, %s546_s15 }
 0x671   :  { %295 = vst.msk [vmem:[#allocation2 + $0xe1] ss:$8 sm:$0xf] %vm7371_vm0, %v293_v52 }
 0x672   :  { %5065 = vmatpush1.bf16.msra.mxu0 %v8765_v51  ;;  %5106 = vmatpush1.bf16.msra.mxu1 %v8770_v46  ;;  %v4248_v51 = vld [vmem:[#allocation2 + $0xc8] sm:$0xff] }
 0x673   :  { %5066 = vmatprep.subr.bf16.mxu0 %v8782_v47  ;;  %5107 = vmatprep.subr.bf16.mxu1 %v8787_v39 }
 0x674   :  { %v4554_v20 = vld [vmem:[#allocation3 + $0xc0] sm:$0xff]  ;;  %v4555_v4 = vld [vmem:[#allocation3 + $0xc8] sm:$0xff] }
 0x676   :  { %5067 = vmatpush1.bf16.msra.mxu0 %v8792_v57  ;;  %5108 = vmatpush1.bf16.msra.mxu1 %v8797_v58 }
 0x677   :  { %5068 = vmatprep.subr.bf16.mxu0 %v8808_v30  ;;  %5109 = vmatprep.subr.bf16.mxu1 %v8813_v60 }
 0x678   :  { %v4865_v48 = vld [vmem:[#allocation2 + $0xf0] sm:$0xff] }
 0x67a   :  { %5069 = vmatpush1.bf16.msra.mxu0 %v8818_v61  ;;  %5110 = vmatpush1.bf16.msra.mxu1 %v8823_v62 }
 0x67b   :  { %5070 = vmatprep.subr.bf16.mxu0 %v8837_v53  ;;  %5111 = vmatprep.subr.bf16.mxu1 %v8847_v55  ;;  %v4250_v55 = vld [vmem:[#allocation2 + $0xd8] sm:$0xff] }
 0x67e   :  { %5071 = vmatpush1.bf16.msra.mxu0 %v8832_v42  ;;  %5112 = vmatpush1.bf16.msra.mxu1 %v8842_v32 }
 0x67f   :  { %5072 = vmatprep.subr.bf16.mxu0 %v8855_v56  ;;  %5113 = vmatprep.subr.bf16.mxu1 %v8860_v5  ;;  %v4249_v56 = vld [vmem:[#allocation2 + $0xd0] sm:$0xff] }
 0x682   :  { %5073 = vmatpush1.bf16.msra.mxu0 %v8866_v43  ;;  %5114 = vmatpush1.bf16.msra.mxu1 %v8871_v6 }
 0x683   :  { %5074 = vmatprep.subr.bf16.mxu0 %v8879_v7  ;;  %5115 = vmatprep.subr.bf16.mxu1 %v8884_v8 }
 0x686   :  { %5075 = vmatpush1.bf16.msra.mxu0 %v8890_v10  ;;  %5116 = vmatpush1.bf16.msra.mxu1 %v8895_v11 }
 0x687   :  { %5367 = vmatprep.subr.bf16.mxu0 %v8903_v12  ;;  %5408 = vmatprep.subr.bf16.mxu1 %v8908_v13 }
 0x71c   :  { %v4478_v46 = vpop.f32.mrb[48].mxu0  ;;  %v4519_v47 = vpop.f32.mrb[48].mxu1 }
 0x71d   :  { %v4526_v39 = vadd.f32 %v4478_v46, %v4247_v35  ;;  %v4480_v57 = vpop.f32.mrb[49].mxu0  ;;  %v4521_v58 = vpop.f32.mrb[49].mxu1  ;;  %v4528_v43 = vadd.f32 %v4519_v47, %v4249_v56 }
 0x71e   :  { %v4527_v30 = vadd.f32 %v4480_v57, %v4248_v51  ;;  %v4482_v60 = vpop.f32.mrb[50].mxu0  ;;  %v4523_v61 = vpop.f32.mrb[50].mxu1  ;;  %v4529_v25 = vadd.f32 %v4521_v58, %v4250_v55 }
 0x71f   :  { %v6150_v62 = vmul.f32 -1.442695, %v4526_v39  ;;  %v4483_v42 = vpop.f32.mrb[51].mxu0  ;;  %v4524_v53 = vpop.f32.mrb[51].mxu1  ;;  %v4556_v60 = vld [vmem:[#allocation3 + $0xd0] sm:$0xff] }
 0x720   :  { %v6151_v32 = vmul.f32 -1.442695, %v4527_v30  ;;  %v6152_v5 = vmul.f32 -1.442695, %v4529_v25 }
 0x721   :  { %6869 = vpow2.f32 %v6150_v62 }
 0x722   :  { %6871 = vpow2.f32 %v6151_v32 }
 0x723   :  { %6873 = vpow2.f32 %v6152_v5 }
 0x724   :  { %6875 = vtanh.f32 %v4528_v43 }
 0x72b   :  { %v6870_v6 = vpop.eup %6869 }
 0x72c   :  { %v6872_v7 = vpop.eup %6871  ;;  %v4533_v8 = vadd.f32 1.0, %v6870_v6 }
 0x72d   :  { %v4539_v10 = vadd.f32 1.0, %v6872_v7  ;;  %v6874_v11 = vpop.eup %6873 }
 0x72e   :  { %6877 = vrcp.f32 %v4533_v8  ;;  %v6876_v12 = vpop.eup %6875  ;;  %v4546_v23 = vadd.f32 1.0, %v6874_v11 }
 0x72f   :  { %6879 = vrcp.f32 %v4539_v10  ;;  %v4864_v10 = vld [vmem:[#allocation2 + $0xe8] sm:$0xff] }
 0x730   :  { %6881 = vrcp.f32 %v4546_v23 }
 0x738   :  { %v6878_v13 = vpop.eup %6877 }
 0x739   :  { %v6880_v38 = vpop.eup %6879  ;;  %v4550_v44 = vmul.f32 %v6878_v13, %v6876_v12 }
 0x73a   :  { %v4549_v45 = vmul.f32 %v6880_v38, %v8926_v59  ;;  %v4557_v59 = vld [vmem:[#allocation3 + $0xd8] sm:$0xff]  ;;  %v6882_v61 = vpop.eup %6881 }
 0x73c   :  { %v9187_v28 = vadd.f32 %v4550_v44, %v4549_v45  ;;  %v4785_v36 = vpop.f32.mrb[52].mxu0  ;;  %v4826_v40 = vpop.f32.mrb[52].mxu1 }
 0x73d   :  { %v4833_v34 = vadd.f32 %v4785_v36, %v4554_v20  ;;  %v4787_v33 = vpop.f32.mrb[53].mxu0  ;;  %v4828_v52 = vpop.f32.mrb[53].mxu1  ;;  %v4835_v53 = vadd.f32 %v4826_v40, %v4556_v60 }
 0x73e   :  { %6883 = vtanh.f32 %v9187_v28  ;;  %v4834_v35 = vadd.f32 %v4787_v33, %v4555_v4  ;;  %v4789_v51 = vpop.f32.mrb[54].mxu0  ;;  %v4830_v46 = vpop.f32.mrb[54].mxu1  ;;  %v4836_v30 = vadd.f32 %v4828_v52, %v4557_v59  ;;  %v4866_v33 = vld [vmem:[#allocation2 + $0xf8] sm:$0xff] }
 0x73f   :  { %v6185_v47 = vmul.f32 -1.442695, %v4833_v34  ;;  %v4790_v39 = vpop.f32.mrb[55].mxu0  ;;  %v4831_v57 = vpop.f32.mrb[55].mxu1 }
 0x740   :  { %v6186_v58 = vmul.f32 -1.442695, %v4834_v35  ;;  %v6187_v42 = vmul.f32 -1.442695, %v4836_v30 }
 0x741   :  { %6885 = vpow2.f32 %v6185_v47 }
 0x742   :  { %6887 = vpow2.f32 %v6186_v58 }
 0x743   :  { %6889 = vpow2.f32 %v6187_v42 }
 0x744   :  { %6891 = vtanh.f32 %v4835_v53 }
 0x748   :  { %v6884_v62 = vpop.eup %6883 }
 0x749   :  { %v4553_v32 = vmul.f32 %v6884_v62, %v6882_v61 }
 0x74b   :  { %v6886_v55 = vpop.eup %6885  ;;  %4861 = vst [vmem:[%s9271_s7 + $0x30] sm:$0xff] %v4553_v32  ;;  %v4867_v25 = vpack.c.bf16 %v4553_v32, %v4553_v32 }
 0x74c   :  { %v6888_v56 = vpop.eup %6887  ;;  %v4840_v5 = vadd.f32 1.0, %v6886_v55 }
 0x74d   :  { %v4846_v43 = vadd.f32 1.0, %v6888_v56  ;;  %5093 = vmatmul.mubr.bf16.vlgmr.msra.gmra.mrb[56].mxu0 %v4867_v25  ;;  %5134 = vmatmul.mubr.bf16.vlgmr.msra.gmra.mrb[56].mxu1 %v4867_v25 }
 0x74e   :  { %6893 = vrcp.f32 %v4840_v5  ;;  %5368 = vmatpush1.bf16.msra.mxu0 %v8932_v21  ;;  %5409 = vmatpush1.bf16.msra.mxu1 %v8937_v29  ;;  %v6890_v21 = vpop.eup %6889 }
 0x74f   :  { %6895 = vrcp.f32 %v4846_v43  ;;  %5369 = vmatprep.subr.bf16.mxu0 %v8945_v2  ;;  %5410 = vmatprep.subr.bf16.mxu1 %v8950_v22  ;;  %v6892_v29 = vpop.eup %6891 }
 0x750   :  { %5399 = vmatprep.mubr.bf16.mxu0 %v9315_v3  ;;  %5440 = vmatprep.mubr.bf16.mxu1 %v9315_v3 }
 0x752   :  { %5370 = vmatpush1.bf16.msra.mxu0 %v8957_v19  ;;  %5411 = vmatpush1.bf16.msra.mxu1 %v8962_v37  ;;  %v4853_v19 = vadd.f32 1.0, %v6890_v21 }
 0x753   :  { %5371 = vmatprep.subr.bf16.mxu0 %v8969_v16  ;;  %5412 = vmatprep.subr.bf16.mxu1 %v8974_v17  ;;  %v9366_v17 = vld [vmem:[#allocation16_spill] sm:$0xff] }
 0x754   :  { %6897 = vrcp.f32 %v4853_v19 }
 0x756   :  { %5372 = vmatpush1.bf16.msra.mxu0 %v8983_v18  ;;  %5413 = vmatpush1.bf16.msra.mxu1 %v8988_v63  ;;  %v9367_v18 = vld [vmem:[#allocation7_spill] sm:$0xff]  ;;  %v9368_v63 = vld [vmem:[#allocation8_spill] sm:$0xff] }
 0x757   :  { %5373 = vmatprep.subr.bf16.mxu0 %v8995_v41  ;;  %5414 = vmatprep.subr.bf16.mxu1 %v9000_v26  ;;  %v9369_v41 = vld [vmem:[#allocation9_spill] sm:$0xff]  ;;  %v9370_v26 = vld [vmem:[#allocation10_spill] sm:$0xff] }
 0x758   :  { %v6894_v2 = vpop.eup %6893 }
 0x759   :  { %v6896_v3 = vpop.eup %6895  ;;  %v4857_v22 = vmul.f32 %v6894_v2, %v6892_v29 }
 0x75a   :  { %v4856_v37 = vmul.f32 %v6896_v3, %v9051_v50  ;;  %5374 = vmatpush1.bf16.msra.mxu0 %v9007_v27  ;;  %5415 = vmatpush1.bf16.msra.mxu1 %v9012_v14  ;;  %v9371_v27 = vld [vmem:[#allocation11_spill] sm:$0xff]  ;;  %v9372_v14 = vld [vmem:[#allocation12_spill] sm:$0xff] }
 0x75b   :  { %5375 = vmatprep.subr.bf16.mxu0 %v9019_v1  ;;  %5416 = vmatprep.subr.bf16.mxu1 %v9024_v31  ;;  %v9373_v1 = vld [vmem:[#allocation13_spill] sm:$0xff]  ;;  %v9374_v31 = vld [vmem:[#allocation14_spill] sm:$0xff] }
 0x75c   :  { %v9212_v16 = vadd.f32 %v4857_v22, %v4856_v37 }
 0x75e   :  { %6899 = vtanh.f32 %v9212_v16  ;;  %5376 = vmatpush1.bf16.msra.mxu0 %v9366_v17  ;;  %5417 = vmatpush1.bf16.msra.mxu1 %v9367_v18  ;;  %v6898_v50 = vpop.eup %6897 }
 0x75f   :  { %5377 = vmatprep.subr.bf16.mxu0 %v9368_v63  ;;  %5418 = vmatprep.subr.bf16.mxu1 %v9369_v41 }
 0x762   :  { %5378 = vmatpush1.bf16.msra.mxu0 %v9370_v26  ;;  %5419 = vmatpush1.bf16.msra.mxu1 %v9371_v27 }
 0x763   :  { %5379 = vmatprep.subr.bf16.mxu0 %v9372_v14  ;;  %5420 = vmatprep.subr.bf16.mxu1 %v9373_v1 }
 0x766   :  { %5380 = vmatpush1.bf16.msra.mxu0 %v9083_v0  ;;  %5421 = vmatpush1.bf16.msra.mxu1 %v9374_v31  ;;  %v4863_v0 = vld [vmem:[#allocation2 + $0xe0] sm:$0xff] }
 0x767   :  { %5381 = vmatprep.subr.bf16.mxu0 %v9095_v54  ;;  %5422 = vmatprep.subr.bf16.mxu1 %v9100_v15  ;;  %v534_v54 = vld [vmem:[%s533_s30] ss:$8 sm:$0xf] }
 0x768   :  { %v6900_v6 = vpop.eup %6899  ;;  %v535_v15 = vadd.f32 %v9163_v49, %v534_v54 }
 0x769   :  { %v4860_v7 = vmul.f32 %v6900_v6, %v6898_v50 }
 0x76a   :  { %5382 = vmatpush1.bf16.msra.mxu0 %v9107_v24  ;;  %5423 = vmatpush1.bf16.msra.mxu1 %v9112_v9  ;;  %v548_v24 = vld [vmem:[%s547_s20] ss:$8 sm:$0xf]  ;;  %537 = vst.msk [vmem:[#allocation3 + $0xe0] ss:$8 sm:$0xf] %vm7371_vm0, %v535_v15 }
 0x76b   :  { %4862 = vst [vmem:[%s9274_s10 + $0x30] sm:$0xff] %v4860_v7  ;;  %v5174_v8 = vpack.c.bf16 %v4860_v7, %v4860_v7  ;;  %v549_v9 = vadd.f32 %v9163_v49, %v548_v24 }
 0x76d   :  { %5400 = vmatmul.mubr.bf16.vlgmr.msra.gmra.mrb[60].mxu0 %v5174_v8  ;;  %5441 = vmatmul.mubr.bf16.vlgmr.msra.gmra.mrb[60].mxu1 %v5174_v8  ;;  %551 = vst.msk [vmem:[#allocation3 + $0xe1] ss:$8 sm:$0xf] %vm7371_vm0, %v549_v9 }
 0x774   :  { %v5170_v42 = vld [vmem:[#allocation3 + $0xe0] sm:$0xff]  ;;  %v5171_v53 = vld [vmem:[#allocation3 + $0xe8] sm:$0xff]  ;;  %v5173_v37 = vld [vmem:[#allocation3 + $0xf8] sm:$0xff] }
 0x775   :  { %v5172_v18 = vld [vmem:[#allocation3 + $0xf0] sm:$0xff] }
 0x820   :  { %v5094_v11 = vpop.f32.mrb[56].mxu0  ;;  %v5135_v12 = vpop.f32.mrb[56].mxu1 }
 0x821   :  { %v5142_v13 = vadd.f32 %v5094_v11, %v4863_v0  ;;  %v5096_v38 = vpop.f32.mrb[57].mxu0  ;;  %v5137_v44 = vpop.f32.mrb[57].mxu1  ;;  %v5144_v35 = vadd.f32 %v5135_v12, %v4865_v48 }
 0x822   :  { %v5143_v23 = vadd.f32 %v5096_v38, %v4864_v10  ;;  %v5098_v45 = vpop.f32.mrb[58].mxu0  ;;  %v5139_v20 = vpop.f32.mrb[58].mxu1  ;;  %v5145_v49 = vadd.f32 %v5137_v44, %v4866_v33 }
 0x823   :  { %v6220_v4 = vmul.f32 -1.442695, %v5142_v13  ;;  %v5099_v36 = vpop.f32.mrb[59].mxu0  ;;  %v5140_v40 = vpop.f32.mrb[59].mxu1 }
 0x824   :  { %v6221_v34 = vmul.f32 -1.442695, %v5143_v23  ;;  %v6222_v52 = vmul.f32 -1.442695, %v5145_v49 }
 0x825   :  { %6901 = vpow2.f32 %v6220_v4 }
 0x826   :  { %6903 = vpow2.f32 %v6221_v34 }
 0x827   :  { %6905 = vpow2.f32 %v6222_v52 }
 0x828   :  { %6907 = vtanh.f32 %v5144_v35 }
 0x82f   :  { %v6902_v51 = vpop.eup %6901 }
 0x830   :  { %v6904_v46 = vpop.eup %6903  ;;  %v5149_v47 = vadd.f32 1.0, %v6902_v51 }
 0x831   :  { %v5155_v39 = vadd.f32 1.0, %v6904_v46  ;;  %v6906_v57 = vpop.eup %6905 }
 0x832   :  { %6909 = vrcp.f32 %v5149_v47  ;;  %v6908_v58 = vpop.eup %6907  ;;  %v5162_v61 = vadd.f32 1.0, %v6906_v57 }
 0x833   :  { %6911 = vrcp.f32 %v5155_v39 }
 0x834   :  { %6913 = vrcp.f32 %v5162_v61 }
 0x83c   :  { %v6910_v59 = vpop.eup %6909 }
 0x83d   :  { %v6912_v30 = vpop.eup %6911  ;;  %v5166_v60 = vmul.f32 %v6910_v59, %v6908_v58 }
 0x83e   :  { %v5165_v62 = vmul.f32 %v6912_v30, %v9187_v28  ;;  %v6914_v63 = vpop.eup %6913 }
 0x840   :  { %v5167_v32 = vadd.f32 %v5166_v60, %v5165_v62  ;;  %v5401_v55 = vpop.f32.mrb[60].mxu0  ;;  %v5442_v25 = vpop.f32.mrb[60].mxu1 }
 0x841   :  { %v5449_v56 = vadd.f32 %v5401_v55, %v5170_v42  ;;  %v5403_v5 = vpop.f32.mrb[61].mxu0  ;;  %v5444_v43 = vpop.f32.mrb[61].mxu1  ;;  %v5451_v14 = vadd.f32 %v5442_v25, %v5172_v18 }
 0x842   :  { %6915 = vtanh.f32 %v5167_v32  ;;  %5480 = vst [vmem:[%s9273_s9] sm:$0xff] %v5167_v32  ;;  %v5450_v21 = vadd.f32 %v5403_v5, %v5171_v53  ;;  %v5405_v29 = vpop.f32.mrb[62].mxu0  ;;  %v5446_v2 = vpop.f32.mrb[62].mxu1  ;;  %v5452_v17 = vadd.f32 %v5444_v43, %v5173_v37 }
 0x843   :  { %v6255_v3 = vmul.f32 -1.442695, %v5449_v56  ;;  %v5406_v22 = vpop.f32.mrb[63].mxu0  ;;  %v5447_v28 = vpop.f32.mrb[63].mxu1 }
 0x844   :  { %v6256_v19 = vmul.f32 -1.442695, %v5450_v21  ;;  %v6257_v26 = vmul.f32 -1.442695, %v5452_v17 }
 0x845   :  { %6917 = vpow2.f32 %v6255_v3 }
 0x846   :  { %6919 = vpow2.f32 %v6256_v19 }
 0x847   :  { %6921 = vpow2.f32 %v6257_v26 }
 0x848   :  { %6923 = vtanh.f32 %v5451_v14 }
 0x84c   :  { %v6916_v41 = vpop.eup %6915 }
 0x84d   :  { %v5169_v27 = vmul.f32 %v6916_v41, %v6914_v63 }
 0x84f   :  { %v6918_v1 = vpop.eup %6917  ;;  %5477 = vst [vmem:[%s9271_s7 + $0x38] sm:$0xff] %v5169_v27  ;;  %5479 = vst [vmem:[%s9272_s8] sm:$0xff] %v5169_v27 }
 0x850   :  { %v6920_v31 = vpop.eup %6919  ;;  %v5456_v50 = vadd.f32 1.0, %v6918_v1 }
 0x851   :  { %v5462_v6 = vadd.f32 1.0, %v6920_v31  ;;  %v6922_v7 = vpop.eup %6921 }
 0x852   :  { %6925 = vrcp.f32 %v5456_v50  ;;  %v6924_v8 = vpop.eup %6923  ;;  %v5469_v9 = vadd.f32 1.0, %v6922_v7 }
 0x853   :  { %6927 = vrcp.f32 %v5462_v6 }
 0x854   :  { %6929 = vrcp.f32 %v5469_v9 }
 0x85c   :  { %v6926_v54 = vpop.eup %6925 }
 0x85d   :  { %v6928_v15 = vpop.eup %6927  ;;  %v5473_v24 = vmul.f32 %v6926_v54, %v6924_v8 }
 0x85e   :  { %v5472_v0 = vmul.f32 %v6928_v15, %v9212_v16  ;;  %v6930_v11 = vpop.eup %6929 }
 0x860   :  { %v5474_v10 = vadd.f32 %v5473_v24, %v5472_v0 }
 0x862   :  { %6931 = vtanh.f32 %v5474_v10  ;;  %5482 = vst [vmem:[%s9276_s12] sm:$0xff] %v5474_v10 }
 0x86c   :  { %v6932_v12 = vpop.eup %6931 }
 0x86d   :  { %v5476_v13 = vmul.f32 %v6932_v12, %v6930_v11 }
 0x86f   :  { %5478 = vst [vmem:[%s9274_s10 + $0x38] sm:$0xff] %v5476_v13  ;;  %5481 = vst [vmem:[%s9275_s11] sm:$0xff] %v5476_v13 }

</bundles_post_ra>
